<compile_context>
chip_gen: v5e
topology: v5e:2x2
jax: 0.10.0
libtpu: 0.0.40
codegen_flags: <defaults>
</compile_context>

<pallas_src>
import jax
import jax.numpy as jnp
from jax.experimental import pallas as pl
from jax.experimental.pallas import tpu as pltpu


# ---------------------------------------------------------------------------
# Host-side parameter transforms (run once, outside the kernel)
# ---------------------------------------------------------------------------
def _banded_conv_weight(w, H, W, out_padded):
    """Fold a (3,3,3,Cin,Cout) conv kernel into 3 banded matrices.

    Returns (3, (H+2)*(W+2)*Cin, OH*OW*Cout), (OH, OW) = (H+2, W+2) if
    out_padded else (H, W).  For depth tap kd:
        out_plane[d] += x_padded_plane[d + kd] @ big[kd]
    where padded planes are flattened as (hp*(W+2) + wp)*Cin + cin and the
    output plane is flattened as (oh*OW + ow)*Cout + cout.  When out_padded,
    results land in the interior of a padded plane (border columns all-zero).
    """
    Cin, Cout = w.shape[3], w.shape[4]
    Hp, Wp = H + 2, W + 2
    off = 1 if out_padded else 0
    OH, OW = (Hp, Wp) if out_padded else (H, W)
    k3 = jnp.arange(3)

    def sel(n_pad, n_out, n_valid):
        p = jnp.arange(n_pad)[None, :, None]          # (1, n_pad, 1)
        o = jnp.arange(n_out)[None, None, :]          # (1, 1, n_out)
        hit = p == (o - off + k3[:, None, None])      # (3, n_pad, n_out)
        valid = (o - off >= 0) & (o - off < n_valid)
        return (hit & valid).astype(w.dtype)

    sh = sel(Hp, OH, H)                               # (3, Hp, OH)
    sw = sel(Wp, OW, W)                               # (3, Wp, OW)
    big = jnp.einsum('ape,bqf,kabio->kpqiefo', sh, sw, w)
    return big.reshape(3, Hp * Wp * Cin, OH * OW * Cout)


def _padded_bias(b, H, W):
    """Bias in padded-plane layout: b at interior positions, 0 on the border."""
    Hp, Wp = H + 2, W + 2
    Cout = b.shape[0]
    bp = jnp.zeros((Hp, Wp, Cout), b.dtype).at[1:H + 1, 1:W + 1, :].set(b)
    return bp.reshape(1, Hp * Wp * Cout)


# ---------------------------------------------------------------------------
# Fused Pallas kernel (one batch element per grid step)
# ---------------------------------------------------------------------------
def _res_block_kernel(x_ref, r_ref, wmid_ref, bmid_ref, wlast_ref, blast_ref,
                      o_ref):
    """Fused residual conv block.

    x_ref    : (D+2, Lpad)            spatially + depth zero-padded input
    r_ref    : (D,   Lout)            residual (input in output layout)
    wmid_ref : (n_mid, 3, Lpad, Lpad) banded weights, padded-output layout
    bmid_ref : (n_mid, 1, Lpad)       biases in padded-plane layout
    wlast_ref: (3, Lpad, Lout)        banded weights, dense-output layout
    blast_ref: (1, Lout)
    o_ref    : (D, Lout)              Lout = H*W*Cout  (lane-dense)
    """
    D = o_ref.shape[0]
    Lpad = x_ref.shape[1]
    Lout = o_ref.shape[1]
    n_mid = wmid_ref.shape[0]
    f32 = jnp.float32
    zrow = jnp.zeros((1, Lpad), f32)

    h = x_ref[...].astype(f32)                            # (D+2, Lpad)
    for s in range(n_mid):                                # static unroll
        acc = jnp.zeros((D, Lpad), f32)
        for kd in range(3):
            acc = acc + jnp.dot(h[kd:kd + D, :], wmid_ref[s, kd],
                                preferred_element_type=f32)
        y = jnp.maximum(acc + bmid_ref[s], 0.0)           # pad border stays 0
        h = jnp.concatenate([zrow, y, zrow], axis=0)      # re-pad depth

    acc = jnp.zeros((D, Lout), f32)
    for kd in range(3):
        acc = acc + jnp.dot(h[kd:kd + D, :], wlast_ref[kd],
                            preferred_element_type=f32)
    out = acc + blast_ref[...] + r_ref[...].astype(f32)   # residual before ReLU
    o_ref[...] = jnp.maximum(out, 0.0).astype(o_ref.dtype)


# ---------------------------------------------------------------------------
# Wrapper
# ---------------------------------------------------------------------------
def residual_conv_block(x_ncdhw, weights, biases):
    """Pallas ResidualConvBlock.forward (normalization='none').

    x_ncdhw: (N, C, D, H, W) float32.  weights: list of (3,3,3,Cin,Cout)
    DHWIO arrays; biases: list of (Cout,).  Requires Cin == Cout (residual
    add) and n_stages >= 2.
    """
    N, C, D, H, W = x_ncdhw.shape
    n_stages = len(weights)
    assert n_stages >= 2, "fused kernel implemented for n_stages >= 2"
    Cout = weights[-1].shape[-1]
    assert Cout == C, "residual add requires n_filters_in == n_filters_out"
    Hp, Wp = H + 2, W + 2
    Lpad = Hp * Wp * C
    Lout = H * W * Cout
    n_mid = n_stages - 1

    x_cl = jnp.transpose(x_ncdhw, (0, 2, 3, 4, 1))        # NCDHW -> NDHWC
    x_res = x_cl.reshape(N, D, Lout)                      # residual/output layout
    # Single zero-pad pass over the block input only (intermediates stay in VMEM).
    x_in = jnp.pad(x_cl, ((0, 0), (1, 1), (1, 1), (1, 1), (0, 0))
                   ).reshape(N, D + 2, Lpad)

    w_mid = jnp.stack([_banded_conv_weight(weights[i], H, W, out_padded=True)
                       for i in range(n_mid)])            # (n_mid, 3, Lpad, Lpad)
    b_mid = jnp.stack([_padded_bias(biases[i], H, W)
                       for i in range(n_mid)])            # (n_mid, 1, Lpad)
    w_last = _banded_conv_weight(weights[-1], H, W, out_padded=False)
    b_last = jnp.broadcast_to(biases[-1], (H * W, Cout)).reshape(1, Lout)

    out_flat = pl.pallas_call(
        _res_block_kernel,
        out_shape=jax.ShapeDtypeStruct((N, D, Lout), x_ncdhw.dtype),
        grid=(N,),
        in_specs=[
            pl.BlockSpec((None, D + 2, Lpad), lambda n: (n, 0, 0)),
            pl.BlockSpec((None, D, Lout), lambda n: (n, 0, 0)),
            pl.BlockSpec((n_mid, 3, Lpad, Lpad), lambda n: (0, 0, 0, 0)),
            pl.BlockSpec((n_mid, 1, Lpad), lambda n: (0, 0, 0)),
            pl.BlockSpec((3, Lpad, Lout), lambda n: (0, 0, 0)),
            pl.BlockSpec((1, Lout), lambda n: (0, 0)),
        ],
        out_specs=pl.BlockSpec((None, D, Lout), lambda n: (n, 0, 0)),
        compiler_params=pltpu.CompilerParams(
            dimension_semantics=("parallel",),
            vmem_limit_bytes=32 * 1024 * 1024),
    )(x_in, x_res, w_mid, b_mid, w_last, b_last)

    out = out_flat.reshape(N, D, H, W, Cout)
    return jnp.transpose(out, (0, 4, 1, 2, 3))            # NDHWC -> NCDHW


# ---------------------------------------------------------------------------
# Pure-JAX reference (for correctness check)
# ---------------------------------------------------------------------------
def residual_conv_block_ref(x_ncdhw, weights, biases):
    x = jnp.transpose(x_ncdhw, (0, 2, 3, 4, 1))
    n_stages = len(weights)
    h = x
    for i in range(n_stages):
        h = jax.lax.conv_general_dilated(
            h, weights[i], window_strides=(1, 1, 1), padding='SAME',
            dimension_numbers=('NDHWC', 'DHWIO', 'NDHWC'),
            precision=jax.lax.Precision.HIGHEST) + biases[i]
        if i != n_stages - 1:
            h = jax.nn.relu(h)
    h = jax.nn.relu(h + x)
    return jnp.transpose(h, (0, 4, 1, 2, 3))


# ---------------------------------------------------------------------------
# Main
# ---------------------------------------------------------------------------
if __name__ == "__main__":
    # n_stages=2, Cin=Cout=4, input (N, C, D, H, W) = (2, 4, 8, 8, 8).
    N, C, D, H, W = 2, 4, 8, 8, 8
    n_stages = 2

    key = jax.random.PRNGKey(0)
    kx, *kws = jax.random.split(key, 1 + 2 * n_stages)
    x = jax.random.normal(kx, (N, C, D, H, W), dtype=jnp.float32)

    # Deterministic parameter init (PyTorch Conv3d default-style uniform bound).
    weights, biases = [], []
    fan_in = C * 27
    bound = 1.0 / (fan_in ** 0.5)
    for i in range(n_stages):
        w = jax.random.uniform(kws[2 * i], (3, 3, 3, C, C),
                               minval=-bound, maxval=bound, dtype=jnp.float32)
        b = jax.random.uniform(kws[2 * i + 1], (C,),
                               minval=-bound, maxval=bound, dtype=jnp.float32)
        weights.append(w)
        biases.append(b)

    out = residual_conv_block(x, weights, biases)
    out = jax.block_until_ready(out)

    ref = residual_conv_block_ref(x, weights, biases)
    assert out.shape == (N, C, D, H, W)
    assert jnp.allclose(out, ref, atol=1e-3, rtol=1e-3), "mismatch vs reference"

    print("KERNEL_OK")
</pallas_src>

<mosaic_0001>
module attributes {stable_mosaic.version = 11 : i64} {
  func.func @_res_block_kernel(%arg0: i32, %arg1: memref<1x10x400xf32, #tpu.memory_space<vmem>>, %arg2: memref<1x8x256xf32, #tpu.memory_space<vmem>>, %arg3: memref<1x3x400x400xf32, #tpu.memory_space<vmem>>, %arg4: memref<1x1x400xf32, #tpu.memory_space<vmem>>, %arg5: memref<3x400x256xf32, #tpu.memory_space<vmem>>, %arg6: memref<1x256xf32, #tpu.memory_space<vmem>>, %arg7: memref<1x8x256xf32, #tpu.memory_space<vmem>>) attributes {dimension_semantics = [#tpu.dimension_semantics<parallel>], iteration_bounds = array<i64: 2>, scalar_prefetch = 0 : i64, scratch_operands = 0 : i64, tpu.core_type = #tpu.core_type<tc>, window_params = [{transform_indices = @transform_0, window_bounds = array<i64: 1, 10, 400>}, {transform_indices = @transform_1, window_bounds = array<i64: 1, 8, 256>}, {pipeline_mode = #tpu.pipeline_mode<synchronous>, transform_indices = @transform_2, window_bounds = array<i64: 1, 3, 400, 400>}, {pipeline_mode = #tpu.pipeline_mode<synchronous>, transform_indices = @transform_3, window_bounds = array<i64: 1, 1, 400>}, {pipeline_mode = #tpu.pipeline_mode<synchronous>, transform_indices = @transform_4, window_bounds = array<i64: 3, 400, 256>}, {pipeline_mode = #tpu.pipeline_mode<synchronous>, transform_indices = @transform_5, window_bounds = array<i64: 1, 256>}, {transform_indices = @transform_6, window_bounds = array<i64: 1, 8, 256>}]} {
    %cst = arith.constant 0.000000e+00 : f32
    %0 = vector.broadcast %cst : f32 to vector<1x400xf32>
    %c0 = arith.constant 0 : index
    %c0_0 = arith.constant 0 : index
    %c0_1 = arith.constant 0 : index
    %1 = vector.load %arg1[%c0, %c0_0, %c0_1] : memref<1x10x400xf32, #tpu.memory_space<vmem>>, vector<1x10x400xf32>
    %2 = vector.shape_cast %1 : vector<1x10x400xf32> to vector<10x400xf32>
    %cst_2 = arith.constant 0.000000e+00 : f32
    %3 = vector.broadcast %cst_2 : f32 to vector<8x400xf32>
    %4 = vector.extract_strided_slice %2 {offsets = [0, 0], sizes = [8, 400], strides = [1, 1]} : vector<10x400xf32> to vector<8x400xf32>
    %c0_3 = arith.constant 0 : index
    %c0_4 = arith.constant 0 : index
    %c0_5 = arith.constant 0 : index
    %c0_6 = arith.constant 0 : index
    %5 = vector.load %arg3[%c0_3, %c0_4, %c0_5, %c0_6] : memref<1x3x400x400xf32, #tpu.memory_space<vmem>>, vector<1x1x400x400xf32>
    %6 = vector.shape_cast %5 : vector<1x1x400x400xf32> to vector<400x400xf32>
    %cst_7 = arith.constant dense<0.000000e+00> : vector<8x400xf32>
    %7 = tpu.matmul %4, %6, %cst_7 {dimension_numbers = #tpu.dot_dimension_numbers<[1], [0], [0], [1], [0, 0, 1, 1], [], []>} : vector<8x400xf32>, vector<400x400xf32>, vector<8x400xf32> -> vector<8x400xf32>
    %8 = arith.addf %3, %7 : vector<8x400xf32>
    %9 = vector.extract_strided_slice %2 {offsets = [1, 0], sizes = [8, 400], strides = [1, 1]} : vector<10x400xf32> to vector<8x400xf32>
    %c0_8 = arith.constant 0 : index
    %c1 = arith.constant 1 : index
    %c0_9 = arith.constant 0 : index
    %c0_10 = arith.constant 0 : index
    %10 = vector.load %arg3[%c0_8, %c1, %c0_9, %c0_10] : memref<1x3x400x400xf32, #tpu.memory_space<vmem>>, vector<1x1x400x400xf32>
    %11 = vector.shape_cast %10 : vector<1x1x400x400xf32> to vector<400x400xf32>
    %cst_11 = arith.constant dense<0.000000e+00> : vector<8x400xf32>
    %12 = tpu.matmul %9, %11, %cst_11 {dimension_numbers = #tpu.dot_dimension_numbers<[1], [0], [0], [1], [0, 0, 1, 1], [], []>} : vector<8x400xf32>, vector<400x400xf32>, vector<8x400xf32> -> vector<8x400xf32>
    %13 = arith.addf %8, %12 : vector<8x400xf32>
    %14 = vector.extract_strided_slice %2 {offsets = [2, 0], sizes = [8, 400], strides = [1, 1]} : vector<10x400xf32> to vector<8x400xf32>
    %c0_12 = arith.constant 0 : index
    %c2 = arith.constant 2 : index
    %c0_13 = arith.constant 0 : index
    %c0_14 = arith.constant 0 : index
    %15 = vector.load %arg3[%c0_12, %c2, %c0_13, %c0_14] : memref<1x3x400x400xf32, #tpu.memory_space<vmem>>, vector<1x1x400x400xf32>
    %16 = vector.shape_cast %15 : vector<1x1x400x400xf32> to vector<400x400xf32>
    %cst_15 = arith.constant dense<0.000000e+00> : vector<8x400xf32>
    %17 = tpu.matmul %14, %16, %cst_15 {dimension_numbers = #tpu.dot_dimension_numbers<[1], [0], [0], [1], [0, 0, 1, 1], [], []>} : vector<8x400xf32>, vector<400x400xf32>, vector<8x400xf32> -> vector<8x400xf32>
    %18 = arith.addf %13, %17 : vector<8x400xf32>
    %c0_16 = arith.constant 0 : index
    %c0_17 = arith.constant 0 : index
    %c0_18 = arith.constant 0 : index
    %19 = vector.load %arg4[%c0_16, %c0_17, %c0_18] : memref<1x1x400xf32, #tpu.memory_space<vmem>>, vector<1x1x400xf32>
    %20 = vector.shape_cast %19 : vector<1x1x400xf32> to vector<1x400xf32>
    %21 = vector.broadcast %20 : vector<1x400xf32> to vector<8x400xf32>
    %22 = arith.addf %18, %21 : vector<8x400xf32>
    %cst_19 = arith.constant 0.000000e+00 : f32
    %23 = vector.broadcast %cst_19 : f32 to vector<8x400xf32>
    %24 = arith.maximumf %22, %23 : vector<8x400xf32>
    %25 = tpu.concatenate %0, %24, %0 in 0 : vector<1x400xf32>, vector<8x400xf32>, vector<1x400xf32> -> vector<10x400xf32>
    %cst_20 = arith.constant 0.000000e+00 : f32
    %26 = vector.broadcast %cst_20 : f32 to vector<8x256xf32>
    %27 = vector.extract_strided_slice %25 {offsets = [0, 0], sizes = [8, 400], strides = [1, 1]} : vector<10x400xf32> to vector<8x400xf32>
    %c0_21 = arith.constant 0 : index
    %c0_22 = arith.constant 0 : index
    %c0_23 = arith.constant 0 : index
    %28 = vector.load %arg5[%c0_21, %c0_22, %c0_23] : memref<3x400x256xf32, #tpu.memory_space<vmem>>, vector<1x400x256xf32>
    %29 = vector.shape_cast %28 : vector<1x400x256xf32> to vector<400x256xf32>
    %cst_24 = arith.constant dense<0.000000e+00> : vector<8x256xf32>
    %30 = tpu.matmul %27, %29, %cst_24 {dimension_numbers = #tpu.dot_dimension_numbers<[1], [0], [0], [1], [0, 0, 1, 1], [], []>} : vector<8x400xf32>, vector<400x256xf32>, vector<8x256xf32> -> vector<8x256xf32>
    %31 = arith.addf %26, %30 : vector<8x256xf32>
    %32 = vector.extract_strided_slice %25 {offsets = [1, 0], sizes = [8, 400], strides = [1, 1]} : vector<10x400xf32> to vector<8x400xf32>
    %c1_25 = arith.constant 1 : index
    %c0_26 = arith.constant 0 : index
    %c0_27 = arith.constant 0 : index
    %33 = vector.load %arg5[%c1_25, %c0_26, %c0_27] : memref<3x400x256xf32, #tpu.memory_space<vmem>>, vector<1x400x256xf32>
    %34 = vector.shape_cast %33 : vector<1x400x256xf32> to vector<400x256xf32>
    %cst_28 = arith.constant dense<0.000000e+00> : vector<8x256xf32>
    %35 = tpu.matmul %32, %34, %cst_28 {dimension_numbers = #tpu.dot_dimension_numbers<[1], [0], [0], [1], [0, 0, 1, 1], [], []>} : vector<8x400xf32>, vector<400x256xf32>, vector<8x256xf32> -> vector<8x256xf32>
    %36 = arith.addf %31, %35 : vector<8x256xf32>
    %37 = vector.extract_strided_slice %25 {offsets = [2, 0], sizes = [8, 400], strides = [1, 1]} : vector<10x400xf32> to vector<8x400xf32>
    %c2_29 = arith.constant 2 : index
    %c0_30 = arith.constant 0 : index
    %c0_31 = arith.constant 0 : index
    %38 = vector.load %arg5[%c2_29, %c0_30, %c0_31] : memref<3x400x256xf32, #tpu.memory_space<vmem>>, vector<1x400x256xf32>
    %39 = vector.shape_cast %38 : vector<1x400x256xf32> to vector<400x256xf32>
    %cst_32 = arith.constant dense<0.000000e+00> : vector<8x256xf32>
    %40 = tpu.matmul %37, %39, %cst_32 {dimension_numbers = #tpu.dot_dimension_numbers<[1], [0], [0], [1], [0, 0, 1, 1], [], []>} : vector<8x400xf32>, vector<400x256xf32>, vector<8x256xf32> -> vector<8x256xf32>
    %41 = arith.addf %36, %40 : vector<8x256xf32>
    %c0_33 = arith.constant 0 : index
    %c0_34 = arith.constant 0 : index
    %42 = vector.load %arg6[%c0_33, %c0_34] : memref<1x256xf32, #tpu.memory_space<vmem>>, vector<1x256xf32>
    %43 = vector.broadcast %42 : vector<1x256xf32> to vector<8x256xf32>
    %44 = arith.addf %41, %43 : vector<8x256xf32>
    %c0_35 = arith.constant 0 : index
    %c0_36 = arith.constant 0 : index
    %c0_37 = arith.constant 0 : index
    %45 = vector.load %arg2[%c0_35, %c0_36, %c0_37] : memref<1x8x256xf32, #tpu.memory_space<vmem>>, vector<1x8x256xf32>
    %46 = vector.shape_cast %45 : vector<1x8x256xf32> to vector<8x256xf32>
    %47 = arith.addf %44, %46 : vector<8x256xf32>
    %cst_38 = arith.constant 0.000000e+00 : f32
    %48 = vector.broadcast %cst_38 : f32 to vector<8x256xf32>
    %49 = arith.maximumf %47, %48 : vector<8x256xf32>
    %c0_39 = arith.constant 0 : index
    %c0_40 = arith.constant 0 : index
    %c0_41 = arith.constant 0 : index
    %50 = vector.load %arg7[%c0_39, %c0_40, %c0_41] : memref<1x8x256xf32, #tpu.memory_space<vmem>>, vector<1x8x256xf32>
    %51 = vector.shape_cast %50 : vector<1x8x256xf32> to vector<8x256xf32>
    %52 = vector.shape_cast %49 : vector<8x256xf32> to vector<1x8x256xf32>
    tpu.vector_store %arg7[%c0_39, %c0_40, %c0_41], %52 {strides = array<i32>} : memref<1x8x256xf32, #tpu.memory_space<vmem>>, vector<1x8x256xf32>,
    return
  }
  func.func @transform_0(%arg0: i32) -> (i32, i32, i32) {
    %c0_i32 = arith.constant 0 : i32
    %c0_i32_0 = arith.constant 0 : i32
    %c0_i32_1 = arith.constant 0 : i32
    return %arg0, %c0_i32, %c0_i32_0 : i32, i32, i32
  }
  func.func @transform_1(%arg0: i32) -> (i32, i32, i32) {
    %c0_i32 = arith.constant 0 : i32
    %c0_i32_0 = arith.constant 0 : i32
    %c0_i32_1 = arith.constant 0 : i32
    return %arg0, %c0_i32, %c0_i32_0 : i32, i32, i32
  }
  func.func @transform_2(%arg0: i32) -> (i32, i32, i32, i32) {
    %c0_i32 = arith.constant 0 : i32
    %c0_i32_0 = arith.constant 0 : i32
    %c0_i32_1 = arith.constant 0 : i32
    %c0_i32_2 = arith.constant 0 : i32
    %c0_i32_3 = arith.constant 0 : i32
    return %c0_i32, %c0_i32_0, %c0_i32_1, %c0_i32_2 : i32, i32, i32, i32
  }
  func.func @transform_3(%arg0: i32) -> (i32, i32, i32) {
    %c0_i32 = arith.constant 0 : i32
    %c0_i32_0 = arith.constant 0 : i32
    %c0_i32_1 = arith.constant 0 : i32
    %c0_i32_2 = arith.constant 0 : i32
    return %c0_i32, %c0_i32_0, %c0_i32_1 : i32, i32, i32
  }
  func.func @transform_4(%arg0: i32) -> (i32, i32, i32) {
    %c0_i32 = arith.constant 0 : i32
    %c0_i32_0 = arith.constant 0 : i32
    %c0_i32_1 = arith.constant 0 : i32
    %c0_i32_2 = arith.constant 0 : i32
    return %c0_i32, %c0_i32_0, %c0_i32_1 : i32, i32, i32
  }
  func.func @transform_5(%arg0: i32) -> (i32, i32) {
    %c0_i32 = arith.constant 0 : i32
    %c0_i32_0 = arith.constant 0 : i32
    %c0_i32_1 = arith.constant 0 : i32
    return %c0_i32, %c0_i32_0 : i32, i32
  }
  func.func @transform_6(%arg0: i32) -> (i32, i32, i32) {
    %c0_i32 = arith.constant 0 : i32
    %c0_i32_0 = arith.constant 0 : i32
    %c0_i32_1 = arith.constant 0 : i32
    return %arg0, %c0_i32, %c0_i32_0 : i32, i32, i32
  }
}

</mosaic_0001>

<bundles_post_ra>
// kernel: tpu_custom_call.1
= control target key start
LH: loop header
LB: loop body
LE: loop exit
PB: predicated region body
PF: predicated region fallthrough
CT: control target
= control target key end

     0   :  { %s3866_s0 = inlined_call_operand.vmem [shape: f32[2,10,400], index: 0, kind: input, shape index: {}]   ;;  %s3867_s1 = inlined_call_operand.hbm [shape: f32[2,8,256], index: 1, kind: input, shape index: {}]   ;;  %s3868_s2 = inlined_call_operand.hbm [shape: f32[1,3,400,400], index: 2, kind: input, shape index: {}]   ;;  %s3869_s3 = inlined_call_operand.hbm [shape: f32[1,1,400], index: 3, kind: input, shape index: {}]   ;;  %s3870_s4 = inlined_call_operand.hbm [shape: f32[3,400,256], index: 4, kind: input, shape index: {}]   ;;  %s3871_s5 = inlined_call_operand.hbm [shape: f32[1,256], index: 5, kind: input, shape index: {}]   ;;  %s3872_s6 = inlined_call_operand.hbm [shape: f32[2,8,256], index: 6, kind: output, shape index: {}]  }
   0x1   :  { %3873 = sst [smem:[#allocation16_spill]] %s3868_s2 }
   0x2   :  { %11 = vsyncpa [#allocation3], 0 }
   0x3   :  { %13 = vsyncpa [#allocation3 + $0x1], 0 }
   0x4   :  { %14 = vsyncpa [#allocation6], 0 }
   0x5   :  { %15 = vsyncpa [#allocation9], 0 }
   0x6   :  { %16 = vsyncpa [#allocation4], 0 }
   0x7   :  { %18 = vsyncpa [#allocation4 + $0x1], 0  ;;  %s3418_s21 = smov 0   ;;  %s3420_s22 = smov 0  }
   0x8   :  { %s3422_s23 = smov 0   ;;  %s3424_s24 = smov 0  }
   0x9 LB: > { %s3874_s2 = sld [smem:[#allocation16_spill]]  ;;  %s3442_s28 = sadd.s32 4294967295, %s3373_s24   ;;  %s3373_s24 = sphi %s3424_s24, %s3888_s24   ;;  %s3369_s23 = sphi %s3422_s23, %s3887_s23   ;;  %s3365_s22 = sphi %s3420_s22, %s3886_s22   ;;  %s3361_s21 = sphi %s3418_s21, %s3885_s21  }
   0xa   : > { %p2994_p0 = scmp.ge.s32.totalorder %s3373_s24, 1  ;;  %p71_p1 = scmp.eq.s32.totalorder %s3442_s28, 0 }
   0xb   : > { %p191_p2 = scmp.lt.s32.totalorder %s3373_s24, 3  ;;  %s3375_s30 = smov [#allocation5]  }
   0xc   : > { %s204_s7 = sshll.u32 %s3375_s30, 4  ;;  %s228_s10 = sshll.u32 %s3870_s4, 4  ;;  %s205_s7 = int_to_ptr.vmem [resolvable:$true] %s204_s7  ;;  %s229_s10 = int_to_ptr.hbm [resolvable:$true] %s228_s10 }
   0xd   : > { %p3447_p3 = pnand %p2994_p0, %p191_p2  ;;  %s3376_s12 = smov [#allocation8]  }
   0xe   : > { %s230_s13 = sshll.u32 %s3376_s12, 4  ;;  %s3377_s14 = smov 512   ;;  %s231_s13 = int_to_ptr.vmem [resolvable:$true] %s230_s13 }
   0xf   : > { %s202_s27 = sshll.u32 %s3874_s2, 4  ;;  %p3070_p4 = pneg %p3447_p3  ;;  %s203_s27 = int_to_ptr.hbm [resolvable:$true] %s202_s27 }
  0x10   : > { %s3378_s15 = smov 32   ;;  %s3379_s16 = smov 256  }
  0x11   : > { %p3459_p6 = pnand %p3070_p4, %p71_p1  ;;  %s3380_s17 = smov 16  }
  0x12   : > { %s217_s20 = sshll.u32 %s3869_s3, 4  ;;  %s3381_s25 = smov [#allocation7]   ;;  %s218_s20 = int_to_ptr.hbm [resolvable:$true] %s217_s20 }
  0x13   : > { %3073 = dma.hbm_to_vmem [thread:$0]  (!%p3459_p6), %s203_s27, 76800, %s205_s7, [#allocation6], %s3377_s14, %s3377_s14, %s3378_s15  }
  0x14   : > { %3079 = dma.hbm_to_vmem [thread:$0]  (!%p3459_p6), %s229_s10, 38400, %s231_s13, [#allocation9], %s3379_s16, %s3379_s16, %s3380_s17  }
  0x15   : > { %s219_s26 = sshll.u32 %s3381_s25, 4  ;;  %s243_s7 = sshll.u32 %s3871_s5, 4  ;;  %s220_s26 = int_to_ptr.vmem [resolvable:$true] %s219_s26  ;;  %s244_s7 = int_to_ptr.hbm [resolvable:$true] %s243_s7 }
  0x16   : > { %3076 = dma.hbm_to_vmem [thread:$0]  (!%p3459_p6), %s218_s20, 64, %s220_s26, [#allocation6]  }
  0x17   : > { %s3382_s8 = smov [#allocation10]   ;;  %s2993_s10 = sadd.s32 4294967294, %s3373_s24  }
  0x18   : > { %s245_s9 = sshll.u32 %s3382_s8, 4  ;;  %s3479_s12 = sadd.s32 1, %s3373_s24   ;;  %s246_s9 = int_to_ptr.vmem [resolvable:$true] %s245_s9 }
  0x19   : > { %3082 = dma.hbm_to_vmem [thread:$0]  (!%p3459_p6), %s244_s7, 32, %s246_s9, [#allocation9]  }
  0x1a   : > { %s54_s13 = ssub.s32 %s3373_s24, %s3479_s12  ;;  %s57_s14 = sadd.s32 1, %s3369_s23 }
  0x1b   : > { %p55_p7 = scmp.eq.s32.totalorder %s54_s13, 0  ;;  %p64_p8 = scmp.ne.s32.totalorder %s3369_s23, %s3365_s22 }
  0x1c   : > { %p65_p9 = scmp.eq.s32.totalorder %s3373_s24, 0  ;;  %p70_p10 = scmp.ne.s32.totalorder %s3365_s22, %s3361_s21 }
  0x1d   : > { %s3490_s15 = scalar_select %p55_p7, %s3369_s23, %s57_s14  }
  0x1e   : > { %p3492_p11 = por %p65_p9, %p64_p8  ;;  %p3498_p12 = por %p71_p1, %p70_p10 }
  0x1f   : > { %p178_p13 = scmp.eq.s32.totalorder %s3442_s28, 1  ;;  %p184_p0 = scmp.eq.s32.totalorder %s2993_s10, 1 }
  0x20   : > { %p3095_p2 = scmp.lt.s32.totalorder %s3373_s24, 2  ;;  %s264_s17 = sand.u32 1, %s3369_s23  }
  0x21   : > { %p3505_p4 = por %p178_p13, %p64_p8  ;;  %p3509_p6 = por %p184_p0, %p70_p10 }
  0x22   : > { %s3000_s20 = sshll.u32 %s264_s17, 4  ;;  %s3047_s25 = sshll.u32 %s3373_s24, 4 }
  0x23   : > { %s273_s30 = scalar_lea.hbm %s3867_s1, %s3047_s25  ;;  %s268_s7 = scalar_lea.vmem [#allocation2], %s3000_s20 }
  0x24   : > { %s277_s8 = sshll.u32 %s268_s7, 4  ;;  %s275_s9 = sshll.u32 %s273_s30, 4  ;;  %s278_s8 = int_to_ptr.vmem [resolvable:$true] %s277_s8  ;;  %s276_s9 = int_to_ptr.hbm [resolvable:$true] %s275_s9 }
  0x25   : > { %p3519_p7 = pnand %p3095_p2, %p3492_p11  ;;  %s265_s13 = scalar_lea.sflag [#allocation3], %s264_s17 }
  0x26   : > { %s3269_s14 = sshra.s32 %s276_s9, 4  ;;  %s3276_s26 = scalar_lea.hbm %s3867_s1, 32  ;;  %s3270_s14 = int_to_ptr.hbm [resolvable:$true] %s3269_s14 }
  0x27   : > { %s3271_s2 = scalar_lea.hbm %s3270_s14, 16  ;;  %p3273_p9 = pneg %p3519_p7 }
  0x28   : > { %p3272_p8 = scmp.ne.s32.totalorder %s3270_s14, %s3271_s2  ;;  %p3277_p11 = scmp.lt.s32.totalorder %s3270_s14, %s3867_s1 }
  0x29   : > { %p3278_p0 = scmp.lt.s32.totalorder %s3276_s26, %s3271_s2 }
  0x2a   : > { %p3274_p10 = pnand %p3273_p9, %p3272_p8 }
  0x2b   : > { %p3279_p2 = por %p3278_p0, %p3277_p11 }
  0x2c   : > { %p3275_p13 = pneg %p3274_p10 }
  0x2e   : > { %p3280_p5 = pnand %p3279_p2, %p3275_p13 }
  0x30   : > { %3283 = shalt.err (!%p3280_p5)
}
  0x31   : > { %3086 = dma.hbm_to_vmem [thread:$0]  (!%p3519_p7), %s276_s9, 256, %s278_s8, %s265_s13  }
  0x32   : > { %286 = sbr.rel (%p3447_p3) target bundleno = 797 (0x31d), region = 44  ;;  %s3536_s17 = sand.u32 (!%p3447_p3), 1, %s3365_s22  }
  0x33   : > { %s3004_s30 = sshll.u32 (!%p3447_p3), %s3536_s17, 4  ;;  %s289_s7 = scalar_lea.sflag (!%p3447_p3), [#allocation3], %s3536_s17 }
  0x34   : > { %s3542_s2 = scalar_lea.vmem (!%p3447_p3), [#allocation2], %s3004_s30 }
  0x37   : > { %3344 = dma.done.wait (%p3498_p12), %s289_s7, 256  }
  0x38   : > { %3346 = vsyncadd (%p3498_p12), %s289_s7, 4294967040 }
  0x39   : > { %3348 = dma.done.wait (%p71_p1), [#allocation6], 76864  }
  0x3a   : > { %3350 = vsyncadd (%p71_p1), [#allocation6], 4294890432 }
  0x3b   : > { %3352 = dma.done.wait (%p71_p1), [#allocation9], 38432  }
  0x3c   : > { %3354 = vsyncadd (%p71_p1), [#allocation9], 4294928864  ;;  %v621_v0 = vld [vmem:[#allocation5 + $0x820] sm:$0xff]  ;;  %v622_v8 = vld [vmem:[#allocation5 + $0x828] sm:$0xff]  ;;  %p347_p1 = scmp.lt.s32.totalorder %s3442_s28, 1  ;;  %vm769_vm0 = vcmask 1046528  }
  0x3d   : > { %v685_v1 = vld [vmem:[#allocation5 + $0xa20] sm:$0xff]  ;;  %788 = vmatpush.msra.mxu0 %v621_v0  ;;  %v618_v12 = vld [vmem:[#allocation5 + $0x808] sm:$0xff]  ;;  %vm785_vm1 = vcmask 130048   ;;  %vm1631_vm2 = vcmask 1045504   ;;  %vm2003_vm3 = vcmask 1040384   ;;  %s346_s13 = scalar_lea.vmem [#allocation11], %s3004_s30 }
  0x3e   : > { %v749_v2 = vld [vmem:[#allocation5 + $0xc20] sm:$0xff]  ;;  %808 = vmatpush.msra.mxu1 %v685_v1  ;;  %v614_v16 = vld [vmem:[#allocation5 + $0x7e8] sm:$0xff]  ;;  %s3560_s29 = scalar_select %p347_p1, %s3442_s28, 1  ;;  %vm3774_vm4 = vmneg %vm2003_vm3 }
  0x3f   : > { %v757_v3 = vld [vmem:[#allocation5 + $0xc60] sm:$0xff]  ;;  %828 = vmatpush.msra.mxu2 %v749_v2  ;;  %v610_v20 = vld [vmem:[#allocation5 + $0x7c8] sm:$0xff]  ;;  %s3049_s14 = sshll.u32 %s3442_s28, 4  ;;  %s2870_s27 = sshll.u32 %s346_s13, 4  ;;  %s2871_s27 = int_to_ptr.vmem [resolvable:$true] %s2870_s27 }
  0x40   : > { %v617_v4 = vld [vmem:[#allocation5 + $0x800] sm:$0xff]  ;;  %862 = vmatpush.msra.mxu3 %v757_v3  ;;  %v606_v24 = vld [vmem:[#allocation5 + $0x7a8] sm:$0xff]  ;;  %s3048_s11 = sshll.u32 %s3560_s29, 6  ;;  %s2868_s26 = scalar_lea.hbm %s3872_s6, %s3049_s14 }
  0x41   : > { %v681_v5 = vld [vmem:[#allocation5 + $0xa00] sm:$0xff]  ;;  %789 = vmatpush.msra.mxu0 %v617_v4  ;;  %v602_v28 = vld [vmem:[#allocation5 + $0x788] sm:$0xff]  ;;  %s3566_s10 = scalar_lea.vmem %s3866_s0, %s3048_s11  ;;  %s2872_s16 = sshll.u32 %s2868_s26, 4  ;;  %s2873_s16 = int_to_ptr.hbm [resolvable:$true] %s2872_s16 }
  0x42   : > { %v745_v6 = vld [vmem:[#allocation5 + $0xc00] sm:$0xff]  ;;  %809 = vmatpush.msra.mxu1 %v681_v5  ;;  %v598_v32 = vld [vmem:[#allocation5 + $0x768] sm:$0xff]  ;;  %v3569_v60 = vld [vmem:[%s3566_s10 + $0x10] sm:$0xff]  ;;  %s2857_s30 = scalar_lea.sflag [#allocation4], %s3536_s17  ;;  %s3313_s28 = sshra.s32 %s2873_s16, 4  ;;  %s3314_s28 = int_to_ptr.hbm [resolvable:$true] %s3313_s28 }
  0x43   : > { %v753_v7 = vld [vmem:[#allocation5 + $0xc40] sm:$0xff]  ;;  %829 = vmatpush.msra.mxu2 %v745_v6  ;;  %v594_v36 = vld [vmem:[#allocation5 + $0x748] sm:$0xff]  ;;  %v358_v61 = vld [vmem:[%s3566_s10 + $0x30] sm:$0x3]  ;;  %s3315_s7 = scalar_lea.hbm %s3314_s28, 16  ;;  %p3320_p7 = scmp.lt.s32.totalorder %s3314_s28, %s3872_s6 }
  0x44   : > { %v613_v9 = vld [vmem:[#allocation5 + $0x7e0] sm:$0xff]  ;;  %863 = vmatpush.msra.mxu3 %v753_v7  ;;  %v590_v40 = vld [vmem:[#allocation5 + $0x728] sm:$0xff]  ;;  %v3573_v62 = vld [vmem:[%s3566_s10 + $0x18] sm:$0xff]  ;;  %p3316_p3 = scmp.ne.s32.totalorder %s3314_s28, %s3315_s7 }
  0x45   : > { %v677_v10 = vld [vmem:[#allocation5 + $0x9e0] sm:$0xff]  ;;  %790 = vmatpush.msra.mxu0 %v613_v9  ;;  %v586_v44 = vld [vmem:[#allocation5 + $0x708] sm:$0xff]  ;;  %v359_v63 = vld [vmem:[%s3566_s10 + $0x38] sm:$0x3]  ;;  %v777_v9 = vrot.slane %v358_v61, 1 }
  0x46   : > { %v741_v11 = vld [vmem:[#allocation5 + $0xbe0] sm:$0xff]  ;;  %868 = vmatpush.msrb.mxu3 %v622_v8  ;;  %810 = vmatpush.msra.mxu1 %v677_v10  ;;  %v582_v48 = vld [vmem:[#allocation5 + $0x6e8] sm:$0xff]  ;;  %v776_v8 = vrot.slane %v3569_v60, 1  ;;  %v779_v10 = vrot.slane %v3573_v62, 1  ;;  %v591_v61 = vld [vmem:[#allocation5 + $0x730] sm:$0xff]  ;;  %p3317_p5 = pnand %p3316_p3, %p3505_p4 }
  0x47   : > { %v609_v13 = vld [vmem:[#allocation5 + $0x7c0] sm:$0xff]  ;;  %830 = vmatpush.msra.mxu2 %v741_v11  ;;  %v578_v52 = vld [vmem:[#allocation5 + $0x6c8] sm:$0xff]  ;;  %v780_v11 = vrot.slane %v359_v63, 1  ;;  %v655_v63 = vld [vmem:[#allocation5 + $0x930] sm:$0xff] }
  0x48   : > { %v673_v14 = vld [vmem:[#allocation5 + $0x9c0] sm:$0xff]  ;;  %869 = vmatpush.msrb.mxu3 %v618_v12  ;;  %791 = vmatpush.msra.mxu0 %v609_v13  ;;  %v574_v56 = vld [vmem:[#allocation5 + $0x6a8] sm:$0xff]  ;;  %p3318_p12 = pneg %p3317_p5 }
  0x49   : > { %v737_v15 = vld [vmem:[#allocation5 + $0xbc0] sm:$0xff]  ;;  %811 = vmatpush.msra.mxu1 %v673_v14  ;;  %v570_v0 = vld [vmem:[#allocation5 + $0x688] sm:$0xff] }
  0x4a   : > { %v605_v17 = vld [vmem:[#allocation5 + $0x7a0] sm:$0xff]  ;;  %831 = vmatpush.msra.mxu2 %v737_v15  ;;  %870 = vmatpush.msrb.mxu3 %v614_v16  ;;  %v566_v4 = vld [vmem:[#allocation5 + $0x668] sm:$0xff] }
  0x4b   : > { %v669_v18 = vld [vmem:[#allocation5 + $0x9a0] sm:$0xff]  ;;  %792 = vmatpush.msra.mxu0 %v605_v17  ;;  %v686_v5 = vld [vmem:[#allocation5 + $0xa28] sm:$0xff] }
  0x4c   : > { %v733_v19 = vld [vmem:[#allocation5 + $0xba0] sm:$0xff]  ;;  %812 = vmatpush.msra.mxu1 %v669_v18  ;;  %871 = vmatpush.msrb.mxu3 %v610_v20  ;;  %v750_v6 = vld [vmem:[#allocation5 + $0xc28] sm:$0xff]  ;;  %v3587_v20 = vsel %vm769_vm0, %v776_v8, %v777_v9 }
  0x4d   : > { %v601_v21 = vld [vmem:[#allocation5 + $0x780] sm:$0xff]  ;;  %832 = vmatpush.msra.mxu2 %v733_v19  ;;  %v758_v7 = vld [vmem:[#allocation5 + $0xc68] sm:$0xff] }
  0x4e   : > { %v665_v22 = vld [vmem:[#allocation5 + $0x980] sm:$0xff]  ;;  %793 = vmatpush.msra.mxu0 %v601_v21  ;;  %872 = vmatpush.msrb.mxu3 %v606_v24  ;;  %v562_v12 = vld [vmem:[#allocation5 + $0x648] sm:$0xff]  ;;  %v3590_v21 = vsel %vm769_vm0, %v779_v10, %v780_v11  ;;  %v579_v10 = vld [vmem:[#allocation5 + $0x6d0] sm:$0xff] }
  0x4f   : > { %v729_v23 = vld [vmem:[#allocation5 + $0xb80] sm:$0xff]  ;;  %813 = vmatpush.msra.mxu1 %v665_v22  ;;  %v682_v13 = vld [vmem:[#allocation5 + $0xa08] sm:$0xff]  ;;  %v623_v22 = vld [vmem:[#allocation5 + $0x830] sm:$0xff]  ;;  %3012 = vmatmul.msk.f32.vlgmr.msra.gmra.mxu3 %vm785_vm1, %v3590_v21 }
  0x50   : > { %v597_v25 = vld [vmem:[#allocation5 + $0x760] sm:$0xff]  ;;  %833 = vmatpush.msra.mxu2 %v729_v23  ;;  %873 = vmatpush.msrb.mxu3 %v602_v28  ;;  %v3583_v16 = vld [vmem:[%s3566_s10 + $0x8] sm:$0xff]  ;;  %v687_v23 = vld [vmem:[#allocation5 + $0xa30] sm:$0xff] }
  0x51   : > { %v661_v26 = vld [vmem:[#allocation5 + $0x960] sm:$0xff]  ;;  %794 = vmatpush.msra.mxu0 %v597_v25  ;;  %v357_v17 = vld [vmem:[%s3566_s10 + $0x28] sm:$0x3]  ;;  %v643_v11 = vld [vmem:[#allocation5 + $0x8d0] sm:$0xff] }
  0x52   : > { %v725_v27 = vld [vmem:[#allocation5 + $0xb60] sm:$0xff]  ;;  %814 = vmatpush.msra.mxu1 %v661_v26  ;;  %874 = vmatpush.msrb.mxu3 %v598_v32  ;;  %v746_v18 = vld [vmem:[#allocation5 + $0xc08] sm:$0xff]  ;;  %v773_v26 = vrot.slane %v3583_v16, 1 }
  0x53   : > { %v593_v29 = vld [vmem:[#allocation5 + $0x740] sm:$0xff]  ;;  %834 = vmatpush.msra.mxu2 %v725_v27  ;;  %v754_v19 = vld [vmem:[#allocation5 + $0xc48] sm:$0xff]  ;;  %v774_v27 = vrot.slane %v357_v17, 1  ;;  %v639_v17 = vld [vmem:[#allocation5 + $0x8b0] sm:$0xff] }
  0x54   : > { %v657_v30 = vld [vmem:[#allocation5 + $0x940] sm:$0xff]  ;;  %795 = vmatpush.msra.mxu0 %v593_v29  ;;  %875 = vmatpush.msrb.mxu3 %v594_v36  ;;  %v678_v28 = vld [vmem:[#allocation5 + $0x9e8] sm:$0xff]  ;;  %v615_v36 = vld [vmem:[#allocation5 + $0x7f0] sm:$0xff] }
  0x55   : > { %v721_v31 = vld [vmem:[#allocation5 + $0xb40] sm:$0xff]  ;;  %815 = vmatpush.msra.mxu1 %v657_v30  ;;  %v742_v29 = vld [vmem:[#allocation5 + $0xbe8] sm:$0xff]  ;;  %v619_v30 = vld [vmem:[#allocation5 + $0x810] sm:$0xff] }
  0x56   : > { %v589_v33 = vld [vmem:[#allocation5 + $0x720] sm:$0xff]  ;;  %835 = vmatpush.msra.mxu2 %v721_v31  ;;  %876 = vmatpush.msrb.mxu3 %v590_v40  ;;  %v683_v31 = vld [vmem:[#allocation5 + $0xa10] sm:$0xff]  ;;  %v674_v32 = vld [vmem:[#allocation5 + $0x9c8] sm:$0xff] }
  0x57   : > { %v653_v34 = vld [vmem:[#allocation5 + $0x920] sm:$0xff]  ;;  %796 = vmatpush.msra.mxu0 %v589_v33  ;;  %v738_v33 = vld [vmem:[#allocation5 + $0xbc8] sm:$0xff]  ;;  %v611_v40 = vld [vmem:[#allocation5 + $0x7d0] sm:$0xff] }
  0x58   : > { %v717_v35 = vld [vmem:[#allocation5 + $0xb20] sm:$0xff]  ;;  %816 = vmatpush.msra.mxu1 %v653_v34  ;;  %877 = vmatpush.msrb.mxu3 %v586_v44  ;;  %v607_v44 = vld [vmem:[#allocation5 + $0x7b0] sm:$0xff]  ;;  %v638_v8 = vld [vmem:[#allocation5 + $0x8a8] sm:$0xff] }
  0x59   : > { %v585_v37 = vld [vmem:[#allocation5 + $0x700] sm:$0xff]  ;;  %836 = vmatpush.msra.mxu2 %v717_v35  ;;  %v3601_v35 = vsel %vm769_vm0, %v773_v26, %v774_v27  ;;  %v702_v9 = vld [vmem:[#allocation5 + $0xaa8] sm:$0xff]  ;;  %v567_v26 = vld [vmem:[#allocation5 + $0x670] sm:$0xff] }
  0x5a   : > { %v649_v38 = vld [vmem:[#allocation5 + $0x900] sm:$0xff]  ;;  %797 = vmatpush.msra.mxu0 %v585_v37  ;;  %878 = vmatpush.msrb.mxu3 %v582_v48  ;;  %v679_v37 = vld [vmem:[#allocation5 + $0x9f0] sm:$0xff] }
  0x5b   : > { %v713_v39 = vld [vmem:[#allocation5 + $0xb00] sm:$0xff]  ;;  %817 = vmatpush.msra.mxu1 %v649_v38  ;;  %v670_v38 = vld [vmem:[#allocation5 + $0x9a8] sm:$0xff]  ;;  %v603_v48 = vld [vmem:[#allocation5 + $0x790] sm:$0xff] }
  0x5c   : > { %v581_v41 = vld [vmem:[#allocation5 + $0x6e0] sm:$0xff]  ;;  %837 = vmatpush.msra.mxu2 %v713_v39  ;;  %879 = vmatpush.msrb.mxu3 %v578_v52  ;;  %v734_v39 = vld [vmem:[#allocation5 + $0xba8] sm:$0xff]  ;;  %v599_v52 = vld [vmem:[#allocation5 + $0x770] sm:$0xff] }
  0x5d   : > { %v645_v42 = vld [vmem:[#allocation5 + $0x8e0] sm:$0xff]  ;;  %798 = vmatpush.msra.mxu0 %v581_v41  ;;  %v675_v41 = vld [vmem:[#allocation5 + $0x9d0] sm:$0xff] }
  0x5e   : > { %v709_v43 = vld [vmem:[#allocation5 + $0xae0] sm:$0xff]  ;;  %818 = vmatpush.msra.mxu1 %v645_v42  ;;  %880 = vmatpush.msrb.mxu3 %v574_v56  ;;  %v666_v42 = vld [vmem:[#allocation5 + $0x988] sm:$0xff]  ;;  %v595_v56 = vld [vmem:[#allocation5 + $0x750] sm:$0xff] }
  0x5f   : > { %v577_v45 = vld [vmem:[#allocation5 + $0x6c0] sm:$0xff]  ;;  %838 = vmatpush.msra.mxu2 %v709_v43  ;;  %v730_v43 = vld [vmem:[#allocation5 + $0xb88] sm:$0xff]  ;;  %v631_v27 = vld [vmem:[#allocation5 + $0x870] sm:$0xff] }
  0x60   : > { %v641_v46 = vld [vmem:[#allocation5 + $0x8c0] sm:$0xff]  ;;  %799 = vmatpush.msra.mxu0 %v577_v45  ;;  %881 = vmatpush.msrb.mxu3 %v570_v0  ;;  %v671_v45 = vld [vmem:[#allocation5 + $0x9b0] sm:$0xff]  ;;  %v646_v0 = vld [vmem:[#allocation5 + $0x8e8] sm:$0xff] }
  0x61   : > { %v705_v47 = vld [vmem:[#allocation5 + $0xac0] sm:$0xff]  ;;  %819 = vmatpush.msra.mxu1 %v641_v46  ;;  %v662_v46 = vld [vmem:[#allocation5 + $0x968] sm:$0xff] }
  0x62   : > { %v573_v49 = vld [vmem:[#allocation5 + $0x6a0] sm:$0xff]  ;;  %839 = vmatpush.msra.mxu2 %v705_v47  ;;  %882 = vmatpush.msrb.mxu3 %v566_v4  ;;  %v726_v47 = vld [vmem:[#allocation5 + $0xb68] sm:$0xff] }
  0x63   : > { %v637_v50 = vld [vmem:[#allocation5 + $0x8a0] sm:$0xff]  ;;  %800 = vmatpush.msra.mxu0 %v573_v49  ;;  %v667_v49 = vld [vmem:[#allocation5 + $0x990] sm:$0xff]  ;;  %v642_v4 = vld [vmem:[#allocation5 + $0x8c8] sm:$0xff] }
  0x64   : > { %v701_v51 = vld [vmem:[#allocation5 + $0xaa0] sm:$0xff]  ;;  %820 = vmatpush.msra.mxu1 %v637_v50  ;;  %883 = vmatpush.msrb.mxu3 %v562_v12  ;;  %v658_v50 = vld [vmem:[#allocation5 + $0x948] sm:$0xff] }
  0x65   : > { %v569_v53 = vld [vmem:[#allocation5 + $0x680] sm:$0xff]  ;;  %840 = vmatpush.msra.mxu2 %v701_v51  ;;  %v722_v51 = vld [vmem:[#allocation5 + $0xb48] sm:$0xff] }
  0x66   : > { %v633_v54 = vld [vmem:[#allocation5 + $0x880] sm:$0xff]  ;;  %801 = vmatpush.msra.mxu0 %v569_v53  ;;  %948 = vmatpush.msra.mxu3 %v623_v22  ;;  %v663_v53 = vld [vmem:[#allocation5 + $0x970] sm:$0xff]  ;;  %v634_v12 = vld [vmem:[#allocation5 + $0x888] sm:$0xff] }
  0x67   : > { %v697_v55 = vld [vmem:[#allocation5 + $0xa80] sm:$0xff]  ;;  %821 = vmatpush.msra.mxu1 %v633_v54  ;;  %v654_v54 = vld [vmem:[#allocation5 + $0x928] sm:$0xff]  ;;  %v571_v22 = vld [vmem:[#allocation5 + $0x690] sm:$0xff] }
  0x68   : > { %v565_v57 = vld [vmem:[#allocation5 + $0x660] sm:$0xff]  ;;  %841 = vmatpush.msra.mxu2 %v697_v55  ;;  %949 = vmatpush.msra.mxu3 %v619_v30  ;;  %v718_v55 = vld [vmem:[#allocation5 + $0xb28] sm:$0xff]  ;;  %v563_v30 = vld [vmem:[#allocation5 + $0x650] sm:$0xff] }
  0x69   : > { %v629_v58 = vld [vmem:[#allocation5 + $0x860] sm:$0xff]  ;;  %802 = vmatpush.msra.mxu0 %v565_v57  ;;  %v659_v57 = vld [vmem:[#allocation5 + $0x950] sm:$0xff] }
  0x6a   : > { %v693_v59 = vld [vmem:[#allocation5 + $0xa60] sm:$0xff]  ;;  %822 = vmatpush.msra.mxu1 %v629_v58  ;;  %950 = vmatpush.msra.mxu3 %v615_v36  ;;  %v650_v58 = vld [vmem:[#allocation5 + $0x908] sm:$0xff]  ;;  %v624_v36 = vld [vmem:[#allocation5 + $0x838] sm:$0xff] }
  0x6b   : > { %v561_v1 = vld [vmem:[#allocation5 + $0x640] sm:$0xff]  ;;  %842 = vmatpush.msra.mxu2 %v693_v59  ;;  %v714_v59 = vld [vmem:[#allocation5 + $0xb08] sm:$0xff] }
  0x6c   : > { %v625_v2 = vld [vmem:[#allocation5 + $0x840] sm:$0xff]  ;;  %803 = vmatpush.msra.mxu0 %v561_v1  ;;  %951 = vmatpush.msra.mxu3 %v611_v40  ;;  %v710_v1 = vld [vmem:[#allocation5 + $0xae8] sm:$0xff]  ;;  %v620_v40 = vld [vmem:[#allocation5 + $0x818] sm:$0xff] }
  0x6d   : > { %v689_v3 = vld [vmem:[#allocation5 + $0xa40] sm:$0xff]  ;;  %823 = vmatpush.msra.mxu1 %v625_v2  ;;  %v587_v2 = vld [vmem:[#allocation5 + $0x710] sm:$0xff] }
  0x6e   : > { %v3579_v14 = vld [vmem:[%s3566_s10] sm:$0xff]  ;;  %843 = vmatpush.msra.mxu2 %v689_v3  ;;  %888 = vmatpush.msrb.mxu0 %v686_v5  ;;  %v651_v3 = vld [vmem:[#allocation5 + $0x910] sm:$0xff]  ;;  %v706_v5 = vld [vmem:[#allocation5 + $0xac8] sm:$0xff] }
  0x6f   : > { %v356_v15 = vld [vmem:[%s3566_s10 + $0x20] sm:$0x3]  ;;  %908 = vmatpush.msrb.mxu1 %v750_v6  ;;  %v770_v24 = vrot.slane %v3579_v14, 1  ;;  %844 = vmatmul.f32.vlgmr.msra.gmra.mxu2 %v3587_v20  ;;  %v583_v6 = vld [vmem:[#allocation5 + $0x6f0] sm:$0xff] }
  0x70   : > { %942 = vmatpush.msrb.mxu2 %v758_v7  ;;  %889 = vmatpush.msrb.mxu0 %v682_v13  ;;  %v771_v25 = vrot.slane %v356_v15, 1  ;;  %v647_v7 = vld [vmem:[#allocation5 + $0x8f0] sm:$0xff]  ;;  %v698_v13 = vld [vmem:[#allocation5 + $0xa88] sm:$0xff] }
  0x71   : > { %909 = vmatpush.msrb.mxu1 %v746_v18  ;;  %952 = vmatpush.msra.mxu3 %v607_v44  ;;  %v575_v15 = vld [vmem:[#allocation5 + $0x6b0] sm:$0xff]  ;;  %v630_v18 = vld [vmem:[#allocation5 + $0x868] sm:$0xff]  ;;  %v616_v44 = vld [vmem:[#allocation5 + $0x7f8] sm:$0xff] }
  0x72   : > { %943 = vmatpush.msrb.mxu2 %v754_v19  ;;  %890 = vmatpush.msrb.mxu0 %v678_v28  ;;  %v3598_v34 = vsel %vm769_vm0, %v770_v24, %v771_v25  ;;  %v694_v19 = vld [vmem:[#allocation5 + $0xa68] sm:$0xff]  ;;  %v751_v28 = vld [vmem:[#allocation5 + $0xc30] sm:$0xff] }
  0x73   : > { %910 = vmatpush.msrb.mxu1 %v742_v29  ;;  %804 = vmatmul.f32.vlgmr.msra.gmra.mxu0 %v3598_v34  ;;  %v626_v24 = vld [vmem:[#allocation5 + $0x848] sm:$0xff]  ;;  %v759_v29 = vld [vmem:[#allocation5 + $0xc70] sm:$0xff] }
  0x74   : > { %968 = vmatpush.msra.mxu2 %v687_v23  ;;  %891 = vmatpush.msrb.mxu0 %v674_v32  ;;  %v635_v23 = vld [vmem:[#allocation5 + $0x890] sm:$0xff]  ;;  %v690_v25 = vld [vmem:[#allocation5 + $0xa48] sm:$0xff] }
  0x75   : > { %911 = vmatpush.msrb.mxu1 %v738_v33  ;;  %953 = vmatpush.msra.mxu3 %v603_v48  ;;  %v747_v32 = vld [vmem:[#allocation5 + $0xc10] sm:$0xff]  ;;  %v612_v48 = vld [vmem:[#allocation5 + $0x7d8] sm:$0xff] }
  0x76   : > { %969 = vmatpush.msra.mxu2 %v683_v31  ;;  %824 = vmatmul.f32.vlgmr.msra.gmra.mxu1 %v3601_v35  ;;  %v627_v31 = vld [vmem:[#allocation5 + $0x850] sm:$0xff] }
  0x77   : > { %892 = vmatpush.msrb.mxu0 %v670_v38  ;;  %912 = vmatpush.msrb.mxu1 %v734_v39  ;;  %v755_v33 = vld [vmem:[#allocation5 + $0xc50] sm:$0xff]  ;;  %v752_v38 = vld [vmem:[#allocation5 + $0xc38] sm:$0xff] }
  0x78   : > { %970 = vmatpush.msra.mxu2 %v679_v37  ;;  %954 = vmatpush.msra.mxu3 %v599_v52  ;;  %v688_v37 = vld [vmem:[#allocation5 + $0xa38] sm:$0xff]  ;;  %v743_v39 = vld [vmem:[#allocation5 + $0xbf0] sm:$0xff] }
  0x79   : > { %893 = vmatpush.msrb.mxu0 %v666_v42  ;;  %913 = vmatpush.msrb.mxu1 %v730_v43  ;;  %v748_v42 = vld [vmem:[#allocation5 + $0xc18] sm:$0xff]  ;;  %v739_v43 = vld [vmem:[#allocation5 + $0xbd0] sm:$0xff] }
  0x7a   : > { %971 = vmatpush.msra.mxu2 %v675_v41  ;;  %955 = vmatpush.msra.mxu3 %v595_v56  ;;  %v684_v41 = vld [vmem:[#allocation5 + $0xa18] sm:$0xff] }
  0x7b   : > { %894 = vmatpush.msrb.mxu0 %v662_v46  ;;  %914 = vmatpush.msrb.mxu1 %v726_v47  ;;  %v744_v46 = vld [vmem:[#allocation5 + $0xbf8] sm:$0xff]  ;;  %v735_v47 = vld [vmem:[#allocation5 + $0xbb0] sm:$0xff] }
  0x7c   : > { %972 = vmatpush.msra.mxu2 %v671_v45  ;;  %956 = vmatpush.msra.mxu3 %v591_v61  ;;  %v680_v45 = vld [vmem:[#allocation5 + $0x9f8] sm:$0xff] }
  0x7d   : > { %895 = vmatpush.msrb.mxu0 %v658_v50  ;;  %915 = vmatpush.msrb.mxu1 %v722_v51  ;;  %v740_v50 = vld [vmem:[#allocation5 + $0xbd8] sm:$0xff]  ;;  %v731_v51 = vld [vmem:[#allocation5 + $0xb90] sm:$0xff] }
  0x7e   : > { %973 = vmatpush.msra.mxu2 %v667_v49  ;;  %957 = vmatpush.msra.mxu3 %v587_v2  ;;  %v676_v49 = vld [vmem:[#allocation5 + $0x9d8] sm:$0xff] }
  0x7f   : > { %896 = vmatpush.msrb.mxu0 %v654_v54  ;;  %916 = vmatpush.msrb.mxu1 %v718_v55  ;;  %v608_v52 = vld [vmem:[#allocation5 + $0x7b8] sm:$0xff]  ;;  %v727_v55 = vld [vmem:[#allocation5 + $0xb70] sm:$0xff] }
  0x80   : > { %974 = vmatpush.msra.mxu2 %v663_v53  ;;  %958 = vmatpush.msra.mxu3 %v583_v6  ;;  %v672_v53 = vld [vmem:[#allocation5 + $0x9b8] sm:$0xff] }
  0x81   : > { %897 = vmatpush.msrb.mxu0 %v650_v58  ;;  %917 = vmatpush.msrb.mxu1 %v714_v59  ;;  %v736_v54 = vld [vmem:[#allocation5 + $0xbb8] sm:$0xff]  ;;  %v723_v59 = vld [vmem:[#allocation5 + $0xb50] sm:$0xff] }
  0x82   : > { %975 = vmatpush.msra.mxu2 %v659_v57  ;;  %959 = vmatpush.msra.mxu3 %v579_v10  ;;  %v604_v56 = vld [vmem:[#allocation5 + $0x798] sm:$0xff] }
  0x83   : > { %898 = vmatpush.msrb.mxu0 %v646_v0  ;;  %918 = vmatpush.msrb.mxu1 %v710_v1  ;;  %v668_v57 = vld [vmem:[#allocation5 + $0x998] sm:$0xff]  ;;  %v719_v1 = vld [vmem:[#allocation5 + $0xb30] sm:$0xff] }
  0x84   : > { %976 = vmatpush.msra.mxu2 %v655_v63  ;;  %960 = vmatpush.msra.mxu3 %v575_v15  ;;  %v732_v58 = vld [vmem:[#allocation5 + $0xb98] sm:$0xff] }
  0x85   : > { %899 = vmatpush.msrb.mxu0 %v642_v4  ;;  %919 = vmatpush.msrb.mxu1 %v706_v5  ;;  %v600_v61 = vld [vmem:[#allocation5 + $0x778] sm:$0xff]  ;;  %v715_v5 = vld [vmem:[#allocation5 + $0xb10] sm:$0xff] }
  0x86   : > { %977 = vmatpush.msra.mxu2 %v651_v3  ;;  %961 = vmatpush.msra.mxu3 %v571_v22  ;;  %v664_v63 = vld [vmem:[#allocation5 + $0x978] sm:$0xff] }
  0x87   : > { %900 = vmatpush.msrb.mxu0 %v638_v8  ;;  %920 = vmatpush.msrb.mxu1 %v702_v9  ;;  %v728_v0 = vld [vmem:[#allocation5 + $0xb78] sm:$0xff]  ;;  %v711_v9 = vld [vmem:[#allocation5 + $0xaf0] sm:$0xff] }
  0x88   : > { %978 = vmatpush.msra.mxu2 %v647_v7  ;;  %884 = vmatmul.f32.vlgmr.msrb.gmra.mxu3 %v3598_v34  ;;  %v596_v2 = vld [vmem:[#allocation5 + $0x758] sm:$0xff] }
  0x89   : > { %901 = vmatpush.msrb.mxu0 %v634_v12  ;;  %921 = vmatpush.msrb.mxu1 %v698_v13  ;;  %v660_v3 = vld [vmem:[#allocation5 + $0x958] sm:$0xff]  ;;  %v707_v13 = vld [vmem:[#allocation5 + $0xad0] sm:$0xff] }
  0x8a   : > { %979 = vmatpush.msra.mxu2 %v643_v11  ;;  %962 = vmatpush.msra.mxu3 %v567_v26  ;;  %v724_v4 = vld [vmem:[#allocation5 + $0xb58] sm:$0xff] }
  0x8b   : > { %902 = vmatpush.msrb.mxu0 %v630_v18  ;;  %922 = vmatpush.msrb.mxu1 %v694_v19  ;;  %v592_v6 = vld [vmem:[#allocation5 + $0x738] sm:$0xff]  ;;  %v703_v19 = vld [vmem:[#allocation5 + $0xab0] sm:$0xff] }
  0x8c   : > { %980 = vmatpush.msra.mxu2 %v639_v17  ;;  %963 = vmatpush.msra.mxu3 %v563_v30  ;;  %v656_v7 = vld [vmem:[#allocation5 + $0x938] sm:$0xff] }
  0x8d   : > { %903 = vmatpush.msrb.mxu0 %v626_v24  ;;  %923 = vmatpush.msrb.mxu1 %v690_v25  ;;  %v720_v8 = vld [vmem:[#allocation5 + $0xb38] sm:$0xff]  ;;  %v699_v25 = vld [vmem:[#allocation5 + $0xa90] sm:$0xff] }
  0x8e   : > { %981 = vmatpush.msra.mxu2 %v635_v23  ;;  %924 = vmatmul.f32.vlgmr.msrb.gmra.mxu1 %v3587_v20  ;;  %v588_v10 = vld [vmem:[#allocation5 + $0x718] sm:$0xff] }
  0x8f   : > { %988 = vmatpush.msra.mxu0 %v751_v28  ;;  %1022 = vmatpush.msra.mxu1 %v759_v29  ;;  %v652_v11 = vld [vmem:[#allocation5 + $0x918] sm:$0xff]  ;;  %v695_v29 = vld [vmem:[#allocation5 + $0xa70] sm:$0xff] }
  0x90   : > { %982 = vmatpush.msra.mxu2 %v631_v27  ;;  %1028 = vmatpush.msrb.mxu3 %v624_v36  ;;  %v716_v12 = vld [vmem:[#allocation5 + $0xb18] sm:$0xff] }
  0x91   : > { %989 = vmatpush.msra.mxu0 %v747_v32  ;;  %1023 = vmatpush.msra.mxu1 %v755_v33  ;;  %v584_v15 = vld [vmem:[#allocation5 + $0x6f8] sm:$0xff]  ;;  %v691_v33 = vld [vmem:[#allocation5 + $0xa50] sm:$0xff] }
  0x92   : > { %983 = vmatpush.msra.mxu2 %v627_v31  ;;  %1029 = vmatpush.msrb.mxu3 %v620_v40  ;;  %v648_v17 = vld [vmem:[#allocation5 + $0x8f8] sm:$0xff] }
  0x93   : > { %3013 = vmatmul.msk.f32.vlgmr.msrb.gmra.mxu2 %vm785_vm1, %v3590_v21  ;;  %1048 = vmatpush.msrb.mxu1 %v688_v37  ;;  %v712_v18 = vld [vmem:[#allocation5 + $0xaf8] sm:$0xff] }
  0x94   : > { %1068 = vmatpush.msrb.mxu2 %v752_v38  ;;  %990 = vmatpush.msra.mxu0 %v743_v39  ;;  %v580_v22 = vld [vmem:[#allocation5 + $0x6d8] sm:$0xff]  ;;  %v484_v39 = vld [vmem:[#allocation5 + $0x3e0] sm:$0xff] }
  0x95   : > { %904 = vmatmul.f32.vlgmr.msrb.gmra.mxu0 %v3601_v35  ;;  %1049 = vmatpush.msrb.mxu1 %v684_v41  ;;  %v644_v23 = vld [vmem:[#allocation5 + $0x8d8] sm:$0xff] }
  0x96   : > { %1069 = vmatpush.msrb.mxu2 %v748_v42  ;;  %991 = vmatpush.msra.mxu0 %v739_v43  ;;  %v708_v24 = vld [vmem:[#allocation5 + $0xad8] sm:$0xff]  ;;  %v480_v43 = vld [vmem:[#allocation5 + $0x3c0] sm:$0xff] }
  0x97   : > { %1030 = vmatpush.msrb.mxu3 %v616_v44  ;;  %1050 = vmatpush.msrb.mxu1 %v680_v45  ;;  %v576_v26 = vld [vmem:[#allocation5 + $0x6b8] sm:$0xff]  ;;  %v420_v45 = vld [vmem:[#allocation5 + $0x1e0] sm:$0xff] }
  0x98   : > { %1070 = vmatpush.msrb.mxu2 %v744_v46  ;;  %992 = vmatpush.msra.mxu0 %v735_v47  ;;  %v640_v27 = vld [vmem:[#allocation5 + $0x8b8] sm:$0xff]  ;;  %v556_v46 = vld [vmem:[#allocation5 + $0x620] sm:$0xff] }
  0x99   : > { %1031 = vmatpush.msrb.mxu3 %v612_v48  ;;  %1051 = vmatpush.msrb.mxu1 %v676_v49  ;;  %v704_v28 = vld [vmem:[#allocation5 + $0xab8] sm:$0xff]  ;;  %v476_v47 = vld [vmem:[#allocation5 + $0x3a0] sm:$0xff] }
  0x9a   : > { %1071 = vmatpush.msrb.mxu2 %v740_v50  ;;  %993 = vmatpush.msra.mxu0 %v731_v51  ;;  %v572_v30 = vld [vmem:[#allocation5 + $0x698] sm:$0xff]  ;;  %v416_v49 = vld [vmem:[#allocation5 + $0x1c0] sm:$0xff] }
  0x9b   : > { %1032 = vmatpush.msrb.mxu3 %v608_v52  ;;  %1052 = vmatpush.msrb.mxu1 %v672_v53  ;;  %v636_v31 = vld [vmem:[#allocation5 + $0x898] sm:$0xff]  ;;  %v552_v50 = vld [vmem:[#allocation5 + $0x600] sm:$0xff]  ;;  %v421_v53 = vld [vmem:[#allocation5 + $0x1e8] sm:$0xff] }
  0x9c   : > { %1072 = vmatpush.msrb.mxu2 %v736_v54  ;;  %994 = vmatpush.msra.mxu0 %v727_v55  ;;  %v700_v32 = vld [vmem:[#allocation5 + $0xa98] sm:$0xff]  ;;  %v472_v51 = vld [vmem:[#allocation5 + $0x380] sm:$0xff] }
  0x9d   : > { %1033 = vmatpush.msrb.mxu3 %v604_v56  ;;  %1053 = vmatpush.msrb.mxu1 %v668_v57  ;;  %v568_v36 = vld [vmem:[#allocation5 + $0x678] sm:$0xff]  ;;  %v548_v52 = vld [vmem:[#allocation5 + $0x5e0] sm:$0xff]  ;;  %v417_v57 = vld [vmem:[#allocation5 + $0x1c8] sm:$0xff] }
  0x9e   : > { %1073 = vmatpush.msrb.mxu2 %v732_v58  ;;  %995 = vmatpush.msra.mxu0 %v723_v59  ;;  %v632_v37 = vld [vmem:[#allocation5 + $0x878] sm:$0xff]  ;;  %v412_v54 = vld [vmem:[#allocation5 + $0x1a0] sm:$0xff] }
  0x9f   : > { %1034 = vmatpush.msrb.mxu3 %v600_v61  ;;  %1054 = vmatpush.msrb.mxu1 %v664_v63  ;;  %v696_v38 = vld [vmem:[#allocation5 + $0xa78] sm:$0xff]  ;;  %v468_v55 = vld [vmem:[#allocation5 + $0x360] sm:$0xff]  ;;  %v413_v61 = vld [vmem:[#allocation5 + $0x1a8] sm:$0xff] }
  0xa0   : > { %1074 = vmatpush.msrb.mxu2 %v728_v0  ;;  %996 = vmatpush.msra.mxu0 %v719_v1  ;;  %v564_v40 = vld [vmem:[#allocation5 + $0x658] sm:$0xff]  ;;  %v544_v56 = vld [vmem:[#allocation5 + $0x5c0] sm:$0xff] }
  0xa1   : > { %1035 = vmatpush.msrb.mxu3 %v596_v2  ;;  %1055 = vmatpush.msrb.mxu1 %v660_v3  ;;  %v628_v41 = vld [vmem:[#allocation5 + $0x858] sm:$0xff]  ;;  %v408_v58 = vld [vmem:[#allocation5 + $0x180] sm:$0xff] }
  0xa2   : > { %1075 = vmatpush.msrb.mxu2 %v724_v4  ;;  %997 = vmatpush.msra.mxu0 %v715_v5  ;;  %v692_v42 = vld [vmem:[#allocation5 + $0xa58] sm:$0xff]  ;;  %v540_v59 = vld [vmem:[#allocation5 + $0x5a0] sm:$0xff]  ;;  %v405_v4 = vld [vmem:[#allocation5 + $0x168] sm:$0xff] }
  0xa3   : > { %1036 = vmatpush.msrb.mxu3 %v592_v6  ;;  %1056 = vmatpush.msrb.mxu1 %v656_v7  ;;  %v760_v44 = vld [vmem:[#allocation5 + $0xc78] sm:$0xff]  ;;  %v404_v63 = vld [vmem:[#allocation5 + $0x160] sm:$0xff] }
  0xa4   : > { %1076 = vmatpush.msrb.mxu2 %v720_v8  ;;  %998 = vmatpush.msra.mxu0 %v711_v9  ;;  %v756_v48 = vld [vmem:[#allocation5 + $0xc58] sm:$0xff]  ;;  %v460_v0 = vld [vmem:[#allocation5 + $0x320] sm:$0xff]  ;;  %v401_v8 = vld [vmem:[#allocation5 + $0x148] sm:$0xff] }
  0xa5   : > { %1037 = vmatpush.msrb.mxu3 %v588_v10  ;;  %1057 = vmatpush.msrb.mxu1 %v652_v11  ;;  %v400_v1 = vld [vmem:[#allocation5 + $0x140] sm:$0xff] }
  0xa6   : > { %1077 = vmatpush.msrb.mxu2 %v716_v12  ;;  %999 = vmatpush.msra.mxu0 %v707_v13  ;;  %v456_v2 = vld [vmem:[#allocation5 + $0x300] sm:$0xff]  ;;  %v397_v12 = vld [vmem:[#allocation5 + $0x128] sm:$0xff] }
  0xa7   : > { %1038 = vmatpush.msrb.mxu3 %v584_v15  ;;  %1058 = vmatpush.msrb.mxu1 %v648_v17  ;;  %v532_v3 = vld [vmem:[#allocation5 + $0x560] sm:$0xff] }
  0xa8   : > { %1078 = vmatpush.msrb.mxu2 %v712_v18  ;;  %1000 = vmatpush.msra.mxu0 %v703_v19  ;;  %v396_v5 = vld [vmem:[#allocation5 + $0x120] sm:$0xff]  ;;  %v393_v18 = vld [vmem:[#allocation5 + $0x108] sm:$0xff] }
  0xa9   : > { %964 = vmatmul.f32.vlgmr.msra.gmra.mxu3 %v3598_v34  ;;  %984 = vmatmul.f32.vlgmr.msra.gmra.mxu2 %v3601_v35  ;;  %v452_v6 = vld [vmem:[#allocation5 + $0x2e0] sm:$0xff] }
  0xaa   : > { %1039 = vmatpush.msrb.mxu3 %v580_v22  ;;  %1059 = vmatpush.msrb.mxu1 %v644_v23  ;;  %v528_v7 = vld [vmem:[#allocation5 + $0x540] sm:$0xff]  ;;  %v389_v23 = vld [vmem:[#allocation5 + $0xe8] sm:$0xff] }
  0xab   : > { %1079 = vmatpush.msrb.mxu2 %v708_v24  ;;  %1001 = vmatpush.msra.mxu0 %v699_v25  ;;  %v392_v9 = vld [vmem:[#allocation5 + $0x100] sm:$0xff] }
  0xac   : > { %1040 = vmatpush.msrb.mxu3 %v576_v26  ;;  %1060 = vmatpush.msrb.mxu1 %v640_v27  ;;  %v448_v10 = vld [vmem:[#allocation5 + $0x2c0] sm:$0xff]  ;;  %v385_v27 = vld [vmem:[#allocation5 + $0xc8] sm:$0xff] }
  0xad   : > { %1080 = vmatpush.msrb.mxu2 %v704_v28  ;;  %1002 = vmatpush.msra.mxu0 %v695_v29  ;;  %v524_v11 = vld [vmem:[#allocation5 + $0x520] sm:$0xff] }
  0xae   : > { %3014 = vmatmul.msk.f32.vlgmr.msra.gmra.mxu1 %vm785_vm1, %v3590_v21  ;;  %1041 = vmatpush.msrb.mxu3 %v572_v30  ;;  %v388_v13 = vld [vmem:[#allocation5 + $0xe0] sm:$0xff] }
  0xaf   : > { %1061 = vmatpush.msrb.mxu1 %v636_v31  ;;  %1081 = vmatpush.msrb.mxu2 %v700_v32  ;;  %v444_v15 = vld [vmem:[#allocation5 + $0x2a0] sm:$0xff]  ;;  %v381_v31 = vld [vmem:[#allocation5 + $0xa8] sm:$0xff] }
  0xb0   : > { %1003 = vmatpush.msra.mxu0 %v691_v33  ;;  %1042 = vmatpush.msrb.mxu3 %v568_v36  ;;  %v520_v17 = vld [vmem:[#allocation5 + $0x500] sm:$0xff] }
  0xb1   : > { %1062 = vmatpush.msrb.mxu1 %v632_v37  ;;  %1082 = vmatpush.msrb.mxu2 %v696_v38  ;;  %v440_v19 = vld [vmem:[#allocation5 + $0x280] sm:$0xff]  ;;  %v377_v37 = vld [vmem:[#allocation5 + $0x88] sm:$0xff] }
  0xb2   : > { %1130 = vmatpush.msrb.mxu0 %v484_v39  ;;  %1043 = vmatpush.msrb.mxu3 %v564_v40  ;;  %v516_v22 = vld [vmem:[#allocation5 + $0x4e0] sm:$0xff] }
  0xb3   : > { %1004 = vmatmul.f32.vlgmr.msra.gmra.mxu0 %v3587_v20  ;;  %1063 = vmatpush.msrb.mxu1 %v628_v41  ;;  %v380_v24 = vld [vmem:[#allocation5 + $0xa0] sm:$0xff]  ;;  %v373_v41 = vld [vmem:[#allocation5 + $0x68] sm:$0xff] }
  0xb4   : > { %1083 = vmatpush.msrb.mxu2 %v692_v42  ;;  %1131 = vmatpush.msrb.mxu0 %v480_v43  ;;  %v436_v25 = vld [vmem:[#allocation5 + $0x260] sm:$0xff]  ;;  %v549_v43 = vld [vmem:[#allocation5 + $0x5e8] sm:$0xff] }
  0xb5   : > { %1102 = vmatpush.msra.mxu1 %v760_v44  ;;  %1110 = vmatpush.msra.mxu3 %v420_v45  ;;  %v512_v26 = vld [vmem:[#allocation5 + $0x4c0] sm:$0xff]  ;;  %v369_v45 = vld [vmem:[#allocation5 + $0x48] sm:$0xff] }
  0xb6   : > { %1184 = vmatpush.msra.mxu2 %v556_v46  ;;  %1044 = vmatmul.f32.vlgmr.msrb.gmra.mxu3 %v3598_v34  ;;  %v464_v34 = vld [vmem:[#allocation5 + $0x340] sm:$0xff] }
  0xb7   : > { %1132 = vmatpush.msrb.mxu0 %v476_v47  ;;  %1103 = vmatpush.msra.mxu1 %v756_v48  ;;  %v376_v28 = vld [vmem:[#allocation5 + $0x80] sm:$0xff]  ;;  %v545_v47 = vld [vmem:[#allocation5 + $0x5c8] sm:$0xff] }
  0xb8   : > { %1111 = vmatpush.msra.mxu3 %v416_v49  ;;  %1185 = vmatpush.msra.mxu2 %v552_v50  ;;  %v432_v29 = vld [vmem:[#allocation5 + $0x240] sm:$0xff]  ;;  %v365_v49 = vld [vmem:[#allocation5 + $0x28] sm:$0xff] }
  0xb9   : > { %1064 = vmatmul.f32.vlgmr.msrb.gmra.mxu1 %v3601_v35  ;;  %1084 = vmatmul.f32.vlgmr.msrb.gmra.mxu2 %v3587_v20  ;;  %v536_v35 = vld [vmem:[#allocation5 + $0x580] sm:$0xff]  ;;  %v409_v20 = vld [vmem:[#allocation5 + $0x188] sm:$0xff] }
  0xba   : > { %1133 = vmatpush.msrb.mxu0 %v472_v51  ;;  %1150 = vmatpush.msrb.mxu1 %v548_v52  ;;  %v508_v30 = vld [vmem:[#allocation5 + $0x4a0] sm:$0xff]  ;;  %v485_v50 = vld [vmem:[#allocation5 + $0x3e8] sm:$0xff] }
  0xbb   : > { %1190 = vmatpush.msrb.mxu2 %v421_v53  ;;  %1112 = vmatpush.msra.mxu3 %v412_v54  ;;  %v372_v32 = vld [vmem:[#allocation5 + $0x60] sm:$0xff]  ;;  %v541_v51 = vld [vmem:[#allocation5 + $0x5a8] sm:$0xff] }
  0xbc   : > { %1134 = vmatpush.msrb.mxu0 %v468_v55  ;;  %1151 = vmatpush.msrb.mxu1 %v544_v56  ;;  %v428_v33 = vld [vmem:[#allocation5 + $0x220] sm:$0xff]  ;;  %v361_v52 = vld [vmem:[#allocation5 + $0x8] sm:$0xff]  ;;  %v486_v56 = vld [vmem:[#allocation5 + $0x3f0] sm:$0xff] }
  0xbd   : > { %1191 = vmatpush.msrb.mxu2 %v417_v57  ;;  %1113 = vmatpush.msra.mxu3 %v408_v58  ;;  %v504_v36 = vld [vmem:[#allocation5 + $0x480] sm:$0xff]  ;;  %v481_v53 = vld [vmem:[#allocation5 + $0x3c8] sm:$0xff] }
  0xbe   : > { %1135 = vmatpush.msrb.mxu0 %v464_v34  ;;  %1152 = vmatpush.msrb.mxu1 %v540_v59  ;;  %v368_v38 = vld [vmem:[#allocation5 + $0x40] sm:$0xff]  ;;  %v537_v54 = vld [vmem:[#allocation5 + $0x588] sm:$0xff]  ;;  %v482_v59 = vld [vmem:[#allocation5 + $0x3d0] sm:$0xff] }
  0xbf   : > { %1192 = vmatpush.msrb.mxu2 %v413_v61  ;;  %1114 = vmatpush.msra.mxu3 %v404_v63  ;;  %v424_v39 = vld [vmem:[#allocation5 + $0x200] sm:$0xff]  ;;  %v557_v55 = vld [vmem:[#allocation5 + $0x628] sm:$0xff]  ;;  %v422_v63 = vld [vmem:[#allocation5 + $0x1f0] sm:$0xff] }
  0xc0   : > { %1136 = vmatpush.msrb.mxu0 %v460_v0  ;;  %1153 = vmatpush.msrb.mxu1 %v536_v35  ;;  %v500_v40 = vld [vmem:[#allocation5 + $0x460] sm:$0xff]  ;;  %v477_v57 = vld [vmem:[#allocation5 + $0x3a8] sm:$0xff]  ;;  %v478_v35 = vld [vmem:[#allocation5 + $0x3b0] sm:$0xff] }
  0xc1   : > { %1193 = vmatpush.msrb.mxu2 %v409_v20  ;;  %1115 = vmatpush.msra.mxu3 %v400_v1  ;;  %v364_v42 = vld [vmem:[#allocation5 + $0x20] sm:$0xff]  ;;  %v533_v58 = vld [vmem:[#allocation5 + $0x568] sm:$0xff] }
  0xc2   : > { %3015 = vmatmul.msk.f32.vlgmr.msra.gmra.mxu1 %vm785_vm1, %v3590_v21  ;;  %1137 = vmatpush.msrb.mxu0 %v456_v2  ;;  %v384_v21 = vld [vmem:[#allocation5 + $0xc0] sm:$0xff]  ;;  %v553_v34 = vld [vmem:[#allocation5 + $0x608] sm:$0xff]  ;;  %v474_v2 = vld [vmem:[#allocation5 + $0x390] sm:$0xff] }
  0xc3   : > { %1154 = vmatpush.msrb.mxu1 %v532_v3  ;;  %1194 = vmatpush.msrb.mxu2 %v405_v4  ;;  %v496_v44 = vld [vmem:[#allocation5 + $0x440] sm:$0xff]  ;;  %v473_v61 = vld [vmem:[#allocation5 + $0x388] sm:$0xff]  ;;  %v414_v4 = vld [vmem:[#allocation5 + $0x1b0] sm:$0xff] }
  0xc4   : > { %1116 = vmatpush.msra.mxu3 %v396_v5  ;;  %1138 = vmatpush.msrb.mxu0 %v452_v6  ;;  %v360_v46 = vld [vmem:[#allocation5] sm:$0xff]  ;;  %v529_v0 = vld [vmem:[#allocation5 + $0x548] sm:$0xff]  ;;  %v470_v6 = vld [vmem:[#allocation5 + $0x370] sm:$0xff] }
  0xc5   : > { %1155 = vmatpush.msrb.mxu1 %v528_v7  ;;  %1195 = vmatpush.msrb.mxu2 %v401_v8  ;;  %v492_v48 = vld [vmem:[#allocation5 + $0x420] sm:$0xff]  ;;  %v469_v20 = vld [vmem:[#allocation5 + $0x368] sm:$0xff] }
  0xc6   : > { %1117 = vmatpush.msra.mxu3 %v392_v9  ;;  %1139 = vmatpush.msrb.mxu0 %v448_v10  ;;  %v525_v1 = vld [vmem:[#allocation5 + $0x528] sm:$0xff]  ;;  %v466_v9 = vld [vmem:[#allocation5 + $0x350] sm:$0xff] }
  0xc7   : > { %1156 = vmatpush.msrb.mxu1 %v524_v11  ;;  %1196 = vmatpush.msrb.mxu2 %v397_v12  ;;  %v465_v3 = vld [vmem:[#allocation5 + $0x348] sm:$0xff]  ;;  %v406_v11 = vld [vmem:[#allocation5 + $0x170] sm:$0xff] }
  0xc8   : > { %1118 = vmatpush.msra.mxu3 %v388_v13  ;;  %1140 = vmatpush.msrb.mxu0 %v444_v15  ;;  %v521_v5 = vld [vmem:[#allocation5 + $0x508] sm:$0xff]  ;;  %v402_v15 = vld [vmem:[#allocation5 + $0x150] sm:$0xff] }
  0xc9   : > { %1157 = vmatpush.msrb.mxu1 %v520_v17  ;;  %1197 = vmatpush.msrb.mxu2 %v393_v18  ;;  %v461_v7 = vld [vmem:[#allocation5 + $0x328] sm:$0xff]  ;;  %v458_v18 = vld [vmem:[#allocation5 + $0x310] sm:$0xff] }
  0xca   : > { %1119 = vmatpush.msra.mxu3 %v384_v21  ;;  %1141 = vmatpush.msrb.mxu0 %v440_v19  ;;  %v517_v8 = vld [vmem:[#allocation5 + $0x4e8] sm:$0xff]  ;;  %v398_v19 = vld [vmem:[#allocation5 + $0x130] sm:$0xff] }
  0xcb   : > { %1158 = vmatpush.msrb.mxu1 %v516_v22  ;;  %1198 = vmatpush.msrb.mxu2 %v389_v23  ;;  %v457_v10 = vld [vmem:[#allocation5 + $0x308] sm:$0xff]  ;;  %v454_v23 = vld [vmem:[#allocation5 + $0x2f0] sm:$0xff] }
  0xcc   : > { %1120 = vmatpush.msra.mxu3 %v380_v24  ;;  %1142 = vmatpush.msrb.mxu0 %v436_v25  ;;  %v513_v12 = vld [vmem:[#allocation5 + $0x4c8] sm:$0xff]  ;;  %v394_v25 = vld [vmem:[#allocation5 + $0x110] sm:$0xff] }
  0xcd   : > { %1159 = vmatpush.msrb.mxu1 %v512_v26  ;;  %1199 = vmatpush.msrb.mxu2 %v385_v27  ;;  %v453_v13 = vld [vmem:[#allocation5 + $0x2e8] sm:$0xff]  ;;  %v450_v27 = vld [vmem:[#allocation5 + $0x2d0] sm:$0xff] }
  0xce   : > { %1121 = vmatpush.msra.mxu3 %v376_v28  ;;  %1143 = vmatpush.msrb.mxu0 %v432_v29  ;;  %v509_v17 = vld [vmem:[#allocation5 + $0x4a8] sm:$0xff]  ;;  %v390_v29 = vld [vmem:[#allocation5 + $0xf0] sm:$0xff] }
  0xcf   : > { %1160 = vmatpush.msrb.mxu1 %v508_v30  ;;  %1200 = vmatpush.msrb.mxu2 %v381_v31  ;;  %v449_v21 = vld [vmem:[#allocation5 + $0x2c8] sm:$0xff]  ;;  %v446_v31 = vld [vmem:[#allocation5 + $0x2b0] sm:$0xff] }
  0xd0   : > { %1122 = vmatpush.msra.mxu3 %v372_v32  ;;  %1144 = vmatpush.msrb.mxu0 %v428_v33  ;;  %v505_v22 = vld [vmem:[#allocation5 + $0x488] sm:$0xff]  ;;  %v386_v33 = vld [vmem:[#allocation5 + $0xd0] sm:$0xff] }
  0xd1   : > { %1161 = vmatpush.msrb.mxu1 %v504_v36  ;;  %1201 = vmatpush.msrb.mxu2 %v377_v37  ;;  %v445_v24 = vld [vmem:[#allocation5 + $0x2a8] sm:$0xff]  ;;  %v442_v37 = vld [vmem:[#allocation5 + $0x290] sm:$0xff] }
  0xd2   : > { %1123 = vmatpush.msra.mxu3 %v368_v38  ;;  %3016 = vmatmul.msk.f32.vlgmr.msra.gmra.mxu2 %vm785_vm1, %v3573_v62  ;;  %v488_v62 = vld [vmem:[#allocation5 + $0x400] sm:$0xff]  ;;  %v501_v26 = vld [vmem:[#allocation5 + $0x468] sm:$0xff] }
  0xd3   : > { %1145 = vmatpush.msrb.mxu0 %v424_v39  ;;  %1162 = vmatpush.msrb.mxu1 %v500_v40  ;;  %v441_v28 = vld [vmem:[#allocation5 + $0x288] sm:$0xff]  ;;  %v382_v39 = vld [vmem:[#allocation5 + $0xb0] sm:$0xff] }
  0xd4   : > { %1202 = vmatpush.msrb.mxu2 %v373_v41  ;;  %1124 = vmatpush.msra.mxu3 %v364_v42  ;;  %v497_v30 = vld [vmem:[#allocation5 + $0x448] sm:$0xff]  ;;  %v438_v41 = vld [vmem:[#allocation5 + $0x270] sm:$0xff] }
  0xd5   : > { %1230 = vmatpush.msra.mxu0 %v549_v43  ;;  %1163 = vmatpush.msrb.mxu1 %v496_v44  ;;  %v437_v32 = vld [vmem:[#allocation5 + $0x268] sm:$0xff]  ;;  %v378_v43 = vld [vmem:[#allocation5 + $0x90] sm:$0xff] }
  0xd6   : > { %1203 = vmatpush.msrb.mxu2 %v369_v45  ;;  %1125 = vmatpush.msra.mxu3 %v360_v46  ;;  %v493_v36 = vld [vmem:[#allocation5 + $0x428] sm:$0xff]  ;;  %v558_v44 = vld [vmem:[#allocation5 + $0x630] sm:$0xff] }
  0xd7   : > { %1231 = vmatpush.msra.mxu0 %v545_v47  ;;  %1126 = vmatmul.f32.vlgmr.msra.gmra.mxu3 %v3579_v14  ;;  %v433_v38 = vld [vmem:[#allocation5 + $0x248] sm:$0xff]  ;;  %v434_v45 = vld [vmem:[#allocation5 + $0x250] sm:$0xff] }
  0xd8   : > { %1164 = vmatpush.msrb.mxu1 %v492_v48  ;;  %1204 = vmatpush.msrb.mxu2 %v365_v49  ;;  %v489_v40 = vld [vmem:[#allocation5 + $0x408] sm:$0xff]  ;;  %v374_v47 = vld [vmem:[#allocation5 + $0x70] sm:$0xff]  ;;  %v3627_v49 = vld [vmem:[%s3566_s10 + $0x18] sm:$0xff] }
  0xd9   : > { %1210 = vmatpush.msrb.mxu3 %v485_v50  ;;  %1232 = vmatpush.msra.mxu0 %v541_v51  ;;  %v429_v42 = vld [vmem:[#allocation5 + $0x228] sm:$0xff]  ;;  %v554_v48 = vld [vmem:[#allocation5 + $0x610] sm:$0xff] }
  0xda   : > { %1165 = vmatpush.msrb.mxu1 %v488_v62  ;;  %1205 = vmatpush.msrb.mxu2 %v361_v52  ;;  %v425_v46 = vld [vmem:[#allocation5 + $0x208] sm:$0xff]  ;;  %v430_v50 = vld [vmem:[#allocation5 + $0x230] sm:$0xff]  ;;  %v423_v62 = vld [vmem:[#allocation5 + $0x1f8] sm:$0xff] }
  0xdb   : > { %1211 = vmatpush.msrb.mxu3 %v481_v53  ;;  %1206 = vmatmul.f32.vlgmr.msrb.gmra.mxu2 %v3579_v14  ;;  %v418_v14 = vld [vmem:[#allocation5 + $0x1d0] sm:$0xff]  ;;  %v3632_v52 = vld [vmem:[%s3566_s10 + $0x8] sm:$0xff] }
  0xdc   : > { %1233 = vmatpush.msra.mxu0 %v537_v54  ;;  %1264 = vmatpush.msra.mxu1 %v557_v55  ;;  %v550_v51 = vld [vmem:[#allocation5 + $0x5f0] sm:$0xff] }
  0xdd   : > { %1290 = vmatpush.msra.mxu2 %v486_v56  ;;  %1212 = vmatpush.msrb.mxu3 %v477_v57  ;;  %v370_v53 = vld [vmem:[#allocation5 + $0x50] sm:$0xff]  ;;  %v419_v57 = vld [vmem:[#allocation5 + $0x1d8] sm:$0xff] }
  0xde   : > { %1234 = vmatpush.msra.mxu0 %v533_v58  ;;  %1265 = vmatpush.msra.mxu1 %v553_v34  ;;  %v426_v54 = vld [vmem:[#allocation5 + $0x210] sm:$0xff]  ;;  %v551_v34 = vld [vmem:[#allocation5 + $0x5f8] sm:$0xff] }
  0xdf   : > { %1291 = vmatpush.msra.mxu2 %v482_v59  ;;  %1166 = vmatmul.f32.vlgmr.msrb.gmra.mxu1 %v3569_v60  ;;  %v410_v60 = vld [vmem:[#allocation5 + $0x190] sm:$0xff] }
  0xe0   : > { %1213 = vmatpush.msrb.mxu3 %v473_v61  ;;  %1270 = vmatpush.msrb.mxu1 %v422_v63  ;;  %v3636_v55 = vld [vmem:[%s3566_s10 + $0x10] sm:$0xff]  ;;  %v415_v61 = vld [vmem:[#allocation5 + $0x1b8] sm:$0xff] }
  0xe1   : > { %1235 = vmatpush.msra.mxu0 %v529_v0  ;;  %1292 = vmatpush.msra.mxu2 %v478_v35  ;;  %v546_v56 = vld [vmem:[#allocation5 + $0x5d0] sm:$0xff]  ;;  %v547_v0 = vld [vmem:[#allocation5 + $0x5d8] sm:$0xff] }
  0xe2   : > { %1146 = vmatmul.f32.vlgmr.msrb.gmra.mxu0 %v3583_v16  ;;  %1214 = vmatpush.msrb.mxu3 %v469_v20  ;;  %v462_v16 = vld [vmem:[#allocation5 + $0x330] sm:$0xff]  ;;  %v411_v20 = vld [vmem:[#allocation5 + $0x198] sm:$0xff] }
  0xe3   : > { %1271 = vmatpush.msrb.mxu1 %v418_v14  ;;  %1236 = vmatpush.msra.mxu0 %v525_v1  ;;  %v366_v58 = vld [vmem:[#allocation5 + $0x30] sm:$0xff]  ;;  %v487_v14 = vld [vmem:[#allocation5 + $0x3f8] sm:$0xff] }
  0xe4   : > { %1293 = vmatpush.msra.mxu2 %v474_v2  ;;  %1215 = vmatpush.msrb.mxu3 %v465_v3  ;;  %v542_v59 = vld [vmem:[#allocation5 + $0x5b0] sm:$0xff]  ;;  %v543_v1 = vld [vmem:[#allocation5 + $0x5b8] sm:$0xff]  ;;  %v3641_v2 = vld [vmem:[%s3566_s10] sm:$0xff] }
  0xe5   : > { %1272 = vmatpush.msrb.mxu1 %v414_v4  ;;  %1237 = vmatpush.msra.mxu0 %v521_v5  ;;  %v362_v63 = vld [vmem:[#allocation5 + $0x10] sm:$0xff]  ;;  %v407_v4 = vld [vmem:[#allocation5 + $0x178] sm:$0xff] }
  0xe6   : > { %1294 = vmatpush.msra.mxu2 %v470_v6  ;;  %1216 = vmatpush.msrb.mxu3 %v461_v7  ;;  %v538_v35 = vld [vmem:[#allocation5 + $0x590] sm:$0xff]  ;;  %v483_v5 = vld [vmem:[#allocation5 + $0x3d8] sm:$0xff] }
  0xe7   : > { %1273 = vmatpush.msrb.mxu1 %v410_v60  ;;  %1238 = vmatpush.msra.mxu0 %v517_v8  ;;  %v534_v3 = vld [vmem:[#allocation5 + $0x570] sm:$0xff]  ;;  %v539_v6 = vld [vmem:[#allocation5 + $0x598] sm:$0xff] }
  0xe8   : > { %1295 = vmatpush.msra.mxu2 %v466_v9  ;;  %1217 = vmatpush.msrb.mxu3 %v457_v10  ;;  %v530_v7 = vld [vmem:[#allocation5 + $0x550] sm:$0xff]  ;;  %v403_v60 = vld [vmem:[#allocation5 + $0x158] sm:$0xff] }
  0xe9   : > { %1274 = vmatpush.msrb.mxu1 %v406_v11  ;;  %1239 = vmatpush.msra.mxu0 %v513_v12  ;;  %v479_v8 = vld [vmem:[#allocation5 + $0x3b8] sm:$0xff]  ;;  %v526_v10 = vld [vmem:[#allocation5 + $0x530] sm:$0xff] }
  0xea   : > { %1296 = vmatpush.msra.mxu2 %v462_v16  ;;  %1218 = vmatpush.msrb.mxu3 %v453_v13  ;;  %v535_v9 = vld [vmem:[#allocation5 + $0x578] sm:$0xff]  ;;  %v3644_v13 = vpop.f32.mrf.mxu3 }
  0xeb   : > { %1275 = vmatpush.msrb.mxu1 %v402_v15  ;;  %1240 = vmatpush.msra.mxu0 %v509_v17  ;;  %v399_v11 = vld [vmem:[#allocation5 + $0x138] sm:$0xff]  ;;  %v522_v15 = vld [vmem:[#allocation5 + $0x510] sm:$0xff] }
  0xec   : > { %1297 = vmatpush.msra.mxu2 %v458_v18  ;;  %1219 = vmatpush.msrb.mxu3 %v449_v21  ;;  %v475_v12 = vld [vmem:[#allocation5 + $0x398] sm:$0xff] }
  0xed   : > { %1276 = vmatpush.msrb.mxu1 %v398_v19  ;;  %1241 = vmatpush.msra.mxu0 %v505_v22  ;;  %v531_v16 = vld [vmem:[#allocation5 + $0x558] sm:$0xff] }
  0xee   : > { %1298 = vmatpush.msra.mxu2 %v454_v23  ;;  %1220 = vmatpush.msrb.mxu3 %v445_v24  ;;  %v395_v17 = vld [vmem:[#allocation5 + $0x118] sm:$0xff]  ;;  %v518_v23 = vld [vmem:[#allocation5 + $0x4f0] sm:$0xff] }
  0xef   : > { %1277 = vmatpush.msrb.mxu1 %v394_v25  ;;  %1242 = vmatpush.msra.mxu0 %v501_v26  ;;  %v471_v18 = vld [vmem:[#allocation5 + $0x378] sm:$0xff] }
  0xf0   : > { %1299 = vmatpush.msra.mxu2 %v450_v27  ;;  %1221 = vmatpush.msrb.mxu3 %v441_v28  ;;  %v527_v21 = vld [vmem:[#allocation5 + $0x538] sm:$0xff]  ;;  %v3646_v19 = vpop.f32.mrf.mxu0  ;;  %v514_v28 = vld [vmem:[#allocation5 + $0x4d0] sm:$0xff] }
  0xf1   : > { %1278 = vmatpush.msrb.mxu1 %v390_v29  ;;  %1243 = vmatpush.msra.mxu0 %v497_v30  ;;  %v391_v24 = vld [vmem:[#allocation5 + $0xf8] sm:$0xff] }
  0xf2   : > { %1300 = vmatpush.msra.mxu2 %v446_v31  ;;  %1222 = vmatpush.msrb.mxu3 %v437_v32  ;;  %v467_v25 = vld [vmem:[#allocation5 + $0x358] sm:$0xff]  ;;  %v3650_v27 = vpop.f32.mrf.mxu2  ;;  %v510_v32 = vld [vmem:[#allocation5 + $0x4b0] sm:$0xff] }
  0xf3   : > { %1279 = vmatpush.msrb.mxu1 %v386_v33  ;;  %1244 = vmatpush.msra.mxu0 %v493_v36  ;;  %v3648_v22 = vpop.f32.mrf.mxu1  ;;  %v523_v26 = vld [vmem:[#allocation5 + $0x518] sm:$0xff] }
  0xf4   : > { %1301 = vmatpush.msra.mxu2 %v442_v37  ;;  %1223 = vmatpush.msrb.mxu3 %v433_v38  ;;  %v387_v29 = vld [vmem:[#allocation5 + $0xd8] sm:$0xff]  ;;  %v506_v38 = vld [vmem:[#allocation5 + $0x490] sm:$0xff] }
  0xf5   : > { %1280 = vmatpush.msrb.mxu1 %v382_v39  ;;  %1245 = vmatpush.msra.mxu0 %v489_v40  ;;  %v463_v30 = vld [vmem:[#allocation5 + $0x338] sm:$0xff] }
  0xf6   : > { %1302 = vmatpush.msra.mxu2 %v438_v41  ;;  %1224 = vmatpush.msrb.mxu3 %v429_v42  ;;  %v519_v31 = vld [vmem:[#allocation5 + $0x4f8] sm:$0xff] }
  0xf7   : > { %1281 = vmatpush.msrb.mxu1 %v378_v43  ;;  %1344 = vmatpush.msrb.mxu0 %v558_v44  ;;  %v383_v33 = vld [vmem:[#allocation5 + $0xb8] sm:$0xff]  ;;  %v502_v43 = vld [vmem:[#allocation5 + $0x470] sm:$0xff] }
  0xf8   : > { %3017 = vmatmul.msk.f32.vlgmr.msra.gmra.mxu1 %vm785_vm1, %v3627_v49  ;;  %1303 = vmatpush.msra.mxu2 %v434_v45  ;;  %v459_v36 = vld [vmem:[#allocation5 + $0x318] sm:$0xff] }
  0xf9   : > { %1225 = vmatpush.msrb.mxu3 %v425_v46  ;;  %1282 = vmatpush.msrb.mxu1 %v374_v47  ;;  %v515_v37 = vld [vmem:[#allocation5 + $0x4d8] sm:$0xff] }
  0xfa   : > { %1345 = vmatpush.msrb.mxu0 %v554_v48  ;;  %1226 = vmatmul.f32.vlgmr.msrb.gmra.mxu3 %v3632_v52  ;;  %v379_v39 = vld [vmem:[#allocation5 + $0x98] sm:$0xff] }
  0xfb   : > { %1246 = vmatmul.f32.vlgmr.msra.gmra.mxu0 %v3636_v55  ;;  %1304 = vmatpush.msra.mxu2 %v430_v50  ;;  %v455_v41 = vld [vmem:[#allocation5 + $0x2f8] sm:$0xff] }
  0xfc   : > { %1310 = vmatpush.msra.mxu3 %v550_v51  ;;  %1350 = vmatpush.msra.mxu0 %v423_v62  ;;  %v511_v42 = vld [vmem:[#allocation5 + $0x4b8] sm:$0xff]  ;;  %v498_v51 = vld [vmem:[#allocation5 + $0x450] sm:$0xff] }
  0xfd   : > { %1283 = vmatpush.msrb.mxu1 %v370_v53  ;;  %1305 = vmatpush.msra.mxu2 %v426_v54  ;;  %v375_v46 = vld [vmem:[#allocation5 + $0x78] sm:$0xff] }
  0xfe   : > { %1311 = vmatpush.msra.mxu3 %v546_v56  ;;  %1351 = vmatpush.msra.mxu0 %v419_v57  ;;  %v451_v47 = vld [vmem:[#allocation5 + $0x2d8] sm:$0xff] }
  0xff   : > { %1284 = vmatpush.msrb.mxu1 %v366_v58  ;;  %1306 = vmatmul.f32.vlgmr.msra.gmra.mxu2 %v3632_v52  ;;  %v507_v50 = vld [vmem:[#allocation5 + $0x498] sm:$0xff]  ;;  %v494_v58 = vld [vmem:[#allocation5 + $0x430] sm:$0xff] }
 0x100   : > { %1390 = vmatpush.msrb.mxu2 %v551_v34  ;;  %1312 = vmatpush.msra.mxu3 %v542_v59  ;;  %v371_v53 = vld [vmem:[#allocation5 + $0x58] sm:$0xff] }
 0x101   : > { %1352 = vmatpush.msra.mxu0 %v415_v61  ;;  %1285 = vmatpush.msrb.mxu1 %v362_v63  ;;  %v447_v54 = vld [vmem:[#allocation5 + $0x2b8] sm:$0xff] }
 0x102   : > { %1391 = vmatpush.msrb.mxu2 %v547_v0  ;;  %1286 = vmatmul.f32.vlgmr.msrb.gmra.mxu1 %v3641_v2  ;;  %v503_v57 = vld [vmem:[#allocation5 + $0x478] sm:$0xff]  ;;  %v490_v0 = vld [vmem:[#allocation5 + $0x410] sm:$0xff] }
 0x103   : > { %1313 = vmatpush.msra.mxu3 %v538_v35  ;;  %1353 = vmatpush.msra.mxu0 %v411_v20  ;;  %v367_v34 = vld [vmem:[#allocation5 + $0x38] sm:$0xff] }
 0x104   : > { %1370 = vmatpush.msra.mxu1 %v487_v14  ;;  %1392 = vmatpush.msrb.mxu2 %v543_v1  ;;  %v443_v59 = vld [vmem:[#allocation5 + $0x298] sm:$0xff]  ;;  %v1491_v1 = vld [vmem:[#allocation5 + $0xe60] sm:$0xff] }
 0x105   : > { %1314 = vmatpush.msra.mxu3 %v534_v3  ;;  %1354 = vmatpush.msra.mxu0 %v407_v4  ;;  %v499_v63 = vld [vmem:[#allocation5 + $0x458] sm:$0xff]  ;;  %v1555_v4 = vld [vmem:[#allocation5 + $0x1060] sm:$0xff] }
 0x106   : > { %1371 = vmatpush.msra.mxu1 %v483_v5  ;;  %1393 = vmatpush.msrb.mxu2 %v539_v6  ;;  %v363_v35 = vld [vmem:[#allocation5 + $0x18] sm:$0xff]  ;;  %v1487_v6 = vld [vmem:[#allocation5 + $0xe40] sm:$0xff] }
 0x107   : > { %1315 = vmatpush.msra.mxu3 %v530_v7  ;;  %1355 = vmatpush.msra.mxu0 %v403_v60  ;;  %v439_v20 = vld [vmem:[#allocation5 + $0x278] sm:$0xff]  ;;  %v1483_v60 = vld [vmem:[#allocation5 + $0xe20] sm:$0xff] }
 0x108   : > { %1372 = vmatpush.msra.mxu1 %v479_v8  ;;  %1394 = vmatpush.msrb.mxu2 %v535_v9  ;;  %v495_v14 = vld [vmem:[#allocation5 + $0x438] sm:$0xff] }
 0x109   : > { %1316 = vmatpush.msra.mxu3 %v526_v10  ;;  %1356 = vmatpush.msra.mxu0 %v399_v11  ;;  %v435_v3 = vld [vmem:[#allocation5 + $0x258] sm:$0xff]  ;;  %v1551_v10 = vld [vmem:[#allocation5 + $0x1040] sm:$0xff] }
 0x10a   : > { %1373 = vmatpush.msra.mxu1 %v475_v12  ;;  %1395 = vmatpush.msrb.mxu2 %v531_v16  ;;  %v491_v5 = vld [vmem:[#allocation5 + $0x418] sm:$0xff]  ;;  %v1479_v11 = vld [vmem:[#allocation5 + $0xe00] sm:$0xff] }
 0x10b   : > { %1317 = vmatpush.msra.mxu3 %v522_v15  ;;  %1357 = vmatpush.msra.mxu0 %v395_v17  ;;  %v885_v40 = vpop.f32.mrf.mxu3  ;;  %v925_v45 = vpop.f32.mrf.mxu1  ;;  %v431_v7 = vld [vmem:[#allocation5 + $0x238] sm:$0xff]  ;;  %v1619_v16 = vld [vmem:[#allocation5 + $0x1260] sm:$0xff] }
 0x10c   : > { %1374 = vmatpush.msra.mxu1 %v471_v18  ;;  %1396 = vmatpush.msrb.mxu2 %v527_v21  ;;  %v559_v8 = vld [vmem:[#allocation5 + $0x638] sm:$0xff]  ;;  %v1475_v15 = vld [vmem:[#allocation5 + $0xde0] sm:$0xff] }
 0x10d   : > { %1318 = vmatpush.msra.mxu3 %v518_v23  ;;  %1358 = vmatpush.msra.mxu0 %v391_v24  ;;  %v427_v9 = vld [vmem:[#allocation5 + $0x218] sm:$0xff]  ;;  %v1627_v17 = vld [vmem:[#allocation5 + $0x12a0] sm:$0xff] }
 0x10e   : > { %1375 = vmatpush.msra.mxu1 %v467_v25  ;;  %1397 = vmatpush.msrb.mxu2 %v523_v26  ;;  %v555_v12 = vld [vmem:[#allocation5 + $0x618] sm:$0xff]  ;;  %v1547_v18 = vld [vmem:[#allocation5 + $0x1020] sm:$0xff]  ;;  %v1492_v26 = vld [vmem:[#allocation5 + $0xe68] sm:$0xff] }
 0x10f   : > { %1319 = vmatpush.msra.mxu3 %v514_v28  ;;  %1359 = vmatpush.msra.mxu0 %v387_v29  ;;  %v1615_v21 = vld [vmem:[#allocation5 + $0x1240] sm:$0xff] }
 0x110   : > { %1376 = vmatpush.msra.mxu1 %v463_v30  ;;  %1398 = vmatpush.msrb.mxu2 %v519_v31  ;;  %v1471_v23 = vld [vmem:[#allocation5 + $0xdc0] sm:$0xff]  ;;  %v1488_v31 = vld [vmem:[#allocation5 + $0xe48] sm:$0xff] }
 0x111   : > { %1320 = vmatpush.msra.mxu3 %v510_v32  ;;  %1360 = vmatpush.msra.mxu0 %v383_v33  ;;  %v1623_v24 = vld [vmem:[#allocation5 + $0x1280] sm:$0xff] }
 0x112   : > { %1377 = vmatpush.msra.mxu1 %v459_v36  ;;  %1399 = vmatpush.msrb.mxu2 %v515_v37  ;;  %v905_v44 = vpop.f32.mrf.mxu0  ;;  %v1543_v25 = vld [vmem:[#allocation5 + $0x1000] sm:$0xff]  ;;  %v1484_v37 = vld [vmem:[#allocation5 + $0xe28] sm:$0xff] }
 0x113   : > { %1321 = vmatpush.msra.mxu3 %v506_v38  ;;  %1361 = vmatpush.msra.mxu0 %v379_v39  ;;  %v906_v48 = vadd.f32 %v905_v44, %v885_v40  ;;  %v1467_v28 = vld [vmem:[#allocation5 + $0xda0] sm:$0xff]  ;;  %v1480_v44 = vld [vmem:[#allocation5 + $0xe08] sm:$0xff] }
 0x114   : > { %1378 = vmatpush.msra.mxu1 %v455_v41  ;;  %3018 = vmatmul.msk.f32.vlgmr.msrb.gmra.mxu0 %vm785_vm1, %v3627_v49  ;;  %v1611_v29 = vld [vmem:[#allocation5 + $0x1220] sm:$0xff] }
 0x115   : > { %1400 = vmatpush.msrb.mxu2 %v511_v42  ;;  %1322 = vmatpush.msra.mxu3 %v502_v43  ;;  %v926_v56 = vadd.f32 %v925_v45, %v906_v48  ;;  %v1539_v30 = vld [vmem:[#allocation5 + $0xfe0] sm:$0xff] }
 0x116   : > { %v945_v62 = vpop.f32.mrf.mxu2  ;;  %1362 = vmatpush.msra.mxu0 %v375_v46  ;;  %1379 = vmatpush.msra.mxu1 %v451_v47  ;;  %v1463_v32 = vld [vmem:[#allocation5 + $0xd80] sm:$0xff] }
 0x117   : > { %1401 = vmatpush.msrb.mxu2 %v507_v50  ;;  %1323 = vmatpush.msra.mxu3 %v498_v51  ;;  %v3654_v61 = vadd.f32 %v945_v62, %v926_v56  ;;  %v1607_v33 = vld [vmem:[#allocation5 + $0x1200] sm:$0xff]  ;;  %v1476_v50 = vld [vmem:[#allocation5 + $0xde8] sm:$0xff] }
 0x118   : > { %1363 = vmatpush.msra.mxu0 %v371_v53  ;;  %1380 = vmatpush.msra.mxu1 %v447_v54  ;;  %v1535_v36 = vld [vmem:[#allocation5 + $0xfc0] sm:$0xff]  ;;  %v1472_v56 = vld [vmem:[#allocation5 + $0xdc8] sm:$0xff] }
 0x119   : > { %1402 = vmatpush.msrb.mxu2 %v503_v57  ;;  %1324 = vmatpush.msra.mxu3 %v494_v58  ;;  %v1459_v38 = vld [vmem:[#allocation5 + $0xd60] sm:$0xff] }
 0x11a   : > { %1364 = vmatpush.msra.mxu0 %v367_v34  ;;  %1381 = vmatpush.msra.mxu1 %v443_v59  ;;  %v1603_v40 = vld [vmem:[#allocation5 + $0x11e0] sm:$0xff] }
 0x11b   : > { %1403 = vmatpush.msrb.mxu2 %v499_v63  ;;  %1325 = vmatpush.msra.mxu3 %v490_v0  ;;  %v1531_v41 = vld [vmem:[#allocation5 + $0xfa0] sm:$0xff]  ;;  %v1468_v63 = vld [vmem:[#allocation5 + $0xda8] sm:$0xff] }
 0x11c   : > { %1365 = vmatpush.msra.mxu0 %v363_v35  ;;  %1382 = vmatpush.msra.mxu1 %v439_v20  ;;  %v1455_v45 = vld [vmem:[#allocation5 + $0xd40] sm:$0xff] }
 0x11d   : > { %1326 = vmatmul.f32.vlgmr.msra.gmra.mxu3 %v3636_v55  ;;  %1366 = vmatmul.f32.vlgmr.msra.gmra.mxu0 %v3641_v2  ;;  %v1599_v47 = vld [vmem:[#allocation5 + $0x11c0] sm:$0xff] }
 0x11e   : > { %1404 = vmatpush.msrb.mxu2 %v495_v14  ;;  %1649 = vmatpush.msrb.mxu3 %v1491_v1  ;;  %v1527_v48 = vld [vmem:[#allocation5 + $0xf80] sm:$0xff]  ;;  %v1464_v1 = vld [vmem:[#allocation5 + $0xd88] sm:$0xff] }
 0x11f   : > { %1383 = vmatpush.msra.mxu1 %v435_v3  ;;  %1669 = vmatpush.msrb.mxu0 %v1555_v4  ;;  %v1451_v51 = vld [vmem:[#allocation5 + $0xd20] sm:$0xff] }
 0x120   : > { %1405 = vmatpush.msrb.mxu2 %v491_v5  ;;  %1650 = vmatpush.msrb.mxu3 %v1487_v6  ;;  %v1595_v62 = vld [vmem:[#allocation5 + $0x11a0] sm:$0xff]  ;;  %v1632_v6 = vrot.slane %v3641_v2, 2 }
 0x121   : > { %1384 = vmatpush.msra.mxu1 %v431_v7  ;;  %1406 = vmatmul.f32.vlgmr.msrb.gmra.mxu2 %v3636_v55  ;;  %v1523_v53 = vld [vmem:[#allocation5 + $0xf60] sm:$0xff] }
 0x122   : > { %1651 = vmatpush.msrb.mxu3 %v1483_v60  ;;  %1424 = vmatpush.msra.mxu2 %v559_v8  ;;  %v1447_v57 = vld [vmem:[#allocation5 + $0xd00] sm:$0xff] }
 0x123   : > { %1385 = vmatpush.msra.mxu1 %v427_v9  ;;  %1670 = vmatpush.msrb.mxu0 %v1551_v10  ;;  %v1591_v34 = vld [vmem:[#allocation5 + $0x1180] sm:$0xff]  ;;  %v1460_v9 = vld [vmem:[#allocation5 + $0xd68] sm:$0xff] }
 0x124   : > { %1386 = vmatmul.f32.vlgmr.msra.gmra.mxu1 %v3632_v52  ;;  %1652 = vmatpush.msrb.mxu3 %v1479_v11  ;;  %v1519_v59 = vld [vmem:[#allocation5 + $0xf40] sm:$0xff] }
 0x125   : > { %1425 = vmatpush.msra.mxu2 %v555_v12  ;;  %1689 = vmatpush.msrb.mxu1 %v1619_v16  ;;  %v1443_v0 = vld [vmem:[#allocation5 + $0xce0] sm:$0xff]  ;;  %v1456_v16 = vld [vmem:[#allocation5 + $0xd48] sm:$0xff] }
 0x126   : > { %1653 = vmatpush.msrb.mxu3 %v1475_v15  ;;  %1671 = vmatpush.msrb.mxu0 %v1547_v18  ;;  %v1587_v20 = vld [vmem:[#allocation5 + $0x1160] sm:$0xff] }
 0x127   : > { %1723 = vmatpush.msrb.mxu2 %v1627_v17  ;;  %1690 = vmatpush.msrb.mxu1 %v1615_v21  ;;  %v1515_v14 = vld [vmem:[#allocation5 + $0xf20] sm:$0xff] }
 0x128   : > { %1654 = vmatpush.msrb.mxu3 %v1471_v23  ;;  %1672 = vmatpush.msrb.mxu0 %v1543_v25  ;;  %v1439_v3 = vld [vmem:[#allocation5 + $0xcc0] sm:$0xff]  ;;  %v3146_v23 = vld [vmem:[%s3566_s10 + $0x38] sm:$0x3]  ;;  %v1452_v25 = vld [vmem:[#allocation5 + $0xd28] sm:$0xff] }
 0x129   : > { %1724 = vmatpush.msrb.mxu2 %v1623_v24  ;;  %1691 = vmatpush.msrb.mxu1 %v1611_v29  ;;  %v1583_v4 = vld [vmem:[#allocation5 + $0x1140] sm:$0xff]  ;;  %v1642_v24 = vrot.slane %v3146_v23, 2  ;;  %v1516_v23 = vld [vmem:[#allocation5 + $0xf28] sm:$0xff] }
 0x12a   : > { %3019 = vmatmul.msk.f32.vlgmr.msra.gmra.mxu2 %vm785_vm1, %v3627_v49  ;;  %1655 = vmatpush.msrb.mxu3 %v1467_v28  ;;  %v1511_v5 = vld [vmem:[#allocation5 + $0xf00] sm:$0xff]  ;;  %v1641_v28 = vrot.slane %v3627_v49, 2 }
 0x12b   : > { %1729 = vmatpush.msra.mxu2 %v1492_v26  ;;  %1673 = vmatpush.msrb.mxu0 %v1539_v30  ;;  %v1025_v39 = vpop.f32.mrf.mxu1  ;;  %v3145_v7 = vld [vmem:[%s3566_s10 + $0x20] sm:$0x3]  ;;  %v1556_v26 = vld [vmem:[#allocation5 + $0x1068] sm:$0xff] }
 0x12c   : > { %1656 = vmatpush.msrb.mxu3 %v1463_v32  ;;  %v965_v42 = vpop.f32.mrf.mxu3  ;;  %v985_v43 = vpop.f32.mrf.mxu2  ;;  %1692 = vmatpush.msrb.mxu1 %v1607_v33  ;;  %v1633_v60 = vrot.slane %v3145_v7, 2  ;;  %v1435_v10 = vld [vmem:[#allocation5 + $0xca0] sm:$0xff]  ;;  %v1448_v32 = vld [vmem:[#allocation5 + $0xd08] sm:$0xff] }
 0x12d   : > { %1730 = vmatpush.msra.mxu2 %v1488_v31  ;;  %1674 = vmatpush.msrb.mxu0 %v1535_v36  ;;  %v986_v46 = vadd.f32 %v985_v43, %v965_v42  ;;  %v1579_v11 = vld [vmem:[#allocation5 + $0x1120] sm:$0xff]  ;;  %v1552_v33 = vld [vmem:[#allocation5 + $0x1048] sm:$0xff]  ;;  %v1635_v36 = vrot.slane %v3632_v52, 2  ;;  %v1638_v52 = vrot.slane %v3636_v55, 2 }
 0x12e   : > { %1657 = vmatpush.msrb.mxu3 %v1459_v38  ;;  %1693 = vmatpush.msrb.mxu1 %v1603_v40  ;;  %v1507_v12 = vld [vmem:[#allocation5 + $0xee0] sm:$0xff]  ;;  %v3667_v18 = vsel %vm1631_vm2, %v1632_v6, %v1633_v60  ;;  %v1548_v42 = vld [vmem:[#allocation5 + $0x1028] sm:$0xff]  ;;  %v1493_v6 = vld [vmem:[#allocation5 + $0xe70] sm:$0xff] }
 0x12f   : > { %1731 = vmatpush.msra.mxu2 %v1484_v37  ;;  %1675 = vmatpush.msrb.mxu0 %v1531_v41  ;;  %v1431_v15 = vld [vmem:[#allocation5 + $0xc80] sm:$0xff]  ;;  %v3147_v37 = vld [vmem:[%s3566_s10 + $0x28] sm:$0x3]  ;;  %v3675_v41 = vsel %vm1631_vm2, %v1641_v28, %v1642_v24  ;;  %v1549_v60 = vld [vmem:[#allocation5 + $0x1030] sm:$0xff] }
 0x130   : > { %1658 = vmatpush.msrb.mxu3 %v1455_v45  ;;  %v1005_v54 = vpop.f32.mrf.mxu0  ;;  %1694 = vmatpush.msrb.mxu1 %v1599_v47  ;;  %v1575_v2 = vld [vmem:[#allocation5 + $0x1100] sm:$0xff]  ;;  %v1636_v38 = vrot.slane %v3147_v37, 2  ;;  %v1620_v55 = vld [vmem:[#allocation5 + $0x1268] sm:$0xff]  ;;  %v1537_v24 = vld [vmem:[#allocation5 + $0xfd0] sm:$0xff] }
 0x131   : > { %1732 = vmatpush.msra.mxu2 %v1480_v44  ;;  %1676 = vmatpush.msrb.mxu0 %v1527_v48  ;;  %v1006_v58 = vadd.f32 %v1005_v54, %v986_v46  ;;  %v1503_v29 = vld [vmem:[#allocation5 + $0xec0] sm:$0xff]  ;;  %v1444_v44 = vld [vmem:[#allocation5 + $0xce8] sm:$0xff]  ;;  %v3148_v46 = vld [vmem:[%s3566_s10 + $0x30] sm:$0x3] }
 0x132   : > { %1659 = vmatpush.msrb.mxu3 %v1451_v51  ;;  %1695 = vmatpush.msrb.mxu1 %v1595_v62  ;;  %v1571_v30 = vld [vmem:[#allocation5 + $0x10e0] sm:$0xff]  ;;  %v1639_v47 = vrot.slane %v3148_v46, 2  ;;  %v3682_v51 = vsel %vm1631_vm2, %v1635_v36, %v1636_v38  ;;  %v1440_v62 = vld [vmem:[#allocation5 + $0xcc8] sm:$0xff]  ;;  %v1469_v37 = vld [vmem:[#allocation5 + $0xdb0] sm:$0xff] }
 0x133   : > { %1733 = vmatpush.msra.mxu2 %v1476_v50  ;;  %1677 = vmatpush.msrb.mxu0 %v1523_v53  ;;  %v3662_v35 = vadd.f32 %v1025_v39, %v1006_v58  ;;  %v1499_v40 = vld [vmem:[#allocation5 + $0xea0] sm:$0xff]  ;;  %v1544_v53 = vld [vmem:[#allocation5 + $0x1008] sm:$0xff]  ;;  %v1517_v46 = vld [vmem:[#allocation5 + $0xf30] sm:$0xff] }
 0x134   : > { %1660 = vmatpush.msrb.mxu3 %v1447_v57  ;;  %1696 = vmatpush.msrb.mxu1 %v1591_v34  ;;  %v1567_v49 = vld [vmem:[#allocation5 + $0x10c0] sm:$0xff]  ;;  %v1436_v57 = vld [vmem:[#allocation5 + $0xca8] sm:$0xff] }
 0x135   : > { %1734 = vmatpush.msra.mxu2 %v1472_v56  ;;  %1678 = vmatpush.msrb.mxu0 %v1519_v59  ;;  %v1495_v45 = vld [vmem:[#allocation5 + $0xe80] sm:$0xff]  ;;  %v3688_v56 = vsel %vm1631_vm2, %v1638_v52, %v1639_v47  ;;  %v1540_v58 = vld [vmem:[#allocation5 + $0xfe8] sm:$0xff]  ;;  %v1461_v52 = vld [vmem:[#allocation5 + $0xd70] sm:$0xff] }
 0x136   : > { %1661 = vmatpush.msrb.mxu3 %v1443_v0  ;;  %v1065_v8 = vpop.f32.mrf.mxu1  ;;  %1697 = vmatpush.msrb.mxu1 %v1587_v20  ;;  %v1563_v50 = vld [vmem:[#allocation5 + $0x10a0] sm:$0xff]  ;;  %v1616_v34 = vld [vmem:[#allocation5 + $0x1248] sm:$0xff]  ;;  %v1557_v20 = vld [vmem:[#allocation5 + $0x1070] sm:$0xff] }
 0x137   : > { %1735 = vmatpush.msra.mxu2 %v1468_v63  ;;  %1679 = vmatpush.msrb.mxu0 %v1515_v14  ;;  %v1559_v54 = vld [vmem:[#allocation5 + $0x1080] sm:$0xff]  ;;  %v1432_v59 = vld [vmem:[#allocation5 + $0xc88] sm:$0xff]  ;;  %v1621_v47 = vld [vmem:[#allocation5 + $0x1270] sm:$0xff] }
 0x138   : > { %1662 = vmatpush.msrb.mxu3 %v1439_v3  ;;  %1698 = vmatpush.msrb.mxu1 %v1583_v4  ;;  %v1628_v63 = vld [vmem:[#allocation5 + $0x12a8] sm:$0xff]  ;;  %v1553_v4 = vld [vmem:[#allocation5 + $0x1050] sm:$0xff] }
 0x139   : > { %1736 = vmatpush.msra.mxu2 %v1464_v1  ;;  %1680 = vmatpush.msrb.mxu0 %v1511_v5  ;;  %v1045_v17 = vpop.f32.mrf.mxu3  ;;  %v1536_v0 = vld [vmem:[#allocation5 + $0xfc8] sm:$0xff] }
 0x13a   : > { %1663 = vmatpush.msrb.mxu3 %v1435_v10  ;;  %v1066_v21 = vadd.f32 %v1065_v8, %v1045_v17  ;;  %1699 = vmatpush.msrb.mxu1 %v1579_v11  ;;  %v1612_v14 = vld [vmem:[#allocation5 + $0x1228] sm:$0xff]  ;;  %v1545_v11 = vld [vmem:[#allocation5 + $0x1010] sm:$0xff] }
 0x13b   : > { %1737 = vmatpush.msra.mxu2 %v1460_v9  ;;  %1681 = vmatpush.msrb.mxu0 %v1507_v12  ;;  %v1624_v1 = vld [vmem:[#allocation5 + $0x1288] sm:$0xff]  ;;  %v1489_v9 = vld [vmem:[#allocation5 + $0xe50] sm:$0xff] }
 0x13c   : > { %1664 = vmatpush.msrb.mxu3 %v1431_v15  ;;  %v1085_v31 = vpop.f32.mrf.mxu2  ;;  %1700 = vmatpush.msrb.mxu1 %v1575_v2  ;;  %v1532_v3 = vld [vmem:[#allocation5 + $0xfa8] sm:$0xff]  ;;  %v1541_v17 = vld [vmem:[#allocation5 + $0xff0] sm:$0xff] }
 0x13d   : > { %1738 = vmatpush.msra.mxu2 %v1456_v16  ;;  %1665 = vmatmul.f32.vlgmr.msrb.gmra.mxu3 %v3667_v18  ;;  %v1086_v39 = vadd.f32 %v1085_v31, %v1066_v21  ;;  %v1608_v5 = vld [vmem:[#allocation5 + $0x1208] sm:$0xff]  ;;  %v1485_v16 = vld [vmem:[#allocation5 + $0xe30] sm:$0xff] }
 0x13e   : > { %1749 = vmatpush.msra.mxu3 %v1556_v26  ;;  %1682 = vmatpush.msrb.mxu0 %v1503_v29  ;;  %v1528_v7 = vld [vmem:[#allocation5 + $0xf88] sm:$0xff]  ;;  %v1481_v21 = vld [vmem:[#allocation5 + $0xe10] sm:$0xff] }
 0x13f   : > { %1739 = vmatpush.msra.mxu2 %v1452_v25  ;;  %1701 = vmatpush.msrb.mxu1 %v1571_v30  ;;  %v1105_v43 = vpop.f32.mrf.mxu1  ;;  %v1604_v8 = vld [vmem:[#allocation5 + $0x11e8] sm:$0xff]  ;;  %v1477_v26 = vld [vmem:[#allocation5 + $0xdf0] sm:$0xff] }
 0x140   : > { %1750 = vmatpush.msra.mxu3 %v1552_v33  ;;  %v3679_v48 = vadd.f32 %v1105_v43, %v1086_v39  ;;  %1683 = vmatpush.msrb.mxu0 %v1499_v40  ;;  %v1524_v10 = vld [vmem:[#allocation5 + $0xf68] sm:$0xff]  ;;  %v1533_v29 = vld [vmem:[#allocation5 + $0xfb0] sm:$0xff] }
 0x141   : > { %1740 = vmatpush.msra.mxu2 %v1448_v32  ;;  %1702 = vmatpush.msrb.mxu1 %v1567_v49  ;;  %v1600_v12 = vld [vmem:[#allocation5 + $0x11c8] sm:$0xff]  ;;  %v1473_v31 = vld [vmem:[#allocation5 + $0xdd0] sm:$0xff] }
 0x142   : > { %3020 = vmatmul.msk.f32.vlgmr.msrb.gmra.mxu2 %vm785_vm1, %v3675_v41  ;;  %1751 = vmatpush.msra.mxu3 %v1548_v42  ;;  %v1520_v15 = vld [vmem:[#allocation5 + $0xf48] sm:$0xff]  ;;  %v1529_v33 = vld [vmem:[#allocation5 + $0xf90] sm:$0xff] }
 0x143   : > { %1741 = vmatpush.msra.mxu2 %v1444_v44  ;;  %1684 = vmatpush.msrb.mxu0 %v1495_v45  ;;  %v1596_v2 = vld [vmem:[#allocation5 + $0x11a8] sm:$0xff]  ;;  %v1525_v39 = vld [vmem:[#allocation5 + $0xf70] sm:$0xff] }
 0x144   : > { %1703 = vmatpush.msrb.mxu1 %v1563_v50  ;;  %1685 = vmatmul.f32.vlgmr.msrb.gmra.mxu0 %v3682_v51  ;;  %v1592_v25 = vld [vmem:[#allocation5 + $0x1188] sm:$0xff]  ;;  %v1465_v49 = vld [vmem:[#allocation5 + $0xd90] sm:$0xff] }
 0x145   : > { %1742 = vmatpush.msra.mxu2 %v1440_v62  ;;  %1752 = vmatpush.msra.mxu3 %v1544_v53  ;;  %v1512_v28 = vld [vmem:[#allocation5 + $0xf08] sm:$0xff]  ;;  %v1521_v43 = vld [vmem:[#allocation5 + $0xf50] sm:$0xff] }
 0x146   : > { %1704 = vmatpush.msrb.mxu1 %v1559_v54  ;;  %1769 = vmatpush.msra.mxu0 %v1620_v55  ;;  %v1588_v30 = vld [vmem:[#allocation5 + $0x1168] sm:$0xff]  ;;  %v1457_v62 = vld [vmem:[#allocation5 + $0xd50] sm:$0xff] }
 0x147   : > { %1705 = vmatmul.f32.vlgmr.msrb.gmra.mxu1 %v3688_v56  ;;  %1743 = vmatpush.msra.mxu2 %v1436_v57  ;;  %v1508_v32 = vld [vmem:[#allocation5 + $0xee8] sm:$0xff]  ;;  %v1513_v53 = vld [vmem:[#allocation5 + $0xf10] sm:$0xff] }
 0x148   : > { %1753 = vmatpush.msra.mxu3 %v1540_v58  ;;  %1770 = vmatpush.msra.mxu0 %v1616_v34  ;;  %v1584_v36 = vld [vmem:[#allocation5 + $0x1148] sm:$0xff]  ;;  %v1617_v54 = vld [vmem:[#allocation5 + $0x1250] sm:$0xff] }
 0x149   : > { %1744 = vmatpush.msra.mxu2 %v1432_v59  ;;  %1803 = vmatpush.msra.mxu1 %v1628_v63  ;;  %v1504_v38 = vld [vmem:[#allocation5 + $0xec8] sm:$0xff]  ;;  %v1453_v57 = vld [vmem:[#allocation5 + $0xd30] sm:$0xff] }
 0x14a   : > { %1754 = vmatpush.msra.mxu3 %v1536_v0  ;;  %1771 = vmatpush.msra.mxu0 %v1612_v14  ;;  %v1580_v40 = vld [vmem:[#allocation5 + $0x1128] sm:$0xff]  ;;  %v1509_v58 = vld [vmem:[#allocation5 + $0xef0] sm:$0xff] }
 0x14b   : > { %1829 = vmatpush.msrb.mxu2 %v1557_v20  ;;  %1804 = vmatpush.msra.mxu1 %v1624_v1  ;;  %v1500_v42 = vld [vmem:[#allocation5 + $0xea8] sm:$0xff]  ;;  %v1613_v34 = vld [vmem:[#allocation5 + $0x1230] sm:$0xff] }
 0x14c   : > { %1755 = vmatpush.msra.mxu3 %v1532_v3  ;;  %1772 = vmatpush.msra.mxu0 %v1608_v5  ;;  %v1576_v44 = vld [vmem:[#allocation5 + $0x1108] sm:$0xff]  ;;  %v1449_v63 = vld [vmem:[#allocation5 + $0xd10] sm:$0xff] }
 0x14d   : > { %1830 = vmatpush.msrb.mxu2 %v1553_v4  ;;  %1809 = vmatpush.msrb.mxu1 %v1493_v6  ;;  %v1496_v45 = vld [vmem:[#allocation5 + $0xe88] sm:$0xff]  ;;  %v1505_v0 = vld [vmem:[#allocation5 + $0xed0] sm:$0xff] }
 0x14e   : > { %1756 = vmatpush.msra.mxu3 %v1528_v7  ;;  %1773 = vmatpush.msra.mxu0 %v1604_v8  ;;  %v1572_v50 = vld [vmem:[#allocation5 + $0x10e8] sm:$0xff]  ;;  %v1609_v20 = vld [vmem:[#allocation5 + $0x1210] sm:$0xff]  ;;  %v1622_v8 = vld [vmem:[#allocation5 + $0x1278] sm:$0xff] }
 0x14f   : > { %1831 = vmatpush.msrb.mxu2 %v1549_v60  ;;  %1810 = vmatpush.msrb.mxu1 %v1489_v9  ;;  %v1568_v55 = vld [vmem:[#allocation5 + $0x10c8] sm:$0xff]  ;;  %v1445_v1 = vld [vmem:[#allocation5 + $0xcf0] sm:$0xff] }
 0x150   : > { %1757 = vmatpush.msra.mxu3 %v1524_v10  ;;  %1774 = vmatpush.msra.mxu0 %v1600_v12  ;;  %v1564_v59 = vld [vmem:[#allocation5 + $0x10a8] sm:$0xff]  ;;  %v1501_v3 = vld [vmem:[#allocation5 + $0xeb0] sm:$0xff]  ;;  %v1618_v12 = vld [vmem:[#allocation5 + $0x1258] sm:$0xff] }
 0x151   : > { %1832 = vmatpush.msrb.mxu2 %v1545_v11  ;;  %1811 = vmatpush.msrb.mxu1 %v1485_v16  ;;  %v1560_v14 = vld [vmem:[#allocation5 + $0x1088] sm:$0xff]  ;;  %v1605_v4 = vld [vmem:[#allocation5 + $0x11f0] sm:$0xff] }
 0x152   : > { %1758 = vmatpush.msra.mxu3 %v1520_v15  ;;  %1775 = vmatpush.msra.mxu0 %v1596_v2  ;;  %v1629_v5 = vld [vmem:[#allocation5 + $0x12b0] sm:$0xff]  ;;  %v1494_v15 = vld [vmem:[#allocation5 + $0xe78] sm:$0xff] }
 0x153   : > { %1833 = vmatpush.msrb.mxu2 %v1541_v17  ;;  %1812 = vmatpush.msrb.mxu1 %v1481_v21  ;;  %v1441_v6 = vld [vmem:[#allocation5 + $0xcd0] sm:$0xff]  ;;  %v1558_v2 = vld [vmem:[#allocation5 + $0x1078] sm:$0xff] }
 0x154   : > { %1759 = vmatpush.msra.mxu3 %v1516_v23  ;;  %1776 = vmatpush.msra.mxu0 %v1592_v25  ;;  %v1497_v7 = vld [vmem:[#allocation5 + $0xe90] sm:$0xff]  ;;  %v1614_v23 = vld [vmem:[#allocation5 + $0x1238] sm:$0xff] }
 0x155   : > { %1834 = vmatpush.msrb.mxu2 %v1537_v24  ;;  %1813 = vmatpush.msrb.mxu1 %v1477_v26  ;;  %v1601_v60 = vld [vmem:[#allocation5 + $0x11d0] sm:$0xff]  ;;  %v1490_v24 = vld [vmem:[#allocation5 + $0xe58] sm:$0xff] }
 0x156   : > { %1760 = vmatpush.msra.mxu3 %v1512_v28  ;;  %1777 = vmatpush.msra.mxu0 %v1588_v30  ;;  %v1437_v9 = vld [vmem:[#allocation5 + $0xcb0] sm:$0xff]  ;;  %v1554_v26 = vld [vmem:[#allocation5 + $0x1058] sm:$0xff]  ;;  %v3698_v30 = vpop.f32.mrf.mxu2 }
 0x157   : > { %1835 = vmatpush.msrb.mxu2 %v1533_v29  ;;  %1814 = vmatpush.msrb.mxu1 %v1473_v31  ;;  %v1625_v10 = vld [vmem:[#allocation5 + $0x1290] sm:$0xff]  ;;  %v1610_v28 = vld [vmem:[#allocation5 + $0x1218] sm:$0xff] }
 0x158   : > { %1761 = vmatpush.msra.mxu3 %v1508_v32  ;;  %1778 = vmatpush.msra.mxu0 %v1584_v36  ;;  %v1597_v11 = vld [vmem:[#allocation5 + $0x11b0] sm:$0xff]  ;;  %v1486_v29 = vld [vmem:[#allocation5 + $0xe38] sm:$0xff] }
 0x159   : > { %1836 = vmatpush.msrb.mxu2 %v1529_v33  ;;  %1815 = vmatpush.msrb.mxu1 %v1469_v37  ;;  %v1433_v16 = vld [vmem:[#allocation5 + $0xc90] sm:$0xff]  ;;  %v1550_v32 = vld [vmem:[#allocation5 + $0x1038] sm:$0xff] }
 0x15a   : > { %1762 = vmatpush.msra.mxu3 %v1504_v38  ;;  %1779 = vmatpush.msra.mxu0 %v1580_v40  ;;  %v1593_v17 = vld [vmem:[#allocation5 + $0x1190] sm:$0xff]  ;;  %v1606_v33 = vld [vmem:[#allocation5 + $0x11f8] sm:$0xff] }
 0x15b   : > { %1837 = vmatpush.msrb.mxu2 %v1525_v39  ;;  %1816 = vmatpush.msrb.mxu1 %v1465_v49  ;;  %v1589_v25 = vld [vmem:[#allocation5 + $0x1170] sm:$0xff]  ;;  %v1482_v36 = vld [vmem:[#allocation5 + $0xe18] sm:$0xff] }
 0x15c   : > { %1763 = vmatpush.msra.mxu3 %v1500_v42  ;;  %1780 = vmatpush.msra.mxu0 %v1576_v44  ;;  %v3696_v21 = vpop.f32.mrf.mxu1  ;;  %v1585_v31 = vld [vmem:[#allocation5 + $0x1150] sm:$0xff]  ;;  %v1546_v38 = vld [vmem:[#allocation5 + $0x1018] sm:$0xff] }
 0x15d   : > { %1838 = vmatpush.msrb.mxu2 %v1521_v43  ;;  %1817 = vmatpush.msrb.mxu1 %v1461_v52  ;;  %v1581_v37 = vld [vmem:[#allocation5 + $0x1130] sm:$0xff]  ;;  %v1602_v39 = vld [vmem:[#allocation5 + $0x11d8] sm:$0xff] }
 0x15e   : > { %1745 = vmatmul.f32.vlgmr.msra.gmra.mxu2 %v3667_v18  ;;  %1764 = vmatpush.msra.mxu3 %v1496_v45  ;;  %v1478_v40 = vld [vmem:[#allocation5 + $0xdf8] sm:$0xff]  ;;  %v1577_v49 = vld [vmem:[#allocation5 + $0x1110] sm:$0xff] }
 0x15f   : > { %1765 = vmatmul.f32.vlgmr.msra.gmra.mxu3 %v3682_v51  ;;  %1839 = vmatpush.msrb.mxu2 %v1517_v46  ;;  %v1542_v42 = vld [vmem:[#allocation5 + $0xff8] sm:$0xff]  ;;  %v1573_v52 = vld [vmem:[#allocation5 + $0x10f0] sm:$0xff] }
 0x160   : > { %1849 = vmatpush.msrb.mxu3 %v1621_v47  ;;  %1781 = vmatpush.msra.mxu0 %v1572_v50  ;;  %v1598_v43 = vld [vmem:[#allocation5 + $0x11b8] sm:$0xff] }
 0x161   : > { %1818 = vmatpush.msrb.mxu1 %v1457_v62  ;;  %1840 = vmatpush.msrb.mxu2 %v1513_v53  ;;  %v1474_v44 = vld [vmem:[#allocation5 + $0xdd8] sm:$0xff]  ;;  %v1569_v62 = vld [vmem:[#allocation5 + $0x10d0] sm:$0xff] }
 0x162   : > { %1850 = vmatpush.msrb.mxu3 %v1617_v54  ;;  %1782 = vmatpush.msra.mxu0 %v1568_v55  ;;  %v1538_v46 = vld [vmem:[#allocation5 + $0xfd8] sm:$0xff] }
 0x163   : > { %1819 = vmatpush.msrb.mxu1 %v1453_v57  ;;  %1841 = vmatpush.msrb.mxu2 %v1509_v58  ;;  %v1594_v47 = vld [vmem:[#allocation5 + $0x1198] sm:$0xff]  ;;  %v3702_v57 = vpop.f32.mrf.mxu2  ;;  %v1565_v58 = vld [vmem:[#allocation5 + $0x10b0] sm:$0xff] }
 0x164   : > { %1851 = vmatpush.msrb.mxu3 %v1613_v34  ;;  %1783 = vmatpush.msra.mxu0 %v1564_v59  ;;  %v1470_v50 = vld [vmem:[#allocation5 + $0xdb8] sm:$0xff] }
 0x165   : > { %1820 = vmatpush.msrb.mxu1 %v1449_v63  ;;  %1842 = vmatpush.msrb.mxu2 %v1505_v0  ;;  %v1534_v53 = vld [vmem:[#allocation5 + $0xfb8] sm:$0xff]  ;;  %v1561_v63 = vld [vmem:[#allocation5 + $0x1090] sm:$0xff] }
 0x166   : > { %1852 = vmatpush.msrb.mxu3 %v1609_v20  ;;  %1784 = vmatpush.msra.mxu0 %v1560_v14  ;;  %v1590_v54 = vld [vmem:[#allocation5 + $0x1178] sm:$0xff] }
 0x167   : > { %1785 = vmatmul.f32.vlgmr.msra.gmra.mxu0 %v3688_v56  ;;  %1821 = vmatpush.msrb.mxu1 %v1445_v1  ;;  %v1466_v55 = vld [vmem:[#allocation5 + $0xd98] sm:$0xff] }
 0x168   : > { %1843 = vmatpush.msrb.mxu2 %v1501_v3  ;;  %1853 = vmatpush.msrb.mxu3 %v1605_v4  ;;  %v1530_v34 = vld [vmem:[#allocation5 + $0xf98] sm:$0xff] }
 0x169   : > { %3021 = vmatmul.msk.f32.vlgmr.msra.gmra.mxu1 %vm785_vm1, %v3675_v41  ;;  %1883 = vmatpush.msrb.mxu0 %v1629_v5  ;;  %v1586_v59 = vld [vmem:[#allocation5 + $0x1158] sm:$0xff] }
 0x16a   : > { %1822 = vmatpush.msrb.mxu1 %v1441_v6  ;;  %1844 = vmatpush.msrb.mxu2 %v1497_v7  ;;  %v1462_v0 = vld [vmem:[#allocation5 + $0xd78] sm:$0xff]  ;;  %v3707_v7 = vpop.f32.mrf.mxu0 }
 0x16b   : > { %1854 = vmatpush.msrb.mxu3 %v1601_v60  ;;  %1884 = vmatpush.msrb.mxu0 %v1625_v10  ;;  %v1526_v20 = vld [vmem:[#allocation5 + $0xf78] sm:$0xff] }
 0x16c   : > { %1929 = vmatpush.msra.mxu2 %v1622_v8  ;;  %1823 = vmatpush.msrb.mxu1 %v1437_v9  ;;  %v1582_v14 = vld [vmem:[#allocation5 + $0x1138] sm:$0xff] }
 0x16d   : > { %1855 = vmatpush.msrb.mxu3 %v1597_v11  ;;  %1889 = vmatpush.msra.mxu0 %v1494_v15  ;;  %v1458_v1 = vld [vmem:[#allocation5 + $0xd58] sm:$0xff] }
 0x16e   : > { %1930 = vmatpush.msra.mxu2 %v1618_v12  ;;  %1824 = vmatpush.msrb.mxu1 %v1433_v16  ;;  %v1522_v3 = vld [vmem:[#allocation5 + $0xf58] sm:$0xff] }
 0x16f   : > { %1856 = vmatpush.msrb.mxu3 %v1593_v17  ;;  %1890 = vmatpush.msra.mxu0 %v1490_v24  ;;  %v1578_v5 = vld [vmem:[#allocation5 + $0x1118] sm:$0xff] }
 0x170   : > { %1909 = vmatpush.msra.mxu1 %v1558_v2  ;;  %1931 = vmatpush.msra.mxu2 %v1614_v23  ;;  %v1454_v60 = vld [vmem:[#allocation5 + $0xd38] sm:$0xff] }
 0x171   : > { %1857 = vmatpush.msrb.mxu3 %v1589_v25  ;;  %1891 = vmatpush.msra.mxu0 %v1486_v29  ;;  %v1518_v8 = vld [vmem:[#allocation5 + $0xf38] sm:$0xff] }
 0x172   : > { %1910 = vmatpush.msra.mxu1 %v1554_v26  ;;  %1932 = vmatpush.msra.mxu2 %v1610_v28  ;;  %v1574_v9 = vld [vmem:[#allocation5 + $0x10f8] sm:$0xff] }
 0x173   : > { %1858 = vmatpush.msrb.mxu3 %v1585_v31  ;;  %1892 = vmatpush.msra.mxu0 %v1482_v36  ;;  %v1630_v11 = vld [vmem:[#allocation5 + $0x12b8] sm:$0xff] }
 0x174   : > { %1911 = vmatpush.msra.mxu1 %v1550_v32  ;;  %1933 = vmatpush.msra.mxu2 %v1606_v33  ;;  %v1450_v12 = vld [vmem:[#allocation5 + $0xd18] sm:$0xff] }
 0x175   : > { %1859 = vmatpush.msrb.mxu3 %v1581_v37  ;;  %v3700_v45 = vpop.f32.mrf.mxu1  ;;  %1893 = vmatpush.msra.mxu0 %v1478_v40  ;;  %v1514_v16 = vld [vmem:[#allocation5 + $0xf18] sm:$0xff]  ;;  %v2137_v40 = vld [vmem:[#allocation8 + $0x3e0] sm:$0xff] }
 0x176   : > { %1912 = vmatpush.msra.mxu1 %v1546_v38  ;;  %1934 = vmatpush.msra.mxu2 %v1602_v39  ;;  %v1626_v17 = vld [vmem:[#allocation5 + $0x1298] sm:$0xff]  ;;  %v2141_v38 = vld [vmem:[#allocation8 + $0x400] sm:$0xff] }
 0x177   : > { %1860 = vmatpush.msrb.mxu3 %v1577_v49  ;;  %1894 = vmatpush.msra.mxu0 %v1474_v44  ;;  %v1446_v2 = vld [vmem:[#allocation5 + $0xcf8] sm:$0xff]  ;;  %v2129_v44 = vld [vmem:[#allocation8 + $0x3a0] sm:$0xff] }
 0x178   : > { %1913 = vmatpush.msra.mxu1 %v1542_v42  ;;  %1935 = vmatpush.msra.mxu2 %v1598_v43  ;;  %v1510_v23 = vld [vmem:[#allocation5 + $0xef8] sm:$0xff]  ;;  %v3714_v31 = vpop.f32.mrf.mxu0 }
 0x179   : > { %1861 = vmatpush.msrb.mxu3 %v1573_v52  ;;  %1895 = vmatpush.msra.mxu0 %v1470_v50  ;;  %v1566_v24 = vld [vmem:[#allocation5 + $0x10b8] sm:$0xff]  ;;  %v2125_v50 = vld [vmem:[#allocation8 + $0x380] sm:$0xff] }
 0x17a   : > { %1914 = vmatpush.msra.mxu1 %v1538_v46  ;;  %1936 = vmatpush.msra.mxu2 %v1594_v47  ;;  %v1442_v25 = vld [vmem:[#allocation5 + $0xcd8] sm:$0xff] }
 0x17b   : > { %1862 = vmatpush.msrb.mxu3 %v1569_v62  ;;  %1896 = vmatpush.msra.mxu0 %v1466_v55  ;;  %v1506_v26 = vld [vmem:[#allocation5 + $0xed8] sm:$0xff] }
 0x17c   : > { %1915 = vmatpush.msra.mxu1 %v1534_v53  ;;  %1937 = vmatpush.msra.mxu2 %v1590_v54  ;;  %v1562_v28 = vld [vmem:[#allocation5 + $0x1098] sm:$0xff] }
 0x17d   : > { %1863 = vmatpush.msrb.mxu3 %v1565_v58  ;;  %1845 = vmatmul.f32.vlgmr.msrb.gmra.mxu2 %v3682_v51  ;;  %v2143_v29 = vld [vmem:[#allocation8 + $0x410] sm:$0xff]  ;;  %v2121_v58 = vld [vmem:[#allocation8 + $0x360] sm:$0xff] }
 0x17e   : > { %1916 = vmatpush.msra.mxu1 %v1530_v34  ;;  %1938 = vmatpush.msra.mxu2 %v1586_v59  ;;  %v1438_v32 = vld [vmem:[#allocation5 + $0xcb8] sm:$0xff] }
 0x17f   : > { %1864 = vmatpush.msrb.mxu3 %v1561_v63  ;;  %1897 = vmatpush.msra.mxu0 %v1462_v0  ;;  %v1287_v4 = vpop.f32.mrf.mxu1  ;;  %v1502_v33 = vld [vmem:[#allocation5 + $0xeb8] sm:$0xff] }
 0x180   : > { %1865 = vmatmul.f32.vlgmr.msrb.gmra.mxu3 %v3688_v56  ;;  %1917 = vmatpush.msra.mxu1 %v1526_v20  ;;  %v1288_v6 = vadd.f32 %v1287_v4, %v3662_v35  ;;  %v1570_v35 = vld [vmem:[#allocation5 + $0x10d8] sm:$0xff]  ;;  %v2117_v20 = vld [vmem:[#allocation8 + $0x340] sm:$0xff] }
 0x181   : > { %1939 = vmatpush.msra.mxu2 %v1582_v14  ;;  %1898 = vmatpush.msra.mxu0 %v1458_v1  ;;  %v1434_v36 = vld [vmem:[#allocation5 + $0xc98] sm:$0xff] }
 0x182   : > { %1918 = vmatpush.msra.mxu1 %v1522_v3  ;;  %3022 = vmatmul.msk.f32.vlgmr.msrb.gmra.mxu0 %vm785_vm1, %v3675_v41  ;;  %v1307_v10 = vpop.f32.mrf.mxu2  ;;  %v1498_v37 = vld [vmem:[#allocation5 + $0xe98] sm:$0xff]  ;;  %v2113_v3 = vld [vmem:[#allocation8 + $0x320] sm:$0xff] }
 0x183   : > { %1940 = vmatpush.msra.mxu2 %v1578_v5  ;;  %1825 = vmatmul.f32.vlgmr.msrb.gmra.mxu1 %v3667_v18  ;;  %v3712_v15 = vadd.f32 %v1307_v10, %v1288_v6  ;;  %v2139_v39 = vld [vmem:[#allocation8 + $0x3f0] sm:$0xff]  ;;  %v2176_v4 = vld [vmem:[#allocation8 + $0x518] sm:$0xff]  ;;  %v2174_v5 = vld [vmem:[#allocation8 + $0x508] sm:$0xff] }
 0x184   : > { %1899 = vmatpush.msra.mxu0 %v1454_v60  ;;  %1919 = vmatpush.msra.mxu1 %v1518_v8  ;;  %v2135_v42 = vld [vmem:[#allocation8 + $0x3d0] sm:$0xff]  ;;  %v2173_v60 = vld [vmem:[#allocation8 + $0x500] sm:$0xff]  ;;  %v826_v8 = vadd.f32 %v3648_v22, %v3646_v19  ;;  %v2164_v22 = vld [vmem:[#allocation8 + $0x4b8] sm:$0xff] }
 0x185   : > { %1941 = vmatpush.msra.mxu2 %v1574_v9  ;;  %1963 = vmatpush.msra.mxu3 %v1630_v11  ;;  %v2131_v43 = vld [vmem:[#allocation8 + $0x3b0] sm:$0xff]  ;;  %v2172_v9 = vld [vmem:[#allocation8 + $0x4f8] sm:$0xff]  ;;  %v2170_v11 = vld [vmem:[#allocation8 + $0x4e8] sm:$0xff] }
 0x186   : > { %1900 = vmatpush.msra.mxu0 %v1450_v12  ;;  %1920 = vmatpush.msra.mxu1 %v1514_v16  ;;  %v2127_v46 = vld [vmem:[#allocation8 + $0x390] sm:$0xff]  ;;  %v846_v12 = vadd.f32 %v3650_v27, %v826_v8  ;;  %v2168_v16 = vld [vmem:[#allocation8 + $0x4d8] sm:$0xff] }
 0x187   : > { %1942 = vmatpush.msra.mxu2 %v1570_v35  ;;  %1964 = vmatpush.msra.mxu3 %v1626_v17  ;;  %v2119_v0 = vld [vmem:[#allocation8 + $0x350] sm:$0xff]  ;;  %v2166_v17 = vld [vmem:[#allocation8 + $0x4c8] sm:$0xff]  ;;  %v2160_v27 = vld [vmem:[#allocation8 + $0x498] sm:$0xff] }
 0x188   : > { %1901 = vmatpush.msra.mxu0 %v1446_v2  ;;  %1921 = vmatpush.msra.mxu1 %v1510_v23  ;;  %v2115_v14 = vld [vmem:[#allocation8 + $0x330] sm:$0xff]  ;;  %v2165_v2 = vld [vmem:[#allocation8 + $0x4c0] sm:$0xff]  ;;  %v866_v19 = vadd.f32 %v3644_v13, %v846_v12  ;;  %v2204_v12 = vld [vmem:[#allocation8 + $0x5f8] sm:$0xff] }
 0x189   : > { %1943 = vmatpush.msra.mxu2 %v1566_v24  ;;  %3023 = vmatmul.msk.f32.vlgmr.msra.gmra.mxu3 %vm785_vm1, %v3675_v41  ;;  %v3720_v41 = vpop.f32.mrf.mxu3  ;;  %v2175_v6 = vld [vmem:[#allocation8 + $0x510] sm:$0xff] }
 0x18a   : > { %1902 = vmatpush.msra.mxu0 %v1442_v25  ;;  %1922 = vmatpush.msra.mxu1 %v1506_v26  ;;  %v2171_v10 = vld [vmem:[#allocation8 + $0x4f0] sm:$0xff]  ;;  %v1128_v24 = vadd.f32 %v3720_v41, %v866_v19  ;;  %v2162_v25 = vld [vmem:[#allocation8 + $0x4a8] sm:$0xff]  ;;  %v2161_v26 = vld [vmem:[#allocation8 + $0x4a0] sm:$0xff] }
 0x18b   : > { %1944 = vmatpush.msra.mxu2 %v1562_v28  ;;  %2238 = vmatpush.msrb.mxu3 %v2143_v29  ;;  %v2167_v35 = vld [vmem:[#allocation8 + $0x4d0] sm:$0xff] }
 0x18c   : > { %1945 = vmatmul.f32.vlgmr.msra.gmra.mxu2 %v3688_v56  ;;  %1903 = vmatpush.msra.mxu0 %v1438_v32  ;;  %v2133_v56 = vld [vmem:[#allocation8 + $0x3c0] sm:$0xff]  ;;  %v2163_v23 = vld [vmem:[#allocation8 + $0x4b0] sm:$0xff]  ;;  %v1148_v29 = vadd.f32 %v3707_v7, %v1128_v24  ;;  %v2158_v32 = vld [vmem:[#allocation8 + $0x488] sm:$0xff] }
 0x18d   : > { %1923 = vmatpush.msra.mxu1 %v1502_v33  ;;  %2239 = vmatpush.msrb.mxu3 %v2141_v38  ;;  %v2159_v28 = vld [vmem:[#allocation8 + $0x490] sm:$0xff]  ;;  %v2100_v24 = vld [vmem:[#allocation8 + $0x2c0] sm:$0xff] }
 0x18e   : > { %1904 = vmatpush.msra.mxu0 %v1434_v36  ;;  %v2156_v36 = vld [vmem:[#allocation8 + $0x478] sm:$0xff]  ;;  %v1168_v38 = vadd.f32 %v3696_v21, %v1148_v29  ;;  %v2155_v7 = vld [vmem:[#allocation8 + $0x470] sm:$0xff] }
 0x18f   : > { %1924 = vmatpush.msra.mxu1 %v1498_v37  ;;  %1905 = vmatmul.f32.vlgmr.msra.gmra.mxu0 %v3667_v18  ;;  %v2106_v8 = vld [vmem:[#allocation8 + $0x2f0] sm:$0xff] }
 0x190   : > { %1925 = vmatmul.f32.vlgmr.msra.gmra.mxu1 %v3682_v51  ;;  %2240 = vmatpush.msrb.mxu3 %v2139_v39  ;;  %v2123_v51 = vld [vmem:[#allocation8 + $0x370] sm:$0xff]  ;;  %v2157_v39 = vld [vmem:[#allocation8 + $0x480] sm:$0xff] }
 0x191   : > { %v1347_v49 = vpop.f32.mrf.mxu0  ;;  %v3723_v52 = vpop.f32.mrf.mxu3  ;;  %2258 = vmatpush.msrb.mxu0 %v2175_v6  ;;  %v2206_v6 = vld [vmem:[#allocation8 + $0x608] sm:$0xff]  ;;  %v2199_v19 = vld [vmem:[#allocation8 + $0x5d0] sm:$0xff] }
 0x192   : > { %2241 = vmatpush.msrb.mxu3 %v2137_v40  ;;  %v2154_v40 = vld [vmem:[#allocation8 + $0x468] sm:$0xff]  ;;  %v2098_v29 = vld [vmem:[#allocation8 + $0x2b0] sm:$0xff] }
 0x193   : > { %2259 = vmatpush.msrb.mxu0 %v2173_v60 }
 0x194   : > { %2242 = vmatpush.msrb.mxu3 %v2135_v42 }
 0x195   : > { %2260 = vmatpush.msrb.mxu0 %v2171_v10 }
 0x196   : > { %2243 = vmatpush.msrb.mxu3 %v2133_v56 }
 0x198   : > { %2244 = vmatpush.msrb.mxu3 %v2131_v43  ;;  %v2152_v43 = vld [vmem:[#allocation8 + $0x458] sm:$0xff] }
 0x19a   : > { %v1367_v47 = vpop.f32.mrf.mxu0  ;;  %2245 = vmatpush.msrb.mxu3 %v2129_v44  ;;  %v1188_v44 = vadd.f32 %v3698_v30, %v1168_v38  ;;  %v2194_v38 = vld [vmem:[#allocation8 + $0x5a8] sm:$0xff] }
 0x19b   : > { %v1368_v18 = vadd.f32 %v1367_v47, %v3679_v48 }
 0x19c   : > { %2246 = vmatpush.msrb.mxu3 %v2127_v46 }
 0x19e   : > { %2247 = vmatpush.msrb.mxu3 %v2125_v50  ;;  %v2150_v50 = vld [vmem:[#allocation8 + $0x448] sm:$0xff] }
 0x1a0   : > { %v1327_v62 = vpop.f32.mrf.mxu3  ;;  %2248 = vmatpush.msrb.mxu3 %v2123_v51 }
 0x1a1   : > { %v1328_v53 = vadd.f32 %v1327_v62, %v3712_v15  ;;  %v1387_v54 = vpop.f32.mrf.mxu1  ;;  %v2169_v15 = vld [vmem:[#allocation8 + $0x4e0] sm:$0xff]  ;;  %v2151_v62 = vld [vmem:[#allocation8 + $0x450] sm:$0xff] }
 0x1a2   : > { %v1388_v55 = vadd.f32 %v1387_v54, %v1368_v18  ;;  %2249 = vmatpush.msrb.mxu3 %v2121_v58  ;;  %2261 = vmatpush.msrb.mxu0 %v2169_v15  ;;  %v2153_v18 = vld [vmem:[#allocation8 + $0x460] sm:$0xff]  ;;  %v2146_v58 = vld [vmem:[#allocation8 + $0x428] sm:$0xff] }
 0x1a3   : > { %v3727_v34 = vadd.f32 %v1347_v49, %v1328_v53  ;;  %v3738_v49 = vld [vmem:[#allocation7] sm:$0xf]  ;;  %v2201_v15 = vld [vmem:[#allocation8 + $0x5e0] sm:$0xff] }
 0x1a4   : > { %v1407_v59 = vpop.f32.mrf.mxu2  ;;  %2250 = vmatpush.msrb.mxu3 %v2119_v0  ;;  %2262 = vmatpush.msrb.mxu0 %v2167_v35  ;;  %v1975_v47 = vperm.slane %v3738_v49, 0  ;;  %v2148_v53 = vld [vmem:[#allocation8 + $0x438] sm:$0xff]  ;;  %v2207_v0 = vld [vmem:[#allocation8 + $0x610] sm:$0xff] }
 0x1a5   : > { %v1408_v63 = vadd.f32 %v1407_v59, %v1388_v55  ;;  %v2149_v55 = vld [vmem:[#allocation8 + $0x440] sm:$0xff]  ;;  %v2147_v59 = vld [vmem:[#allocation8 + $0x430] sm:$0xff]  ;;  %2278 = vmatpush.msrb.mxu1 %v2207_v0 }
 0x1a6   : > { %2251 = vmatpush.msrb.mxu3 %v2117_v20  ;;  %2263 = vmatpush.msrb.mxu0 %v2165_v2  ;;  %v2208_v20 = vld [vmem:[#allocation8 + $0x618] sm:$0xff]  ;;  %v2102_v2 = vld [vmem:[#allocation8 + $0x2d0] sm:$0xff]  ;;  %v2185_v0 = vld [vmem:[#allocation8 + $0x560] sm:$0xff] }
 0x1a8   : > { %2252 = vmatpush.msrb.mxu3 %v2115_v14  ;;  %2264 = vmatpush.msrb.mxu0 %v2163_v23  ;;  %v2211_v23 = vld [vmem:[#allocation8 + $0x630] sm:$0xff] }
 0x1a9   : > { %2312 = vmatpush.msrb.mxu2 %v2211_v23  ;;  %v2177_v23 = vld [vmem:[#allocation8 + $0x520] sm:$0xff] }
 0x1aa   : > { %2253 = vmatpush.msrb.mxu3 %v2113_v3  ;;  %2265 = vmatpush.msrb.mxu0 %v2161_v26  ;;  %v2205_v3 = vld [vmem:[#allocation8 + $0x600] sm:$0xff] }
 0x1ab   : > { %2279 = vmatpush.msrb.mxu1 %v2205_v3  ;;  %v2209_v26 = vld [vmem:[#allocation8 + $0x620] sm:$0xff] }
 0x1ac   : > { %2338 = vmatpush.msra.mxu3 %v2176_v4  ;;  %2266 = vmatpush.msrb.mxu0 %v2159_v28  ;;  %v2144_v28 = vld [vmem:[#allocation8 + $0x418] sm:$0xff]  ;;  %v2084_v3 = vld [vmem:[#allocation8 + $0x240] sm:$0xff] }
 0x1ad   : > { %v1427_v48 = vpop.f32.mrf.mxu2  ;;  %2313 = vmatpush.msrb.mxu2 %v2209_v26 }
 0x1ae   : > { %v3729_v1 = vadd.f32 %v1427_v48, %v1408_v63  ;;  %2339 = vmatpush.msra.mxu3 %v2174_v5  ;;  %2267 = vmatpush.msrb.mxu0 %v2157_v39  ;;  %v2145_v63 = vld [vmem:[#allocation8 + $0x420] sm:$0xff] }
 0x1af   : > { %2318 = vmatpush.msra.mxu2 %v2144_v28  ;;  %v2076_v28 = vld [vmem:[#allocation8 + $0x200] sm:$0xff] }
 0x1b0   : > { %2340 = vmatpush.msra.mxu3 %v2172_v9  ;;  %2268 = vmatpush.msrb.mxu0 %v2155_v7  ;;  %v2203_v9 = vld [vmem:[#allocation8 + $0x5f0] sm:$0xff]  ;;  %v2142_v7 = vld [vmem:[#allocation8 + $0x408] sm:$0xff] }
 0x1b1   : > { %2280 = vmatpush.msrb.mxu1 %v2203_v9  ;;  %2319 = vmatpush.msra.mxu2 %v2142_v7  ;;  %v2132_v9 = vld [vmem:[#allocation8 + $0x3b8] sm:$0xff]  ;;  %v2108_v7 = vld [vmem:[#allocation8 + $0x300] sm:$0xff] }
 0x1b2   : > { %2341 = vmatpush.msra.mxu3 %v2170_v11  ;;  %2269 = vmatpush.msrb.mxu0 %v2153_v18  ;;  %v2190_v18 = vld [vmem:[#allocation8 + $0x588] sm:$0xff] }
 0x1b3   : > { %2281 = vmatpush.msrb.mxu1 %v2201_v15  ;;  %v2179_v15 = vld [vmem:[#allocation8 + $0x530] sm:$0xff] }
 0x1b4   : > { %2342 = vmatpush.msra.mxu3 %v2168_v16  ;;  %2270 = vmatpush.msrb.mxu0 %v2151_v62  ;;  %v2104_v16 = vld [vmem:[#allocation8 + $0x2e0] sm:$0xff] }
 0x1b5   : > { %2282 = vmatpush.msrb.mxu1 %v2199_v19 }
 0x1b6   : > { %2343 = vmatpush.msra.mxu3 %v2166_v17  ;;  %2271 = vmatpush.msrb.mxu0 %v2149_v55  ;;  %v2202_v17 = vld [vmem:[#allocation8 + $0x5e8] sm:$0xff]  ;;  %v2188_v55 = vld [vmem:[#allocation8 + $0x578] sm:$0xff] }
 0x1b8   : > { %2344 = vmatpush.msra.mxu3 %v2164_v22  ;;  %2272 = vmatpush.msrb.mxu0 %v2147_v59  ;;  %v2200_v22 = vld [vmem:[#allocation8 + $0x5d8] sm:$0xff]  ;;  %v1976_v59 = vperm.slane %v3738_v49, 1 }
 0x1ba   : > { %2345 = vmatpush.msra.mxu3 %v2162_v25  ;;  %2273 = vmatpush.msrb.mxu0 %v2145_v63  ;;  %v2197_v25 = vld [vmem:[#allocation8 + $0x5c0] sm:$0xff]  ;;  %v2086_v63 = vld [vmem:[#allocation8 + $0x250] sm:$0xff] }
 0x1bb   : > { %2283 = vmatpush.msrb.mxu1 %v2197_v25  ;;  %v2178_v25 = vld [vmem:[#allocation8 + $0x528] sm:$0xff] }
 0x1bc   : > { %2346 = vmatpush.msra.mxu3 %v2160_v27  ;;  %2358 = vmatpush.msra.mxu0 %v2208_v20  ;;  %v2198_v27 = vld [vmem:[#allocation8 + $0x5c8] sm:$0xff]  ;;  %v2136_v20 = vld [vmem:[#allocation8 + $0x3d8] sm:$0xff] }
 0x1be   : > { %2347 = vmatpush.msra.mxu3 %v2158_v32  ;;  %2359 = vmatpush.msra.mxu0 %v2206_v6  ;;  %v2195_v32 = vld [vmem:[#allocation8 + $0x5b0] sm:$0xff] }
 0x1bf   : > { %2284 = vmatpush.msrb.mxu1 %v2195_v32 }
 0x1c0   : > { %v1666_v33 = vpop.f32.mrf.mxu3  ;;  %2348 = vmatpush.msra.mxu3 %v2156_v36  ;;  %2360 = vmatpush.msra.mxu0 %v2204_v12  ;;  %v2096_v36 = vld [vmem:[#allocation8 + $0x2a0] sm:$0xff] }
 0x1c1   : > { %v1686_v13 = vpop.f32.mrf.mxu0 }
 0x1c2   : > { %v1687_v37 = vadd.f32 %v1686_v13, %v1666_v33  ;;  %2349 = vmatpush.msra.mxu3 %v2154_v40  ;;  %2361 = vmatpush.msra.mxu0 %v2202_v17  ;;  %v2196_v33 = vld [vmem:[#allocation8 + $0x5b8] sm:$0xff]  ;;  %v1208_v13 = vadd.f32 %v3702_v57, %v3654_v61  ;;  %v2094_v40 = vld [vmem:[#allocation8 + $0x290] sm:$0xff]  ;;  %v2130_v17 = vld [vmem:[#allocation8 + $0x3a8] sm:$0xff] }
 0x1c4   : > { %v1706_v41 = vpop.f32.mrf.mxu1  ;;  %2350 = vmatpush.msra.mxu3 %v2152_v43  ;;  %2362 = vmatpush.msra.mxu0 %v2200_v22  ;;  %v1228_v39 = vadd.f32 %v3723_v52, %v1208_v13  ;;  %v2192_v43 = vld [vmem:[#allocation8 + $0x598] sm:$0xff]  ;;  %v2078_v22 = vld [vmem:[#allocation8 + $0x210] sm:$0xff]  ;;  %v2126_v13 = vld [vmem:[#allocation8 + $0x388] sm:$0xff] }
 0x1c5   : > { %v1707_v42 = vadd.f32 %v1706_v41, %v1687_v37  ;;  %v1726_v56 = vpop.f32.mrf.mxu2  ;;  %v2193_v37 = vld [vmem:[#allocation8 + $0x5a0] sm:$0xff] }
 0x1c6   : > { %2351 = vmatpush.msra.mxu3 %v2150_v50  ;;  %2363 = vmatpush.msra.mxu0 %v2198_v27  ;;  %v1248_v57 = vadd.f32 %v3714_v31, %v1228_v39 }
 0x1c7   : > { %v1727_v46 = vadd.f32 %v1726_v56, %v1707_v42  ;;  %v2092_v42 = vld [vmem:[#allocation8 + $0x280] sm:$0xff]  ;;  %2285 = vmatpush.msrb.mxu1 %v2193_v37  ;;  %v2191_v56 = vld [vmem:[#allocation8 + $0x590] sm:$0xff]  ;;  %v2111_v37 = vld [vmem:[#allocation8 + $0x318] sm:$0xff] }
 0x1c8   : > { %2352 = vmatpush.msra.mxu3 %v2148_v53  ;;  %2364 = vmatpush.msra.mxu0 %v2196_v33  ;;  %v2187_v53 = vld [vmem:[#allocation8 + $0x570] sm:$0xff]  ;;  %v1268_v31 = vadd.f32 %v3700_v45, %v1248_v57  ;;  %v2184_v45 = vld [vmem:[#allocation8 + $0x558] sm:$0xff] }
 0x1c9   : > { %v1969_v21 = vadd.f32 %v1727_v46, %v1188_v44  ;;  %2286 = vmatpush.msrb.mxu1 %v2191_v56  ;;  %v2090_v46 = vld [vmem:[#allocation8 + $0x270] sm:$0xff]  ;;  %v2109_v56 = vld [vmem:[#allocation8 + $0x308] sm:$0xff]  ;;  %v2120_v57 = vld [vmem:[#allocation8 + $0x358] sm:$0xff] }
 0x1ca   : > { %2353 = vmatpush.msra.mxu3 %v2146_v58  ;;  %2365 = vmatpush.msra.mxu0 %v2194_v38  ;;  %v2110_v38 = vld [vmem:[#allocation8 + $0x310] sm:$0xff] }
 0x1cb   : > { %v1983_v51 = vadd.f32 %v1975_v47, %v1969_v21  ;;  %v2189_v47 = vld [vmem:[#allocation8 + $0x580] sm:$0xff]  ;;  %v2140_v21 = vld [vmem:[#allocation8 + $0x3f8] sm:$0xff] }
 0x1cc   : > { %2366 = vmatpush.msra.mxu0 %v2192_v43  ;;  %2287 = vmatpush.msrb.mxu1 %v2189_v47 }
 0x1cd   : > { %v1987_v54 = vmax.f32 %v1983_v51, 0.0  ;;  %v2088_v51 = vld [vmem:[#allocation8 + $0x260] sm:$0xff]  ;;  %2320 = vmatpush.msra.mxu2 %v2140_v21 }
 0x1ce   : > { %2367 = vmatpush.msra.mxu0 %v2190_v18  ;;  %2288 = vmatpush.msrb.mxu1 %v2187_v53 }
 0x1cf   : > { %v3742_v30 = vrot.slane %v1987_v54, 7  ;;  %v2138_v54 = vld [vmem:[#allocation8 + $0x3e8] sm:$0xff] }
 0x1d0   : > { %2321 = vmatpush.msra.mxu2 %v2138_v54  ;;  %2368 = vmatpush.msra.mxu0 %v2188_v55  ;;  %v1977_v54 = vperm.slane %v3738_v49, 2 }
 0x1d1   : > { %v2004_v48 = vsel %vm2003_vm3, 0.0, %v3742_v30  ;;  %v2008_v14 = vsel %vm2003_vm3, %v3742_v30, 0.0  ;;  %2289 = vmatpush.msrb.mxu1 %v2185_v0  ;;  %v2635_v0 = vld [vmem:[#allocation8 + $0x890] sm:$0xff] }
 0x1d2   : > { %v2221_v4 = vrot.slane %v2004_v48, 1  ;;  %v2222_v5 = vrot.slane %v2008_v14, 1  ;;  %v2661_v60 = vrot.slane %v2004_v48, 2  ;;  %v2662_v10 = vrot.slane %v2008_v14, 2  ;;  %v2186_v48 = vld [vmem:[#allocation8 + $0x568] sm:$0xff]  ;;  %2322 = vmatpush.msra.mxu2 %v2136_v20 }
 0x1d3   : > { %2369 = vmatpush.msra.mxu0 %v2186_v48 }
 0x1d4   : > { %v3749_v11 = vsel %vm769_vm0, %v2221_v4, %v2222_v5  ;;  %v3753_v35 = vsel %vm1631_vm2, %v2661_v60, %v2662_v10  ;;  %v2183_v4 = vld [vmem:[#allocation8 + $0x550] sm:$0xff]  ;;  %v2134_v5 = vld [vmem:[#allocation8 + $0x3c8] sm:$0xff] }
 0x1d5   : > { %2254 = vmatmul.f32.vlgmr.msrb.gmra.mxu3 %v3749_v11  ;;  %v2082_v60 = vld [vmem:[#allocation8 + $0x230] sm:$0xff]  ;;  %2290 = vmatpush.msrb.mxu1 %v2183_v4  ;;  %v2182_v10 = vld [vmem:[#allocation8 + $0x548] sm:$0xff] }
 0x1d6   : > { %2440 = vmatpush.msrb.mxu3 %v2106_v8  ;;  %2323 = vmatpush.msra.mxu2 %v2134_v5  ;;  %v2181_v8 = vld [vmem:[#allocation8 + $0x540] sm:$0xff] }
 0x1d7   : > { %2370 = vmatpush.msra.mxu0 %v2184_v45  ;;  %2291 = vmatpush.msrb.mxu1 %v2181_v8 }
 0x1d8   : > { %2441 = vmatpush.msrb.mxu3 %v2104_v16  ;;  %v2080_v16 = vld [vmem:[#allocation8 + $0x220] sm:$0xff]  ;;  %2324 = vmatpush.msra.mxu2 %v2132_v9 }
 0x1d9   : > { %2371 = vmatpush.msra.mxu0 %v2182_v10  ;;  %2292 = vmatpush.msrb.mxu1 %v2179_v15  ;;  %v2043_v15 = vld [vmem:[#allocation8 + $0xf8] sm:$0xff] }
 0x1da   : > { %2442 = vmatpush.msrb.mxu3 %v2102_v2  ;;  %v2180_v2 = vld [vmem:[#allocation8 + $0x538] sm:$0xff]  ;;  %2325 = vmatpush.msra.mxu2 %v2130_v17 }
 0x1db   : > { %2372 = vmatpush.msra.mxu0 %v2180_v2  ;;  %2293 = vmatpush.msrb.mxu1 %v2177_v23 }
 0x1dc   : > { %2443 = vmatpush.msrb.mxu3 %v2100_v24  ;;  %v2128_v24 = vld [vmem:[#allocation8 + $0x398] sm:$0xff] }
 0x1dd   : > { %2326 = vmatpush.msra.mxu2 %v2128_v24  ;;  %2373 = vmatpush.msra.mxu0 %v2178_v25  ;;  %v2040_v24 = vld [vmem:[#allocation8 + $0xe0] sm:$0xff]  ;;  %v2041_v25 = vld [vmem:[#allocation8 + $0xe8] sm:$0xff] }
 0x1de   : > { %2444 = vmatpush.msrb.mxu3 %v2098_v29  ;;  %v2212_v29 = vld [vmem:[#allocation8 + $0x638] sm:$0xff] }
 0x1df   : > { %2392 = vmatpush.msra.mxu1 %v2212_v29  ;;  %2327 = vmatpush.msra.mxu2 %v2126_v13  ;;  %v2039_v29 = vld [vmem:[#allocation8 + $0xd8] sm:$0xff]  ;;  %v2037_v13 = vld [vmem:[#allocation8 + $0xc8] sm:$0xff] }
 0x1e0   : > { %2445 = vmatpush.msrb.mxu3 %v2096_v36 }
 0x1e1   : > { %v1746_v41 = vpop.f32.mrf.mxu2 }
 0x1e2   : > { %v1766_v61 = vpop.f32.mrf.mxu3  ;;  %2446 = vmatpush.msrb.mxu3 %v2094_v40 }
 0x1e3   : > { %v1767_v44 = vadd.f32 %v1766_v61, %v1746_v41  ;;  %v2210_v41 = vld [vmem:[#allocation8 + $0x628] sm:$0xff] }
 0x1e4   : > { %v1786_v52 = vpop.f32.mrf.mxu0  ;;  %2447 = vmatpush.msrb.mxu3 %v2092_v42  ;;  %v2124_v42 = vld [vmem:[#allocation8 + $0x378] sm:$0xff]  ;;  %2393 = vmatpush.msra.mxu1 %v2210_v41  ;;  %v2122_v61 = vld [vmem:[#allocation8 + $0x368] sm:$0xff] }
 0x1e5   : > { %v1787_v50 = vadd.f32 %v1786_v52, %v1767_v44  ;;  %2328 = vmatpush.msra.mxu2 %v2124_v42  ;;  %v2118_v44 = vld [vmem:[#allocation8 + $0x348] sm:$0xff]  ;;  %v2579_v42 = vld [vmem:[#allocation8 + $0x6d0] sm:$0xff] }
 0x1e6   : > { %v1806_v62 = vpop.f32.mrf.mxu1  ;;  %2448 = vmatpush.msrb.mxu3 %v2090_v46  ;;  %v2116_v46 = vld [vmem:[#allocation8 + $0x338] sm:$0xff]  ;;  %v2114_v52 = vld [vmem:[#allocation8 + $0x328] sm:$0xff] }
 0x1e7   : > { %v1807_v58 = vadd.f32 %v1806_v62, %v1787_v50  ;;  %2329 = vmatpush.msra.mxu2 %v2122_v61 }
 0x1e8   : > { %2449 = vmatpush.msrb.mxu3 %v2088_v51 }
 0x1e9   : > { %v1970_v14 = vadd.f32 %v1807_v58, %v1268_v31  ;;  %2330 = vmatpush.msra.mxu2 %v2120_v57 }
 0x1ea   : > { %2450 = vmatpush.msrb.mxu3 %v2086_v63 }
 0x1eb   : > { %v1984_v6 = vadd.f32 %v1976_v59, %v1970_v14  ;;  %2331 = vmatpush.msra.mxu2 %v2118_v44  ;;  %v2591_v14 = vld [vmem:[#allocation8 + $0x730] sm:$0xff] }
 0x1ec   : > { %2451 = vmatpush.msrb.mxu3 %v2084_v3 }
 0x1ed   : > { %v1988_v12 = vmax.f32 %v1984_v6, 0.0  ;;  %2332 = vmatpush.msra.mxu2 %v2116_v46  ;;  %v2033_v46 = vld [vmem:[#allocation8 + $0xa8] sm:$0xff] }
 0x1ee   : > { %2452 = vmatpush.msrb.mxu3 %v2082_v60 }
 0x1ef   : > { %v3761_v19 = vrot.slane %v1988_v12, 7  ;;  %2333 = vmatpush.msra.mxu2 %v2114_v52  ;;  %v1978_v12 = vperm.slane %v3738_v49, 3  ;;  %v2577_v52 = vld [vmem:[#allocation8 + $0x6c0] sm:$0xff] }
 0x1f0   : > { %2453 = vmatpush.msrb.mxu3 %v2080_v16  ;;  %v2042_v16 = vld [vmem:[#allocation8 + $0xf0] sm:$0xff] }
 0x1f1   : > { %v2005_v26 = vsel %vm2003_vm3, 0.0, %v3761_v19  ;;  %v2009_v27 = vsel %vm2003_vm3, %v3761_v19, 0.0 }
 0x1f2   : > { %v2224_v32 = vrot.slane %v2005_v26, 1  ;;  %v2225_v33 = vrot.slane %v2009_v27, 1  ;;  %2454 = vmatpush.msrb.mxu3 %v2078_v22  ;;  %v2664_v36 = vrot.slane %v2005_v26, 2  ;;  %v2665_v39 = vrot.slane %v2009_v27, 2  ;;  %v2587_v22 = vld [vmem:[#allocation8 + $0x710] sm:$0xff]  ;;  %v2585_v27 = vld [vmem:[#allocation8 + $0x700] sm:$0xff] }
 0x1f4   : > { %v2226_v40 = vsel %vm769_vm0, %v2224_v32, %v2225_v33  ;;  %2455 = vmatpush.msrb.mxu3 %v2076_v28  ;;  %v3769_v43 = vsel %vm1631_vm2, %v2664_v36, %v2665_v39  ;;  %v2038_v28 = vld [vmem:[#allocation8 + $0xd0] sm:$0xff]  ;;  %v2581_v36 = vld [vmem:[#allocation8 + $0x6e0] sm:$0xff]  ;;  %v2035_v39 = vld [vmem:[#allocation8 + $0xb8] sm:$0xff] }
 0x1f5   : > { %2274 = vmatmul.f32.vlgmr.msrb.gmra.mxu0 %v2226_v40  ;;  %2354 = vmatmul.f32.vlgmr.msra.gmra.mxu3 %v2226_v40  ;;  %v2583_v32 = vld [vmem:[#allocation8 + $0x6f0] sm:$0xff] }
 0x1f6   : > { %2554 = vmatpush.msra.mxu3 %v2111_v37  ;;  %2474 = vmatpush.msrb.mxu0 %v2110_v38  ;;  %v2034_v38 = vld [vmem:[#allocation8 + $0xb0] sm:$0xff] }
 0x1f8   : > { %2555 = vmatpush.msra.mxu3 %v2109_v56  ;;  %2475 = vmatpush.msrb.mxu0 %v2108_v7  ;;  %v2032_v56 = vld [vmem:[#allocation8 + $0xa0] sm:$0xff] }
 0x1ff   : > { %v1886_v50 = vpop.f32.mrf.mxu0 }
 0x200   : > { %v1826_v47 = vpop.f32.mrf.mxu1  ;;  %v1846_v21 = vpop.f32.mrf.mxu2 }
 0x201   : > { %v1847_v18 = vadd.f32 %v1846_v21, %v1826_v47  ;;  %v2074_v21 = vld [vmem:[#allocation8 + $0x1f0] sm:$0xff] }
 0x203   : > { %v1866_v51 = vpop.f32.mrf.mxu3 }
 0x204   : > { %v1867_v62 = vadd.f32 %v1866_v51, %v1847_v18  ;;  %v2030_v18 = vld [vmem:[#allocation8 + $0x90] sm:$0xff]  ;;  %v2031_v51 = vld [vmem:[#allocation8 + $0x98] sm:$0xff] }
 0x206   : > { %v1887_v53 = vadd.f32 %v1886_v50, %v1867_v62  ;;  %v2575_v62 = vld [vmem:[#allocation8 + $0x6b0] sm:$0xff] }
 0x208   : > { %v1971_v55 = vadd.f32 %v1887_v53, %v3727_v34  ;;  %v2589_v34 = vld [vmem:[#allocation8 + $0x720] sm:$0xff] }
 0x209   : > { %v2072_v53 = vld [vmem:[#allocation8 + $0x1e0] sm:$0xff] }
 0x20a   : > { %v1985_v31 = vadd.f32 %v1977_v54, %v1971_v55  ;;  %v2028_v54 = vld [vmem:[#allocation8 + $0x80] sm:$0xff]  ;;  %v2029_v55 = vld [vmem:[#allocation8 + $0x88] sm:$0xff] }
 0x20c   : > { %v1989_v58 = vmax.f32 %v1985_v31, 0.0  ;;  %v1906_v59 = vpop.f32.mrf.mxu0  ;;  %v1966_v4 = vpop.f32.mrf.mxu3  ;;  %v2573_v31 = vld [vmem:[#allocation8 + $0x6a0] sm:$0xff] }
 0x20d   : > { %v1926_v63 = vpop.f32.mrf.mxu1 }
 0x20e   : > { %v3778_v20 = vrot.slane %v1989_v58, 7  ;;  %v1927_v48 = vadd.f32 %v1926_v63, %v1906_v59  ;;  %v2070_v58 = vld [vmem:[#allocation8 + $0x1d0] sm:$0xff]  ;;  %v2027_v63 = vld [vmem:[#allocation8 + $0x78] sm:$0xff] }
 0x20f   : > { %v1946_v3 = vpop.f32.mrf.mxu2  ;;  %v2026_v59 = vld [vmem:[#allocation8 + $0x70] sm:$0xff] }
 0x210   : > { %v1947_v5 = vadd.f32 %v1946_v3, %v1927_v48  ;;  %3031 = vmatmul.msk.f32.vlgmr.msrb.gmra.mxu3 %vm3774_vm4, %v3778_v20  ;;  %v2006_v45 = vsel %vm2003_vm3, 0.0, %v3778_v20  ;;  %v2010_v6 = vsel %vm2003_vm3, %v3778_v20, 0.0  ;;  %v2571_v48 = vld [vmem:[#allocation8 + $0x690] sm:$0xff]  ;;  %v2024_v3 = vld [vmem:[#allocation8 + $0x60] sm:$0xff] }
 0x211   : > { %2678 = vmatpush.msrb.mxu3 %v2591_v14  ;;  %v2227_v60 = vrot.slane %v2006_v45, 1  ;;  %v2228_v8 = vrot.slane %v2010_v6, 1  ;;  %v2667_v9 = vrot.slane %v2006_v45, 2  ;;  %v2668_v17 = vrot.slane %v2010_v6, 2  ;;  %v2068_v14 = vld [vmem:[#allocation8 + $0x1c0] sm:$0xff]  ;;  %v2066_v45 = vld [vmem:[#allocation8 + $0x1b0] sm:$0xff] }
 0x212   : > { %v1967_v10 = vadd.f32 %v1966_v4, %v1947_v5  ;;  %v2025_v4 = vld [vmem:[#allocation8 + $0x68] sm:$0xff]  ;;  %v2569_v5 = vld [vmem:[#allocation8 + $0x680] sm:$0xff]  ;;  %v2023_v6 = vld [vmem:[#allocation8 + $0x58] sm:$0xff] }
 0x213   : > { %2679 = vmatpush.msrb.mxu3 %v2589_v34  ;;  %v2229_v2 = vsel %vm769_vm0, %v2227_v60, %v2228_v8  ;;  %v3791_v26 = vsel %vm1631_vm2, %v2667_v9, %v2668_v17  ;;  %v2022_v34 = vld [vmem:[#allocation8 + $0x50] sm:$0xff]  ;;  %v2020_v8 = vld [vmem:[#allocation8 + $0x40] sm:$0xff]  ;;  %v2019_v17 = vld [vmem:[#allocation8 + $0x38] sm:$0xff] }
 0x214   : > { %v1972_v23 = vadd.f32 %v1967_v10, %v3729_v1  ;;  %2294 = vmatmul.f32.vlgmr.msrb.gmra.mxu1 %v2229_v2  ;;  %2374 = vmatmul.f32.vlgmr.msra.gmra.mxu0 %v2229_v2  ;;  %v2036_v1 = vld [vmem:[#allocation8 + $0xc0] sm:$0xff]  ;;  %v2567_v60 = vld [vmem:[#allocation8 + $0x670] sm:$0xff]  ;;  %v2021_v10 = vld [vmem:[#allocation8 + $0x48] sm:$0xff] }
 0x215   : > { %2400 = vmatpush.msrb.mxu1 %v2042_v16  ;;  %2480 = vmatpush.msra.mxu0 %v2043_v15  ;;  %v2064_v9 = vld [vmem:[#allocation8 + $0x1a0] sm:$0xff]  ;;  %v2018_v16 = vld [vmem:[#allocation8 + $0x30] sm:$0xff] }
 0x216   : > { %v1986_v49 = vadd.f32 %v1978_v12, %v1972_v23  ;;  %2680 = vmatpush.msrb.mxu3 %v2587_v22  ;;  %v2565_v12 = vld [vmem:[#allocation8 + $0x660] sm:$0xff]  ;;  %v2062_v15 = vld [vmem:[#allocation8 + $0x190] sm:$0xff] }
 0x217   : > { %2401 = vmatpush.msrb.mxu1 %v2040_v24  ;;  %2481 = vmatpush.msra.mxu0 %v2041_v25  ;;  %v2563_v2 = vld [vmem:[#allocation8 + $0x650] sm:$0xff]  ;;  %v2016_v22 = vld [vmem:[#allocation8 + $0x20] sm:$0xff]  ;;  %v2017_v24 = vld [vmem:[#allocation8 + $0x28] sm:$0xff] }
 0x218   : > { %v1990_v33 = vmax.f32 %v1986_v49, 0.0  ;;  %2681 = vmatpush.msrb.mxu3 %v2585_v27  ;;  %v2060_v23 = vld [vmem:[#allocation8 + $0x180] sm:$0xff]  ;;  %v2014_v25 = vld [vmem:[#allocation8 + $0x10] sm:$0xff]  ;;  %v2624_v49 = vld [vmem:[#allocation8 + $0x838] sm:$0xff] }
 0x219   : > { %2402 = vmatpush.msrb.mxu1 %v2038_v28  ;;  %2482 = vmatpush.msra.mxu0 %v2039_v29  ;;  %v2058_v27 = vld [vmem:[#allocation8 + $0x170] sm:$0xff]  ;;  %v2015_v28 = vld [vmem:[#allocation8 + $0x18] sm:$0xff]  ;;  %v2056_v29 = vld [vmem:[#allocation8 + $0x160] sm:$0xff] }
 0x21a   : > { %v1998_v37 = vrot.slane %v1990_v33, 7  ;;  %2682 = vmatpush.msrb.mxu3 %v2583_v32  ;;  %v2012_v32 = vld [vmem:[#allocation8] sm:$0xff]  ;;  %v2622_v33 = vld [vmem:[#allocation8 + $0x828] sm:$0xff] }
 0x21b   : > { %2403 = vmatpush.msrb.mxu1 %v2036_v1  ;;  %2483 = vmatpush.msra.mxu0 %v2037_v13  ;;  %v2013_v1 = vld [vmem:[#allocation8 + $0x8] sm:$0xff]  ;;  %v2054_v13 = vld [vmem:[#allocation8 + $0x150] sm:$0xff] }
 0x21c   : > { %v2011_v40 = vsel %vm2003_vm3, %v1998_v37, 0.0  ;;  %2683 = vmatpush.msrb.mxu3 %v2581_v36  ;;  %v2007_v41 = vsel %vm2003_vm3, 0.0, %v1998_v37  ;;  %v2075_v36 = vld [vmem:[#allocation8 + $0x1f8] sm:$0xff]  ;;  %v2623_v37 = vld [vmem:[#allocation8 + $0x830] sm:$0xff] }
 0x21d   : > { %v2231_v7 = vrot.slane %v2011_v40, 1  ;;  %v2671_v61 = vrot.slane %v2011_v40, 2  ;;  %2404 = vmatpush.msrb.mxu1 %v2034_v38  ;;  %v2230_v57 = vrot.slane %v2007_v41, 1  ;;  %3032 = vmatmul.msk.f32.vlgmr.msrb.gmra.mxu0 %vm785_vm1, %v2007_v41  ;;  %v2670_v44 = vrot.slane %v2007_v41, 2  ;;  %v2620_v38 = vld [vmem:[#allocation8 + $0x818] sm:$0xff]  ;;  %v2073_v40 = vld [vmem:[#allocation8 + $0x1e8] sm:$0xff] }
 0x21e   : > { %2484 = vmatpush.msra.mxu0 %v2035_v39  ;;  %3039 = vmatmul.msk.f32.vlgmr.msra.gmra.mxu3 %vm785_vm1, %v2007_v41  ;;  %v2052_v39 = vld [vmem:[#allocation8 + $0x140] sm:$0xff] }
 0x21f   : > { %2684 = vmatpush.msrb.mxu3 %v2579_v42  ;;  %2405 = vmatpush.msrb.mxu1 %v2032_v56  ;;  %v2232_v47 = vsel %vm769_vm0, %v2230_v57, %v2231_v7  ;;  %v3799_v50 = vsel %vm1631_vm2, %v2670_v44, %v2671_v61  ;;  %v2621_v41 = vld [vmem:[#allocation8 + $0x820] sm:$0xff]  ;;  %v2618_v42 = vld [vmem:[#allocation8 + $0x808] sm:$0xff]  ;;  %v2050_v56 = vld [vmem:[#allocation8 + $0x130] sm:$0xff] }
 0x220   : > { %2485 = vmatpush.msra.mxu0 %v2033_v46  ;;  %3024 = vmatmul.msk.f32.vlgmr.msrb.gmra.mxu2 %vm785_vm1, %v2232_v47  ;;  %v2071_v7 = vld [vmem:[#allocation8 + $0x1d8] sm:$0xff]  ;;  %v2619_v61 = vld [vmem:[#allocation8 + $0x810] sm:$0xff]  ;;  %v2048_v44 = vld [vmem:[#allocation8 + $0x120] sm:$0xff] }
 0x221   : > { %2685 = vmatpush.msrb.mxu3 %v2577_v52  ;;  %3025 = vmatmul.msk.f32.vlgmr.msra.gmra.mxu1 %vm785_vm1, %v2232_v47  ;;  %v2616_v57 = vld [vmem:[#allocation8 + $0x7f8] sm:$0xff]  ;;  %v2069_v46 = vld [vmem:[#allocation8 + $0x1c8] sm:$0xff]  ;;  %v2617_v52 = vld [vmem:[#allocation8 + $0x800] sm:$0xff] }
 0x222   : > { %2420 = vmatpush.msrb.mxu2 %v2074_v21  ;;  %2406 = vmatpush.msrb.mxu1 %v2030_v18  ;;  %v2614_v47 = vld [vmem:[#allocation8 + $0x7e8] sm:$0xff]  ;;  %v2067_v21 = vld [vmem:[#allocation8 + $0x1b8] sm:$0xff]  ;;  %v2615_v18 = vld [vmem:[#allocation8 + $0x7f0] sm:$0xff] }
 0x223   : > { %2486 = vmatpush.msra.mxu0 %v2031_v51  ;;  %2686 = vmatpush.msrb.mxu3 %v2575_v62  ;;  %v2612_v51 = vld [vmem:[#allocation8 + $0x7d8] sm:$0xff]  ;;  %v2044_v62 = vld [vmem:[#allocation8 + $0x100] sm:$0xff] }
 0x224   : > { %2421 = vmatpush.msrb.mxu2 %v2072_v53  ;;  %2407 = vmatpush.msrb.mxu1 %v2028_v54  ;;  %v2065_v53 = vld [vmem:[#allocation8 + $0x1a8] sm:$0xff]  ;;  %v2613_v54 = vld [vmem:[#allocation8 + $0x7e0] sm:$0xff] }
 0x225   : > { %2487 = vmatpush.msra.mxu0 %v2029_v55  ;;  %2687 = vmatpush.msrb.mxu3 %v2573_v31  ;;  %v2610_v55 = vld [vmem:[#allocation8 + $0x7c8] sm:$0xff]  ;;  %v2063_v31 = vld [vmem:[#allocation8 + $0x198] sm:$0xff] }
 0x226   : > { %2422 = vmatpush.msrb.mxu2 %v2070_v58  ;;  %2408 = vmatpush.msrb.mxu1 %v2026_v59  ;;  %v2107_v58 = vld [vmem:[#allocation8 + $0x2f8] sm:$0xff]  ;;  %v2611_v59 = vld [vmem:[#allocation8 + $0x7d0] sm:$0xff] }
 0x227   : > { %2488 = vmatpush.msra.mxu0 %v2027_v63  ;;  %2688 = vmatpush.msrb.mxu3 %v2571_v48  ;;  %v2608_v63 = vld [vmem:[#allocation8 + $0x7b8] sm:$0xff]  ;;  %v2061_v48 = vld [vmem:[#allocation8 + $0x188] sm:$0xff] }
 0x228   : > { %2423 = vmatpush.msrb.mxu2 %v2068_v14  ;;  %2409 = vmatpush.msrb.mxu1 %v2024_v3  ;;  %v2105_v14 = vld [vmem:[#allocation8 + $0x2e8] sm:$0xff]  ;;  %v2609_v3 = vld [vmem:[#allocation8 + $0x7c0] sm:$0xff] }
 0x229   : > { %2489 = vmatpush.msra.mxu0 %v2025_v4  ;;  %2689 = vmatpush.msrb.mxu3 %v2569_v5  ;;  %v2606_v4 = vld [vmem:[#allocation8 + $0x7a8] sm:$0xff]  ;;  %v2059_v5 = vld [vmem:[#allocation8 + $0x178] sm:$0xff] }
 0x22a   : > { %2334 = vmatmul.f32.vlgmr.msra.gmra.mxu2 %v3749_v11  ;;  %2410 = vmatpush.msrb.mxu1 %v2022_v34  ;;  %v2561_v11 = vld [vmem:[#allocation8 + $0x640] sm:$0xff]  ;;  %v2103_v34 = vld [vmem:[#allocation8 + $0x2d8] sm:$0xff] }
 0x22b   : > { %2424 = vmatpush.msrb.mxu2 %v2066_v45  ;;  %2490 = vmatpush.msra.mxu0 %v2023_v6  ;;  %v2607_v45 = vld [vmem:[#allocation8 + $0x7b0] sm:$0xff]  ;;  %v2604_v6 = vld [vmem:[#allocation8 + $0x798] sm:$0xff] }
 0x22c   : > { %2690 = vmatpush.msrb.mxu3 %v2567_v60  ;;  %2411 = vmatpush.msrb.mxu1 %v2020_v8  ;;  %v2057_v60 = vld [vmem:[#allocation8 + $0x168] sm:$0xff] }
 0x22d   : > { %2425 = vmatpush.msrb.mxu2 %v2064_v9  ;;  %2491 = vmatpush.msra.mxu0 %v2021_v10  ;;  %v2101_v8 = vld [vmem:[#allocation8 + $0x2c8] sm:$0xff]  ;;  %v2605_v9 = vld [vmem:[#allocation8 + $0x7a0] sm:$0xff] }
 0x22e   : > { %2691 = vmatpush.msrb.mxu3 %v2565_v12  ;;  %2412 = vmatpush.msrb.mxu1 %v2018_v16  ;;  %v2602_v10 = vld [vmem:[#allocation8 + $0x788] sm:$0xff]  ;;  %v2055_v12 = vld [vmem:[#allocation8 + $0x158] sm:$0xff] }
 0x22f   : > { %2426 = vmatpush.msrb.mxu2 %v2062_v15  ;;  %2492 = vmatpush.msra.mxu0 %v2019_v17  ;;  %v2099_v16 = vld [vmem:[#allocation8 + $0x2b8] sm:$0xff]  ;;  %v2603_v15 = vld [vmem:[#allocation8 + $0x790] sm:$0xff] }
 0x230   : > { %2692 = vmatpush.msrb.mxu3 %v2563_v2  ;;  %2413 = vmatpush.msrb.mxu1 %v2016_v22  ;;  %v2600_v17 = vld [vmem:[#allocation8 + $0x778] sm:$0xff]  ;;  %v2053_v2 = vld [vmem:[#allocation8 + $0x148] sm:$0xff] }
 0x231   : > { %2427 = vmatpush.msrb.mxu2 %v2060_v23  ;;  %2493 = vmatpush.msra.mxu0 %v2017_v24  ;;  %v2097_v22 = vld [vmem:[#allocation8 + $0x2a8] sm:$0xff]  ;;  %v2601_v23 = vld [vmem:[#allocation8 + $0x780] sm:$0xff] }
 0x232   : > { %2693 = vmatpush.msrb.mxu3 %v2561_v11  ;;  %2414 = vmatpush.msrb.mxu1 %v2014_v25  ;;  %v2598_v24 = vld [vmem:[#allocation8 + $0x768] sm:$0xff]  ;;  %v2051_v11 = vld [vmem:[#allocation8 + $0x138] sm:$0xff] }
 0x233   : > { %2428 = vmatpush.msrb.mxu2 %v2058_v27  ;;  %2694 = vmatmul.f32.vlgmr.msrb.gmra.mxu3 %v3753_v35  ;;  %v2095_v25 = vld [vmem:[#allocation8 + $0x298] sm:$0xff]  ;;  %v2599_v27 = vld [vmem:[#allocation8 + $0x770] sm:$0xff] }
 0x234   : > { %2778 = vmatpush.msra.mxu3 %v2624_v49  ;;  %2494 = vmatpush.msra.mxu0 %v2015_v28  ;;  %v2596_v49 = vld [vmem:[#allocation8 + $0x758] sm:$0xff]  ;;  %v2049_v28 = vld [vmem:[#allocation8 + $0x128] sm:$0xff] }
 0x235   : > { %2429 = vmatpush.msrb.mxu2 %v2056_v29  ;;  %2415 = vmatpush.msrb.mxu1 %v2012_v32  ;;  %v2093_v29 = vld [vmem:[#allocation8 + $0x288] sm:$0xff]  ;;  %v2597_v32 = vld [vmem:[#allocation8 + $0x760] sm:$0xff] }
 0x236   : > { %2779 = vmatpush.msra.mxu3 %v2622_v33  ;;  %2495 = vmatpush.msra.mxu0 %v2013_v1  ;;  %v2594_v33 = vld [vmem:[#allocation8 + $0x748] sm:$0xff]  ;;  %v2047_v1 = vld [vmem:[#allocation8 + $0x118] sm:$0xff] }
 0x237   : > { %3027 = vmatmul.msk.f32.vlgmr.msrb.gmra.mxu1 %vm3774_vm4, %v3742_v30  ;;  %2430 = vmatpush.msrb.mxu2 %v2054_v13  ;;  %v2091_v13 = vld [vmem:[#allocation8 + $0x278] sm:$0xff] }
 0x238   : > { %3034 = vmatmul.msk.f32.vlgmr.msra.gmra.mxu0 %vm3774_vm4, %v3742_v30  ;;  %2500 = vmatpush.msra.mxu1 %v2075_v36  ;;  %v2046_v30 = vld [vmem:[#allocation8 + $0x110] sm:$0xff] }
 0x239   : > { %2698 = vmatpush.msrb.mxu0 %v2623_v37  ;;  %2780 = vmatpush.msra.mxu3 %v2620_v38  ;;  %v2595_v36 = vld [vmem:[#allocation8 + $0x750] sm:$0xff]  ;;  %v2045_v37 = vld [vmem:[#allocation8 + $0x108] sm:$0xff] }
 0x23a   : > { %2431 = vmatpush.msrb.mxu2 %v2052_v39  ;;  %2501 = vmatpush.msra.mxu1 %v2073_v40  ;;  %v2089_v38 = vld [vmem:[#allocation8 + $0x268] sm:$0xff]  ;;  %v2593_v39 = vld [vmem:[#allocation8 + $0x740] sm:$0xff]  ;;  %v2655_v40 = vld [vmem:[#allocation8 + $0x930] sm:$0xff] }
 0x23b   : > { %2699 = vmatpush.msrb.mxu0 %v2621_v41  ;;  %2781 = vmatpush.msra.mxu3 %v2618_v42  ;;  %v2087_v41 = vld [vmem:[#allocation8 + $0x258] sm:$0xff] }
 0x23c   : > { %2432 = vmatpush.msrb.mxu2 %v2050_v56  ;;  %2502 = vmatpush.msra.mxu1 %v2071_v7  ;;  %v2656_v42 = vld [vmem:[#allocation8 + $0x938] sm:$0xff]  ;;  %v2653_v56 = vld [vmem:[#allocation8 + $0x920] sm:$0xff]  ;;  %v2085_v7 = vld [vmem:[#allocation8 + $0x248] sm:$0xff] }
 0x23d   : > { %2700 = vmatpush.msrb.mxu0 %v2619_v61  ;;  %2782 = vmatpush.msra.mxu3 %v2616_v57  ;;  %v2654_v61 = vld [vmem:[#allocation8 + $0x928] sm:$0xff]  ;;  %v2651_v57 = vld [vmem:[#allocation8 + $0x910] sm:$0xff] }
 0x23e   : > { %2433 = vmatpush.msrb.mxu2 %v2048_v44  ;;  %2503 = vmatpush.msra.mxu1 %v2069_v46  ;;  %v2083_v44 = vld [vmem:[#allocation8 + $0x238] sm:$0xff] }
 0x23f   : > { %2701 = vmatpush.msrb.mxu0 %v2617_v52  ;;  %2783 = vmatpush.msra.mxu3 %v2614_v47  ;;  %v2652_v46 = vld [vmem:[#allocation8 + $0x918] sm:$0xff]  ;;  %v2649_v52 = vld [vmem:[#allocation8 + $0x900] sm:$0xff]  ;;  %v2081_v47 = vld [vmem:[#allocation8 + $0x228] sm:$0xff] }
 0x240   : > { %2434 = vmatpush.msrb.mxu2 %v2046_v30  ;;  %2504 = vmatpush.msra.mxu1 %v2067_v21  ;;  %v2647_v30 = vld [vmem:[#allocation8 + $0x8f0] sm:$0xff]  ;;  %v2079_v21 = vld [vmem:[#allocation8 + $0x218] sm:$0xff] }
 0x241   : > { %2702 = vmatpush.msrb.mxu0 %v2615_v18  ;;  %2784 = vmatpush.msra.mxu3 %v2612_v51  ;;  %v2648_v18 = vld [vmem:[#allocation8 + $0x8f8] sm:$0xff]  ;;  %v2077_v51 = vld [vmem:[#allocation8 + $0x208] sm:$0xff] }
 0x242   : > { %2435 = vmatpush.msrb.mxu2 %v2044_v62  ;;  %2505 = vmatpush.msra.mxu1 %v2065_v53  ;;  %v2646_v62 = vld [vmem:[#allocation8 + $0x8e8] sm:$0xff]  ;;  %v2659_v53 = vld [vmem:[#allocation8 + $0x950] sm:$0xff] }
 0x243   : > { %2703 = vmatpush.msrb.mxu0 %v2613_v54  ;;  %2785 = vmatpush.msra.mxu3 %v2610_v55  ;;  %v2643_v54 = vld [vmem:[#allocation8 + $0x8d0] sm:$0xff]  ;;  %v2644_v55 = vld [vmem:[#allocation8 + $0x8d8] sm:$0xff] }
 0x244   : > { %3029 = vmatmul.msk.f32.vlgmr.msrb.gmra.mxu2 %vm3774_vm4, %v3761_v19  ;;  %2506 = vmatpush.msra.mxu1 %v2063_v31  ;;  %v2657_v31 = vld [vmem:[#allocation8 + $0x940] sm:$0xff] }
 0x245   : > { %2520 = vmatpush.msra.mxu2 %v2107_v58  ;;  %2704 = vmatpush.msrb.mxu0 %v2611_v59  ;;  %v2641_v58 = vld [vmem:[#allocation8 + $0x8c0] sm:$0xff]  ;;  %v2592_v59 = vld [vmem:[#allocation8 + $0x738] sm:$0xff] }
 0x246   : > { %2786 = vmatpush.msra.mxu3 %v2608_v63  ;;  %2507 = vmatpush.msra.mxu1 %v2061_v48  ;;  %v2642_v63 = vld [vmem:[#allocation8 + $0x8c8] sm:$0xff]  ;;  %v2639_v48 = vld [vmem:[#allocation8 + $0x8b0] sm:$0xff] }
 0x247   : > { %2521 = vmatpush.msra.mxu2 %v2105_v14  ;;  %2705 = vmatpush.msrb.mxu0 %v2609_v3  ;;  %v2590_v14 = vld [vmem:[#allocation8 + $0x728] sm:$0xff]  ;;  %v2640_v3 = vld [vmem:[#allocation8 + $0x8b8] sm:$0xff] }
 0x248   : > { %2787 = vmatpush.msra.mxu3 %v2606_v4  ;;  %2508 = vmatpush.msra.mxu1 %v2059_v5  ;;  %v2637_v4 = vld [vmem:[#allocation8 + $0x8a0] sm:$0xff]  ;;  %v2588_v5 = vld [vmem:[#allocation8 + $0x718] sm:$0xff] }
 0x249   : > { %2522 = vmatpush.msra.mxu2 %v2103_v34  ;;  %2706 = vmatpush.msrb.mxu0 %v2607_v45  ;;  %v2638_v34 = vld [vmem:[#allocation8 + $0x8a8] sm:$0xff]  ;;  %v2636_v45 = vld [vmem:[#allocation8 + $0x898] sm:$0xff] }
 0x24a   : > { %2788 = vmatpush.msra.mxu3 %v2604_v6  ;;  %2509 = vmatpush.msra.mxu1 %v2057_v60  ;;  %v2633_v6 = vld [vmem:[#allocation8 + $0x880] sm:$0xff]  ;;  %v2584_v60 = vld [vmem:[#allocation8 + $0x6f8] sm:$0xff] }
 0x24b   : > { %2523 = vmatpush.msra.mxu2 %v2101_v8  ;;  %2707 = vmatpush.msrb.mxu0 %v2605_v9  ;;  %v2634_v8 = vld [vmem:[#allocation8 + $0x888] sm:$0xff]  ;;  %v2631_v9 = vld [vmem:[#allocation8 + $0x870] sm:$0xff] }
 0x24c   : > { %2789 = vmatpush.msra.mxu3 %v2602_v10  ;;  %2510 = vmatpush.msra.mxu1 %v2055_v12  ;;  %v2582_v10 = vld [vmem:[#allocation8 + $0x6e8] sm:$0xff]  ;;  %v2632_v12 = vld [vmem:[#allocation8 + $0x878] sm:$0xff] }
 0x24d   : > { %2524 = vmatpush.msra.mxu2 %v2099_v16  ;;  %2708 = vmatpush.msrb.mxu0 %v2603_v15  ;;  %v2629_v16 = vld [vmem:[#allocation8 + $0x860] sm:$0xff]  ;;  %v2580_v15 = vld [vmem:[#allocation8 + $0x6d8] sm:$0xff] }
 0x24e   : > { %2790 = vmatpush.msra.mxu3 %v2600_v17  ;;  %2511 = vmatpush.msra.mxu1 %v2053_v2  ;;  %v2630_v17 = vld [vmem:[#allocation8 + $0x868] sm:$0xff]  ;;  %v2627_v2 = vld [vmem:[#allocation8 + $0x850] sm:$0xff] }
 0x24f   : > { %2525 = vmatpush.msra.mxu2 %v2097_v22  ;;  %2709 = vmatpush.msrb.mxu0 %v2601_v23  ;;  %v2578_v22 = vld [vmem:[#allocation8 + $0x6c8] sm:$0xff]  ;;  %v2628_v23 = vld [vmem:[#allocation8 + $0x858] sm:$0xff] }
 0x250   : > { %2791 = vmatpush.msra.mxu3 %v2598_v24  ;;  %2512 = vmatpush.msra.mxu1 %v2051_v11  ;;  %v2625_v24 = vld [vmem:[#allocation8 + $0x840] sm:$0xff]  ;;  %v2576_v11 = vld [vmem:[#allocation8 + $0x6b8] sm:$0xff] }
 0x251   : > { %2526 = vmatpush.msra.mxu2 %v2095_v25  ;;  %2710 = vmatpush.msrb.mxu0 %v2599_v27  ;;  %v2626_v25 = vld [vmem:[#allocation8 + $0x848] sm:$0xff] }
 0x252   : > { %2792 = vmatpush.msra.mxu3 %v2596_v49  ;;  %2513 = vmatpush.msra.mxu1 %v2049_v28  ;;  %v2574_v27 = vld [vmem:[#allocation8 + $0x6a8] sm:$0xff]  ;;  %v2660_v49 = vld [vmem:[#allocation8 + $0x958] sm:$0xff] }
 0x253   : > { %2527 = vmatpush.msra.mxu2 %v2093_v29  ;;  %2711 = vmatpush.msrb.mxu0 %v2597_v32  ;;  %v2572_v28 = vld [vmem:[#allocation8 + $0x698] sm:$0xff]  ;;  %v2658_v29 = vld [vmem:[#allocation8 + $0x948] sm:$0xff] }
 0x254   : > { %2793 = vmatpush.msra.mxu3 %v2594_v33  ;;  %2514 = vmatpush.msra.mxu1 %v2047_v1  ;;  %v2570_v32 = vld [vmem:[#allocation8 + $0x688] sm:$0xff]  ;;  %v2568_v33 = vld [vmem:[#allocation8 + $0x678] sm:$0xff] }
 0x255   : > { %2528 = vmatpush.msra.mxu2 %v2091_v13  ;;  %2794 = vmatmul.f32.vlgmr.msra.gmra.mxu3 %v3769_v43  ;;  %v2566_v1 = vld [vmem:[#allocation8 + $0x668] sm:$0xff]  ;;  %v2564_v13 = vld [vmem:[#allocation8 + $0x658] sm:$0xff] }
 0x256   : > { %2712 = vmatpush.msrb.mxu0 %v2595_v36  ;;  %2515 = vmatpush.msra.mxu1 %v2045_v37  ;;  %v2562_v36 = vld [vmem:[#allocation8 + $0x648] sm:$0xff] }
 0x257   : > { %2529 = vmatpush.msra.mxu2 %v2089_v38  ;;  %3036 = vmatmul.msk.f32.vlgmr.msra.gmra.mxu1 %vm3774_vm4, %v3761_v19  ;;  %v2650_v19 = vld [vmem:[#allocation8 + $0x908] sm:$0xff] }
 0x258   : > { %2713 = vmatpush.msrb.mxu0 %v2593_v39  ;;  %2718 = vmatpush.msrb.mxu1 %v2655_v40  ;;  %v2255_v37 = vpop.f32.mrf.mxu3 }
 0x259   : > { %2530 = vmatpush.msra.mxu2 %v2087_v41  ;;  %2714 = vmatmul.f32.vlgmr.msrb.gmra.mxu0 %v3769_v43  ;;  %v2645_v43 = vld [vmem:[#allocation8 + $0x8e0] sm:$0xff] }
 0x25a   : > { %2798 = vmatpush.msra.mxu0 %v2656_v42  ;;  %2719 = vmatpush.msrb.mxu1 %v2653_v56 }
 0x25b   : > { %2531 = vmatpush.msra.mxu2 %v2085_v7 }
 0x25c   : > { %2799 = vmatpush.msra.mxu0 %v2654_v61  ;;  %2720 = vmatpush.msrb.mxu1 %v2651_v57 }
 0x25d   : > { %2532 = vmatpush.msra.mxu2 %v2083_v44 }
 0x25e   : > { %2800 = vmatpush.msra.mxu0 %v2652_v46  ;;  %2721 = vmatpush.msrb.mxu1 %v2649_v52 }
 0x25f   : > { %2533 = vmatpush.msra.mxu2 %v2081_v47 }
 0x260   : > { %2801 = vmatpush.msra.mxu0 %v2650_v19  ;;  %2722 = vmatpush.msrb.mxu1 %v2647_v30 }
 0x261   : > { %2534 = vmatpush.msra.mxu2 %v2079_v21 }
 0x262   : > { %2802 = vmatpush.msra.mxu0 %v2648_v18  ;;  %2723 = vmatpush.msrb.mxu1 %v2645_v43 }
 0x263   : > { %2535 = vmatpush.msra.mxu2 %v2077_v51 }
 0x264   : > { %2803 = vmatpush.msra.mxu0 %v2646_v62  ;;  %3038 = vmatmul.msk.f32.vlgmr.msra.gmra.mxu2 %vm3774_vm4, %v3778_v20  ;;  %v2586_v20 = vld [vmem:[#allocation8 + $0x708] sm:$0xff] }
 0x265   : > { %2752 = vmatpush.msrb.mxu2 %v2659_v53  ;;  %2724 = vmatpush.msrb.mxu1 %v2643_v54 }
 0x266   : > { %2804 = vmatpush.msra.mxu0 %v2644_v55  ;;  %v2840_v55 = vld [vmem:[#allocation10] sm:$0x3] }
 0x267   : > { %2753 = vmatpush.msrb.mxu2 %v2657_v31  ;;  %2725 = vmatpush.msrb.mxu1 %v2641_v58 }
 0x268   : > { %2805 = vmatpush.msra.mxu0 %v2642_v63 }
 0x269   : > { %2758 = vmatpush.msra.mxu2 %v2592_v59  ;;  %2726 = vmatpush.msrb.mxu1 %v2639_v48  ;;  %v2842_v48 = vperm.slane %v2840_v55, 0 }
 0x26a   : > { %2806 = vmatpush.msra.mxu0 %v2640_v3 }
 0x26b   : > { %2759 = vmatpush.msra.mxu2 %v2590_v14  ;;  %2727 = vmatpush.msrb.mxu1 %v2637_v4  ;;  %v2848_v4 = vld [vmem:[%s3542_s2] sm:$0xff] }
 0x26c   : > { %2807 = vmatpush.msra.mxu0 %v2638_v34  ;;  %3040 = vmatmul.msk.f32.vlgmr.msrb.gmra.mxu2 %vm785_vm1, %v3799_v50 }
 0x26d   : > { %2760 = vmatpush.msra.mxu2 %v2588_v5  ;;  %2728 = vmatpush.msrb.mxu1 %v2635_v0 }
 0x26e   : > { %2808 = vmatpush.msra.mxu0 %v2636_v45 }
 0x26f   : > { %2761 = vmatpush.msra.mxu2 %v2586_v20  ;;  %2729 = vmatpush.msrb.mxu1 %v2633_v6 }
 0x270   : > { %2809 = vmatpush.msra.mxu0 %v2634_v8 }
 0x271   : > { %2762 = vmatpush.msra.mxu2 %v2584_v60  ;;  %2730 = vmatpush.msrb.mxu1 %v2631_v9 }
 0x272   : > { %2810 = vmatpush.msra.mxu0 %v2632_v12 }
 0x273   : > { %2763 = vmatpush.msra.mxu2 %v2582_v10  ;;  %2731 = vmatpush.msrb.mxu1 %v2629_v16 }
 0x274   : > { %2811 = vmatpush.msra.mxu0 %v2630_v17 }
 0x275   : > { %2764 = vmatpush.msra.mxu2 %v2580_v15  ;;  %2732 = vmatpush.msrb.mxu1 %v2627_v2 }
 0x276   : > { %2812 = vmatpush.msra.mxu0 %v2628_v23  ;;  %v2843_v23 = vperm.slane %v2840_v55, 1 }
 0x277   : > { %2765 = vmatpush.msra.mxu2 %v2578_v22  ;;  %2733 = vmatpush.msrb.mxu1 %v2625_v24 }
 0x278   : > { %2813 = vmatpush.msra.mxu0 %v2626_v25  ;;  %2734 = vmatmul.f32.vlgmr.msrb.gmra.mxu1 %v3791_v26  ;;  %v2355_v41 = vpop.f32.mrf.mxu3 }
 0x279   : > { %2766 = vmatpush.msra.mxu2 %v2576_v11  ;;  %2814 = vmatmul.f32.vlgmr.msra.gmra.mxu0 %v3791_v26  ;;  %v2275_v26 = vpop.f32.mrf.mxu0  ;;  %v2849_v11 = vld [vmem:[%s3542_s2 + $0x8] sm:$0xff]  ;;  %s3319_s2 = scalar_lea.hbm %s3872_s6, 32 }
 0x27a   : > { %2832 = vmatpush.msra.mxu1 %v2660_v49  ;;  %p3321_p8 = scmp.lt.s32.totalorder %s3319_s2, %s3315_s7 }
 0x27b   : > { %2767 = vmatpush.msra.mxu2 %v2574_v27 }
 0x27c   : > { %2833 = vmatpush.msra.mxu1 %v2658_v29  ;;  %p3322_p9 = por %p3321_p8, %p3320_p7 }
 0x27d   : > { %2768 = vmatpush.msra.mxu2 %v2572_v28 }
 0x27e   : > { %p3323_p10 = pnand %p3322_p9, %p3318_p12 }
 0x27f   : > { %2769 = vmatpush.msra.mxu2 %v2570_v32 }
 0x280   : > { %3041 = vmatmul.msk.f32.vlgmr.msra.gmra.mxu1 %vm785_vm1, %v3799_v50  ;;  %v2276_v50 = vadd.f32 %v2275_v26, %v2255_v37 }
 0x281   : > { %2770 = vmatpush.msra.mxu2 %v2568_v33 }
 0x283   : > { %2771 = vmatpush.msra.mxu2 %v2566_v1 }
 0x285   : > { %2772 = vmatpush.msra.mxu2 %v2564_v13 }
 0x287   : > { %2773 = vmatpush.msra.mxu2 %v2562_v36 }
 0x288   : > { %2774 = vmatmul.f32.vlgmr.msra.gmra.mxu2 %v3753_v35 }
 0x291   : > { %v2295_v39 = vpop.f32.mrf.mxu1  ;;  %v2375_v40 = vpop.f32.mrf.mxu0 }
 0x292   : > { %v2296_v52 = vadd.f32 %v2295_v39, %v2276_v50 }
 0x293   : > { %v2457_v61 = vpop.f32.mrf.mxu3 }
 0x29a   : > { %v2477_v7 = vpop.f32.mrf.mxu0 }
 0x29e   : > { %v2395_v42 = vpop.f32.mrf.mxu1 }
 0x2a1   : > { %v2557_v47 = vpop.f32.mrf.mxu3 }
 0x2a3   : > { %v2315_v38 = vpop.f32.mrf.mxu2 }
 0x2a4   : > { %v2316_v19 = vadd.f32 %v2315_v38, %v2296_v52 }
 0x2ad   : > { %v2335_v56 = vpop.f32.mrf.mxu2 }
 0x2ae   : > { %v2356_v14 = vadd.f32 %v2355_v41, %v2335_v56 }
 0x2b0   : > { %v2376_v34 = vadd.f32 %v2375_v40, %v2356_v14 }
 0x2b2   : > { %v2396_v45 = vadd.f32 %v2395_v42, %v2376_v34 }
 0x2b4   : > { %v2417_v57 = vpop.f32.mrf.mxu1 }
 0x2b5   : > { %v2497_v46 = vpop.f32.mrf.mxu0  ;;  %v2418_v35 = vadd.f32 %v2417_v57, %v2316_v19 }
 0x2b6   : > { %v2695_v51 = vpop.f32.mrf.mxu3  ;;  %v2498_v6 = vadd.f32 %v2497_v46, %v2396_v45 }
 0x2c7   : > { %v2437_v44 = vpop.f32.mrf.mxu2 }
 0x2c8   : > { %v2438_v18 = vadd.f32 %v2437_v44, %v2418_v35 }
 0x2ca   : > { %v2458_v62 = vadd.f32 %v2457_v61, %v2438_v18 }
 0x2cc   : > { %v2478_v59 = vadd.f32 %v2477_v7, %v2458_v62 }
 0x2d4   : > { %v2517_v30 = vpop.f32.mrf.mxu1 }
 0x2d5   : > { %v2518_v60 = vadd.f32 %v2517_v30, %v2498_v6 }
 0x2d6   : > { %v2715_v43 = vpop.f32.mrf.mxu0 }
 0x2d7   : > { %v2716_v53 = vadd.f32 %v2715_v43, %v2695_v51 }
 0x2d8   : > { %v2795_v8 = vpop.f32.mrf.mxu3 }
 0x2e7   : > { %v2537_v21 = vpop.f32.mrf.mxu2 }
 0x2e8   : > { %v2538_v10 = vadd.f32 %v2537_v21, %v2518_v60 }
 0x2ea   : > { %v2558_v2 = vadd.f32 %v2557_v47, %v2538_v10 }
 0x2ef   : > { %v2755_v58 = vpop.f32.mrf.mxu2 }
 0x2f5   : > { %v2735_v54 = vpop.f32.mrf.mxu1 }
 0x2f6   : > { %v2736_v31 = vadd.f32 %v2735_v54, %v2716_v53  ;;  %v2815_v16 = vpop.f32.mrf.mxu0 }
 0x2f8   : > { %v2756_v63 = vadd.f32 %v2755_v58, %v2736_v31 }
 0x2fa   : > { %v2838_v3 = vadd.f32 %v2756_v63, %v2478_v59 }
 0x2fc   : > { %v2846_v5 = vadd.f32 %v2842_v48, %v2838_v3 }
 0x2fd   : > { %v2835_v17 = vpop.f32.mrf.mxu1 }
 0x2fe   : > { %v2850_v0 = vadd.f32 %v2848_v4, %v2846_v5 }
 0x300   : > { %v2852_v20 = vmax.f32 %v2850_v0, 0.0 }
 0x302   : > { %2854 = vst [vmem:[%s346_s13] sm:$0xff] %v2852_v20 }
 0x30b   : > { %v2775_v9 = vpop.f32.mrf.mxu2 }
 0x30c   : > { %v2796_v12 = vadd.f32 %v2795_v8, %v2775_v9 }
 0x30e   : > { %v2816_v15 = vadd.f32 %v2815_v16, %v2796_v12 }
 0x310   : > { %v2836_v22 = vadd.f32 %v2835_v17, %v2816_v15 }
 0x312   : > { %v2839_v24 = vadd.f32 %v2836_v22, %v2558_v2 }
 0x314   : > { %v2847_v25 = vadd.f32 %v2843_v23, %v2839_v24 }
 0x316   : > { %v2851_v27 = vadd.f32 %v2849_v11, %v2847_v25 }
 0x318   : > { %v2853_v49 = vmax.f32 %v2851_v27, 0.0 }
 0x31a   : > { %2855 = vst [vmem:[%s346_s13 + $0x8] sm:$0xff] %v2853_v49 }
 0x31b   : > { %3326 = shalt.err (!%p3323_p10)
}
 0x31c   : > { %3068 = dma.vmem_to_hbm [thread:$0]  (%p3505_p4), %s2871_s27, 256, %s2873_s16, %s2857_s30  }
 0x31d PF: > { %s2884_s17 = sand.u32 1, %s3361_s21   ;;  %p3884_p13 = scmp.ge.s32.totalorder %s3373_s24, 2 }
 0x31e   : > { %s2885_s10 = scalar_lea.sflag [#allocation4], %s2884_s17 }
 0x31f   : > { %p3088_p11 = pnand %p3884_p13, %p3509_p6 }
 0x321   : > { %p3089_p0 = pneg %p3088_p11 }
 0x323   : > { %3356 = dma.done.wait (%p3089_p0), %s2885_s10, 256  }
 0x324   : > { %3358 = vsyncadd (%p3089_p0), %s2885_s10, 4294967040  ;;  %p21_p2 = scmp.ge.s32.totalorder %s3479_s12, 4   ;;  %s3885_s21 = smov %s3365_s22 }
 0x325   : > { %s3886_s22 = smov %s3369_s23  ;;  %s3887_s23 = smov %s3490_s15 }
 0x326   : > { %s3888_s24 = smov %s3479_s12  ;;  %23 = sbr.rel (!%p21_p2) target bundleno = 9 (0x9), region = 112 }
 0x32b   :  { %2891 = vsyncpa [#allocation3], 1 }
 0x32c   :  { %2893 = vsyncpa [#allocation3 + $0x1], 1 }
 0x32d   :  { %2894 = vsyncpa [#allocation6], 1 }
 0x32e   :  { %2895 = vsyncpa [#allocation9], 1 }
 0x32f   :  { %2896 = vsyncpa [#allocation4], 1 }
 0x330   :  { %2898 = vsyncpa [#allocation4 + $0x1], 1 }

</bundles_post_ra>
